<compile_context>
chip_gen: v7x
topology: tpu7x:2x2x1
jax: 0.10.0
libtpu: 0.0.40
codegen_flags: <defaults>
</compile_context>

<pallas_src>
import jax
import jax.numpy as jnp
import numpy as np
from jax.experimental import pallas as pl
from jax.experimental.pallas import tpu as pltpu

EPS = 1e-5
LANE = 128   # lane-dense channel width for intermediates / weights
HALO = 8     # left-halo width of the stage-2 scratch (keeps interior store aligned)


# ---------------------------------------------------------------------------
# Kernels
# ---------------------------------------------------------------------------
def _stats_block(v_f32):
    """One (8, C) stats block: row0 = sum, row1 = sum of squares, rows 2-7 = 0.

    Assembled as a single value (one store per tile, no masked row stores,
    no uninitialized rows in the stats output).
    """
    s = jnp.sum(v_f32, axis=0, keepdims=True)
    q = jnp.sum(v_f32 * v_f32, axis=0, keepdims=True)
    row = jax.lax.broadcasted_iota(jnp.int32, (8, v_f32.shape[1]), 0)
    return jnp.where(row == 0, s, jnp.where(row == 1, q, 0.0))


def _stage1_kernel(x_ref, w01_ref, t1_ref, s01_ref):
    """Fused 1x1 matmul for [skip conv0 | conv1] + BN0/BN1 partial stats.

    The two pointwise convs share the same LHS, so one N=2*LANE matmul fills
    the 256-wide MXU on v6e/v7x.  t0 (skip) is reduced to stats only and
    recomputed in sweep 4 instead of round-tripping through HBM.
    """
    xb = x_ref[...].astype(jnp.bfloat16)
    t01 = jnp.dot(xb, w01_ref[...], preferred_element_type=jnp.float32)  # (rt, 2*LANE)
    half = t01.shape[1] // 2
    t1_ref[...] = t01[:, half:].astype(t1_ref.dtype)          # bf16 intermediate
    s01_ref[...] = _stats_block(t01)                           # stats from f32 acc


def _make_stage2_kernel(H, W, Cp):
    """bn1 + relu + 3x3 conv (stride 1, pad 1) per image.

    The 3x3 conv is nine accumulated K=Cp matmuls read directly from a small
    bf16 zero-halo scratch — no materialized im2col buffer.  Only the halo
    cells the taps actually read are zeroed (every step, so the kernel stays
    correct when a "parallel" grid axis is split across TensorCores); the
    interior is fully overwritten each step.
    """
    HW = H * W

    def kernel(t1_ref, sc1_ref, sh1_ref, w2_ref, t2_ref, s2_ref, pad_ref):
        # folded BN1 + ReLU in f32, stored once (bf16) into the halo scratch
        y1 = jnp.maximum(
            t1_ref[...].astype(jnp.float32) * sc1_ref[...] + sh1_ref[...], 0.0)
        pad_ref[1:1 + H, HALO:HALO + W, :] = (
            y1.reshape(H, W, Cp).astype(pad_ref.dtype))

        # zero only the read halo: top/bottom rows + the single left/right cols
        zrow = jnp.zeros((1, pad_ref.shape[1], Cp), pad_ref.dtype)
        zcol = jnp.zeros((H, 1, Cp), pad_ref.dtype)
        pad_ref[0:1, :, :] = zrow
        pad_ref[H + 1:H + 2, :, :] = zrow
        pad_ref[1:1 + H, HALO - 1:HALO, :] = zcol
        pad_ref[1:1 + H, HALO + W:HALO + W + 1, :] = zcol

        # 3x3 conv = 9 accumulated matmuls (same MXU FLOPs as the im2col form,
        # no 9x VMEM copies, no big f32 col buffer).
        acc = jnp.zeros((HW, Cp), jnp.float32)
        for ky in range(3):
            for kx in range(3):
                tap = pad_ref[ky:ky + H, HALO - 1 + kx:HALO - 1 + kx + W, :]
                acc = acc + jnp.dot(tap.reshape(HW, Cp), w2_ref[ky * 3 + kx],
                                    preferred_element_type=jnp.float32)

        t2_ref[...] = acc.astype(t2_ref.dtype)                 # bf16 intermediate
        s2_ref[...] = _stats_block(acc)                        # stats from f32 acc

    return kernel


def _stage3_kernel(t2_ref, sc2_ref, sh2_ref, w3_ref, t3_ref, s3_ref):
    """bn2 + relu + conv3 (1x1) + BN3 partial stats."""
    y2 = jnp.maximum(
        t2_ref[...].astype(jnp.float32) * sc2_ref[...] + sh2_ref[...], 0.0)
    t3 = jnp.dot(y2.astype(jnp.bfloat16), w3_ref[...],
                 preferred_element_type=jnp.float32)
    t3_ref[...] = t3.astype(t3_ref.dtype)                      # bf16 intermediate
    s3_ref[...] = _stats_block(t3)


def _stage4_kernel(t3_ref, x_ref, w0_ref, sc3_ref, sh3_ref, sc0_ref, sh0_ref,
                   out_ref):
    """Recompute skip 1x1 conv, bn3 + bn0 + residual add + ReLU."""
    cout = out_ref.shape[1]
    t0 = jnp.dot(x_ref[...].astype(jnp.bfloat16), w0_ref[...],
                 preferred_element_type=jnp.float32)
    skip = t0 * sc0_ref[...] + sh0_ref[...]
    main = t3_ref[...][:, :cout].astype(jnp.float32) * sc3_ref[...] + sh3_ref[...]
    out_ref[...] = jnp.maximum(main + skip, 0.0)


# ---------------------------------------------------------------------------
# Wrapper helpers
# ---------------------------------------------------------------------------
def _pad2(a, rows, cols):
    return jnp.pad(a, ((0, rows - a.shape[0]), (0, cols - a.shape[1])))


def _pad1(v, n):
    return jnp.pad(v, (0, n - v.shape[0]))


def _unpack_stats(raw):
    """(T*8, C) raw stats -> per-tile (T, C) sums and sums-of-squares."""
    st = raw.reshape(-1, 8, raw.shape[-1])
    return st[:, 0, :], st[:, 1, :]


def _finalize_bn(sum_t, sq_t, count, gamma_p, beta_p):
    """Fold training-mode BN (biased var) into per-channel scale/shift.

    Chan-style merge of per-tile statistics: each tile's centered sum of
    squares is formed locally (bounded cancellation), then combined, which is
    numerically better than a single global E[x^2]-E[x]^2 at large M.
    """
    tiles = sum_t.shape[0]
    n_t = count / tiles
    mean_t = sum_t / n_t
    m2_t = sq_t - n_t * mean_t * mean_t
    mean = jnp.sum(sum_t, axis=0) / count
    m2 = (jnp.sum(m2_t, axis=0)
          + n_t * jnp.sum(jnp.square(mean_t - mean[None, :]), axis=0))
    var = jnp.maximum(m2 / count, 0.0)
    scale = gamma_p * jax.lax.rsqrt(var + EPS)
    shift = beta_p - mean * scale
    return scale.reshape(1, -1), shift.reshape(1, -1)


# ---------------------------------------------------------------------------
# Block forward
# ---------------------------------------------------------------------------
def bottleneck_block(x_nchw, p, row_tile=None):
    """x_nchw: (N, Cin, H, W) f32. Returns (N, Cout, H, W) f32."""
    N, Cin, H, W = x_nchw.shape
    Cout = p["w3"].shape[0]
    Cmid = p["w1"].shape[0]
    M = N * H * W
    HW = H * W
    Cp = LANE
    f32, bf16 = jnp.float32, jnp.bfloat16

    if row_tile is None:
        # >= 512 to amortize per-step overhead; capped at 1024 (v7x-friendly).
        row_tile = next(t for t in (1024, 512, 256, 128, 64, 32, 16, 8)
                        if M % t == 0)
    assert M % row_tile == 0 and row_tile % 8 == 0
    assert W % 8 == 0, "W must be a multiple of 8 (free (H,W,C)->(HW,C) relayout)"
    assert max(Cin, Cmid, Cout) <= Cp
    T = M // row_tile

    # ---- channels-last rows with the TRUE channel count (no 128-lane pad) ---
    x2d = jnp.transpose(x_nchw, (0, 2, 3, 1)).reshape(M, Cin).astype(f32)

    # fused stage-1 weight: [skip conv0 | conv1] -> one N = 2*LANE MXU pass
    w01 = jnp.zeros((Cin, 2 * Cp), f32)
    w01 = w01.at[:, :Cout].set(p["w0"][:, :, 0, 0].T)
    w01 = w01.at[:, Cp:Cp + Cmid].set(p["w1"][:, :, 0, 0].T)
    w01 = w01.astype(bf16)

    w2taps = jnp.zeros((9, Cp, Cp), f32)                       # 3x3 -> 9 taps
    for ky in range(3):
        for kx in range(3):
            w2taps = w2taps.at[ky * 3 + kx, :Cmid, :Cmid].set(
                p["w2"][:, :, ky, kx].T)
    w2taps = w2taps.astype(bf16)

    w3p = _pad2(p["w3"][:, :, 0, 0].T, Cp, Cp).astype(bf16)    # Cmid -> Cout
    w0s = p["w0"][:, :, 0, 0].T.astype(bf16)                   # (Cin, Cout) skip

    g0, be0 = _pad1(p["g0"], Cp), _pad1(p["be0"], Cp)
    g1, be1 = _pad1(p["g1"], Cp), _pad1(p["be1"], Cp)
    g2, be2 = _pad1(p["g2"], Cp), _pad1(p["be2"], Cp)
    g3, be3 = _pad1(p["g3"], Cp), _pad1(p["be3"], Cp)

    row_in = pl.BlockSpec((row_tile, Cin), lambda i: (i, 0))
    row_cp = pl.BlockSpec((row_tile, Cp), lambda i: (i, 0))
    stat8 = pl.BlockSpec((8, Cp), lambda i: (i, 0))
    stat8x2 = pl.BlockSpec((8, 2 * Cp), lambda i: (i, 0))
    vec_cp = pl.BlockSpec((1, Cp), lambda i: (0, 0))
    par = pltpu.CompilerParams(dimension_semantics=("parallel",))

    # ---- sweep 1: fused [skip | conv1] 1x1 matmul + BN0/BN1 partial stats ----
    t1, s01 = pl.pallas_call(
        _stage1_kernel,
        out_shape=(jax.ShapeDtypeStruct((M, Cp), bf16),
                   jax.ShapeDtypeStruct((T * 8, 2 * Cp), f32)),
        grid=(T,),
        in_specs=[row_in, pl.BlockSpec((Cin, 2 * Cp), lambda i: (0, 0))],
        out_specs=(row_cp, stat8x2),
        compiler_params=par,
    )(x2d, w01)

    sum01, sq01 = _unpack_stats(s01)
    scale0, shift0 = _finalize_bn(sum01[:, :Cp], sq01[:, :Cp], float(M), g0, be0)
    scale1, shift1 = _finalize_bn(sum01[:, Cp:], sq01[:, Cp:], float(M), g1, be1)

    # ---- sweep 2: bn1+relu, 3x3 conv via accumulated taps (no im2col) --------
    k2 = _make_stage2_kernel(H, W, Cp)
    img_cp = pl.BlockSpec((HW, Cp), lambda n: (n, 0))
    t2, s2raw = pl.pallas_call(
        k2,
        out_shape=(jax.ShapeDtypeStruct((M, Cp), bf16),
                   jax.ShapeDtypeStruct((N * 8, Cp), f32)),
        grid=(N,),
        in_specs=[img_cp, vec_cp, vec_cp,
                  pl.BlockSpec((9, Cp, Cp), lambda n: (0, 0, 0))],
        out_specs=(img_cp, pl.BlockSpec((8, Cp), lambda n: (n, 0))),
        scratch_shapes=[pltpu.VMEM((H + 2, W + 2 * HALO, Cp), bf16)],
        compiler_params=par,
    )(t1, scale1, shift1, w2taps)

    sum2, sq2 = _unpack_stats(s2raw)
    scale2, shift2 = _finalize_bn(sum2, sq2, float(M), g2, be2)

    # ---- sweep 3: bn2+relu, conv3 (1x1) + BN3 partial stats ------------------
    t3, s3raw = pl.pallas_call(
        _stage3_kernel,
        out_shape=(jax.ShapeDtypeStruct((M, Cp), bf16),
                   jax.ShapeDtypeStruct((T * 8, Cp), f32)),
        grid=(T,),
        in_specs=[row_cp, vec_cp, vec_cp, pl.BlockSpec((Cp, Cp), lambda i: (0, 0))],
        out_specs=(row_cp, stat8),
        compiler_params=par,
    )(t2, scale2, shift2, w3p)

    sum3, sq3 = _unpack_stats(s3raw)
    scale3, shift3 = _finalize_bn(sum3, sq3, float(M), g3, be3)

    # ---- sweep 4: recompute skip conv, bn3 + bn0 + add + relu ----------------
    vec_co = pl.BlockSpec((1, Cout), lambda i: (0, 0))
    out2d = pl.pallas_call(
        _stage4_kernel,
        out_shape=jax.ShapeDtypeStruct((M, Cout), f32),
        grid=(T,),
        in_specs=[row_cp, row_in, pl.BlockSpec((Cin, Cout), lambda i: (0, 0)),
                  vec_co, vec_co, vec_co, vec_co],
        out_specs=pl.BlockSpec((row_tile, Cout), lambda i: (i, 0)),
        compiler_params=par,
    )(t3, x2d, w0s,
      scale3[:, :Cout], shift3[:, :Cout], scale0[:, :Cout], shift0[:, :Cout])

    out = out2d.reshape(N, H, W, Cout)
    return jnp.transpose(out, (0, 3, 1, 2))


# ---------------------------------------------------------------------------
# Pure-JAX reference (faithful to the PyTorch module, training-mode BN)
# ---------------------------------------------------------------------------
def reference_forward(x, p):
    dn = ("NCHW", "OIHW", "NCHW")

    def conv(x, w, b, pad=0):
        y = jax.lax.conv_general_dilated(
            x, w, (1, 1), [(pad, pad), (pad, pad)], dimension_numbers=dn,
            precision=jax.lax.Precision.HIGHEST)
        return y + b.reshape(1, -1, 1, 1)

    def bn(y, g, b):
        mean = y.mean(axis=(0, 2, 3), keepdims=True)
        var = jnp.square(y - mean).mean(axis=(0, 2, 3), keepdims=True)
        return ((y - mean) / jnp.sqrt(var + EPS)
                * g.reshape(1, -1, 1, 1) + b.reshape(1, -1, 1, 1))

    sc = bn(conv(x, p["w0"], p["b0"]), p["g0"], p["be0"])
    y = jax.nn.relu(bn(conv(x, p["w1"], p["b1"]), p["g1"], p["be1"]))
    y = jax.nn.relu(bn(conv(y, p["w2"], p["b2"], pad=1), p["g2"], p["be2"]))
    y = bn(conv(y, p["w3"], p["b3"]), p["g3"], p["be3"])
    return jax.nn.relu(y + sc)


def init_params(key, in_channels, out_channels):
    # downsampling=False, in_channels != 64 -> bottleneck = 4
    cmid = in_channels // 4
    keys = jax.random.split(key, 8)

    def w(k, shape):
        fan_in = shape[1] * shape[2] * shape[3]
        return jax.random.normal(k, shape, jnp.float32) / jnp.sqrt(fan_in)

    return {
        "w0": w(keys[0], (out_channels, in_channels, 1, 1)),
        "b0": 0.01 * jax.random.normal(keys[1], (out_channels,), jnp.float32),
        "g0": jnp.ones((out_channels,), jnp.float32),
        "be0": jnp.zeros((out_channels,), jnp.float32),
        "w1": w(keys[2], (cmid, in_channels, 1, 1)),
        "b1": 0.01 * jax.random.normal(keys[3], (cmid,), jnp.float32),
        "g1": jnp.full((cmid,), 1.1, jnp.float32),
        "be1": jnp.full((cmid,), 0.05, jnp.float32),
        "w2": w(keys[4], (cmid, cmid, 3, 3)),
        "b2": 0.01 * jax.random.normal(keys[5], (cmid,), jnp.float32),
        "g2": jnp.full((cmid,), 0.9, jnp.float32),
        "be2": jnp.full((cmid,), -0.05, jnp.float32),
        "w3": w(keys[6], (out_channels, cmid, 1, 1)),
        "b3": 0.01 * jax.random.normal(keys[7], (out_channels,), jnp.float32),
        "g3": jnp.full((out_channels,), 1.05, jnp.float32),
        "be3": jnp.full((out_channels,), 0.02, jnp.float32),
    }


if __name__ == "__main__":
    key = jax.random.PRNGKey(0)
    kx, kp = jax.random.split(key)

    N, Cin, H, W = 2, 16, 16, 16
    Cout = 32

    x = jax.random.normal(kx, (N, Cin, H, W), jnp.float32)
    params = init_params(kp, Cin, Cout)

    # row_tile=128 -> the row-tiled sweeps run multi-step grids at toy size
    fwd = jax.jit(lambda xx: bottleneck_block(xx, params, row_tile=128))
    out = jax.block_until_ready(fwd(x))

    ref = jax.block_until_ready(reference_forward(x, params))
    # Accepted error budget: bf16 MXU inputs + bf16 inter-sweep intermediates
    # (stats in f32) vs an f32 Precision.HIGHEST reference.
    np.testing.assert_allclose(np.asarray(out), np.asarray(ref),
                               rtol=5e-2, atol=5e-2)

    print("KERNEL_OK")
</pallas_src>

<mosaic_0001>
module attributes {stable_mosaic.version = 11 : i64} {
  func.func @_stage1_kernel(%arg0: i32, %arg1: memref<128x16xf32, #tpu.memory_space<vmem>>, %arg2: memref<16x256xbf16, #tpu.memory_space<vmem>>, %arg3: memref<128x128xbf16, #tpu.memory_space<vmem>>, %arg4: memref<8x256xf32, #tpu.memory_space<vmem>>) attributes {dimension_semantics = [#tpu.dimension_semantics<parallel>], iteration_bounds = array<i64: 4>, scalar_prefetch = 0 : i64, scratch_operands = 0 : i64, tpu.core_type = #tpu.core_type<tc>, window_params = [{transform_indices = @transform_0, window_bounds = array<i64: 128, 16>}, {pipeline_mode = #tpu.pipeline_mode<synchronous>, transform_indices = @transform_1, window_bounds = array<i64: 16, 256>}, {transform_indices = @transform_2, window_bounds = array<i64: 128, 128>}, {transform_indices = @transform_3, window_bounds = array<i64: 8, 256>}]} {
    %c0 = arith.constant 0 : index
    %c0_0 = arith.constant 0 : index
    %0 = vector.load %arg1[%c0, %c0_0] : memref<128x16xf32, #tpu.memory_space<vmem>>, vector<128x16xf32>
    %1 = arith.truncf %0 : vector<128x16xf32> to vector<128x16xbf16>
    %c0_1 = arith.constant 0 : index
    %c0_2 = arith.constant 0 : index
    %2 = vector.load %arg2[%c0_1, %c0_2] : memref<16x256xbf16, #tpu.memory_space<vmem>>, vector<16x256xbf16>
    %cst = arith.constant dense<0.000000e+00> : vector<128x256xf32>
    %3 = tpu.matmul %1, %2, %cst {dimension_numbers = #tpu.dot_dimension_numbers<[1], [0], [0], [1], [0, 0, 1, 1], [], []>} : vector<128x16xbf16>, vector<16x256xbf16>, vector<128x256xf32> -> vector<128x256xf32>
    %4 = vector.extract_strided_slice %3 {offsets = [0, 128], sizes = [128, 128], strides = [1, 1]} : vector<128x256xf32> to vector<128x128xf32>
    %5 = arith.truncf %4 : vector<128x128xf32> to vector<128x128xbf16>
    %c0_3 = arith.constant 0 : index
    %c0_4 = arith.constant 0 : index
    %6 = vector.load %arg3[%c0_3, %c0_4] : memref<128x128xbf16, #tpu.memory_space<vmem>>, vector<128x128xbf16>
    tpu.vector_store %arg3[%c0_3, %c0_4], %5 {strides = array<i32>} : memref<128x128xbf16, #tpu.memory_space<vmem>>, vector<128x128xbf16>,
    %cst_5 = arith.constant dense<0.000000e+00> : vector<256xf32>
    %7 = vector.multi_reduction <add>, %3, %cst_5 [0] : vector<128x256xf32> to vector<256xf32>
    %8 = vector.shape_cast %7 : vector<256xf32> to vector<1x256xf32>
    %9 = arith.mulf %3, %3 : vector<128x256xf32>
    %cst_6 = arith.constant dense<0.000000e+00> : vector<256xf32>
    %10 = vector.multi_reduction <add>, %9, %cst_6 [0] : vector<128x256xf32> to vector<256xf32>
    %11 = vector.shape_cast %10 : vector<256xf32> to vector<1x256xf32>
    %12 = tpu.iota {dimensions = array<i32: 0>} : vector<8x256xi32>
    %c0_i32 = arith.constant 0 : i32
    %13 = vector.broadcast %c0_i32 : i32 to vector<8x256xi32>
    %14 = arith.cmpi eq, %12, %13 : vector<8x256xi32>
    %c1_i32 = arith.constant 1 : i32
    %15 = vector.broadcast %c1_i32 : i32 to vector<8x256xi32>
    %16 = arith.cmpi eq, %12, %15 : vector<8x256xi32>
    %cst_7 = arith.constant 0.000000e+00 : f32
    %17 = vector.shape_cast %11 : vector<1x256xf32> to vector<1x256xf32>
    %18 = vector.broadcast %17 : vector<1x256xf32> to vector<8x256xf32>
    %19 = vector.broadcast %cst_7 : f32 to vector<8x256xf32>
    %20 = arith.select %16, %18, %19 : vector<8x256xi1>, vector<8x256xf32>
    %21 = vector.shape_cast %8 : vector<1x256xf32> to vector<1x256xf32>
    %22 = vector.broadcast %21 : vector<1x256xf32> to vector<8x256xf32>
    %23 = arith.select %14, %22, %20 : vector<8x256xi1>, vector<8x256xf32>
    %c0_8 = arith.constant 0 : index
    %c0_9 = arith.constant 0 : index
    %24 = vector.load %arg4[%c0_8, %c0_9] : memref<8x256xf32, #tpu.memory_space<vmem>>, vector<8x256xf32>
    tpu.vector_store %arg4[%c0_8, %c0_9], %23 {strides = array<i32>} : memref<8x256xf32, #tpu.memory_space<vmem>>, vector<8x256xf32>,
    return
  }
  func.func @transform_0(%arg0: i32) -> (i32, i32) {
    %c0_i32 = arith.constant 0 : i32
    %c0_i32_0 = arith.constant 0 : i32
    return %arg0, %c0_i32 : i32, i32
  }
  func.func @transform_1(%arg0: i32) -> (i32, i32) {
    %c0_i32 = arith.constant 0 : i32
    %c0_i32_0 = arith.constant 0 : i32
    %c0_i32_1 = arith.constant 0 : i32
    return %c0_i32, %c0_i32_0 : i32, i32
  }
  func.func @transform_2(%arg0: i32) -> (i32, i32) {
    %c0_i32 = arith.constant 0 : i32
    %c0_i32_0 = arith.constant 0 : i32
    return %arg0, %c0_i32 : i32, i32
  }
  func.func @transform_3(%arg0: i32) -> (i32, i32) {
    %c0_i32 = arith.constant 0 : i32
    %c0_i32_0 = arith.constant 0 : i32
    return %arg0, %c0_i32 : i32, i32
  }
}

module attributes {stable_mosaic.version = 11 : i64} {
  func.func @kernel(%arg0: i32, %arg1: memref<256x128xbf16, #tpu.memory_space<vmem>>, %arg2: memref<1x128xf32, #tpu.memory_space<vmem>>, %arg3: memref<1x128xf32, #tpu.memory_space<vmem>>, %arg4: memref<9x128x128xbf16, #tpu.memory_space<vmem>>, %arg5: memref<256x128xbf16, #tpu.memory_space<vmem>>, %arg6: memref<8x128xf32, #tpu.memory_space<vmem>>, %arg7: memref<18x32x128xbf16, #tpu.memory_space<vmem>>) attributes {dimension_semantics = [#tpu.dimension_semantics<parallel>], iteration_bounds = array<i64: 2>, scalar_prefetch = 0 : i64, scratch_operands = 1 : i64, tpu.core_type = #tpu.core_type<tc>, window_params = [{transform_indices = @transform_0, window_bounds = array<i64: 256, 128>}, {pipeline_mode = #tpu.pipeline_mode<synchronous>, transform_indices = @transform_1, window_bounds = array<i64: 1, 128>}, {pipeline_mode = #tpu.pipeline_mode<synchronous>, transform_indices = @transform_2, window_bounds = array<i64: 1, 128>}, {pipeline_mode = #tpu.pipeline_mode<synchronous>, transform_indices = @transform_3, window_bounds = array<i64: 9, 128, 128>}, {transform_indices = @transform_4, window_bounds = array<i64: 256, 128>}, {transform_indices = @transform_5, window_bounds = array<i64: 8, 128>}]} {
    %c0 = arith.constant 0 : index
    %c0_0 = arith.constant 0 : index
    %0 = vector.load %arg1[%c0, %c0_0] : memref<256x128xbf16, #tpu.memory_space<vmem>>, vector<256x128xbf16>
    %1 = arith.extf %0 : vector<256x128xbf16> to vector<256x128xf32>
    %c0_1 = arith.constant 0 : index
    %c0_2 = arith.constant 0 : index
    %2 = vector.load %arg2[%c0_1, %c0_2] : memref<1x128xf32, #tpu.memory_space<vmem>>, vector<1x128xf32>
    %3 = vector.broadcast %2 : vector<1x128xf32> to vector<256x128xf32>
    %4 = arith.mulf %1, %3 : vector<256x128xf32>
    %c0_3 = arith.constant 0 : index
    %c0_4 = arith.constant 0 : index
    %5 = vector.load %arg3[%c0_3, %c0_4] : memref<1x128xf32, #tpu.memory_space<vmem>>, vector<1x128xf32>
    %6 = vector.broadcast %5 : vector<1x128xf32> to vector<256x128xf32>
    %7 = arith.addf %4, %6 : vector<256x128xf32>
    %cst = arith.constant 0.000000e+00 : f32
    %8 = vector.broadcast %cst : f32 to vector<256x128xf32>
    %9 = arith.maximumf %7, %8 : vector<256x128xf32>
    %10 = vector.shape_cast %9 : vector<256x128xf32> to vector<16x16x128xf32>
    %11 = arith.truncf %10 : vector<16x16x128xf32> to vector<16x16x128xbf16>
    %c1 = arith.constant 1 : index
    %c8 = arith.constant 8 : index
    %c0_5 = arith.constant 0 : index
    %12 = vector.load %arg7[%c1, %c8, %c0_5] : memref<18x32x128xbf16, #tpu.memory_space<vmem>>, vector<16x16x128xbf16>
    tpu.vector_store %arg7[%c1, %c8, %c0_5], %11 {strides = array<i32>} : memref<18x32x128xbf16, #tpu.memory_space<vmem>>, vector<16x16x128xbf16>,
    %cst_6 = arith.constant 0.000000e+00 : bf16
    %13 = vector.broadcast %cst_6 : bf16 to vector<1x32x128xbf16>
    %cst_7 = arith.constant 0.000000e+00 : bf16
    %14 = vector.broadcast %cst_7 : bf16 to vector<16x1x128xbf16>
    %c0_8 = arith.constant 0 : index
    %c0_9 = arith.constant 0 : index
    %c0_10 = arith.constant 0 : index
    %15 = vector.load %arg7[%c0_8, %c0_9, %c0_10] : memref<18x32x128xbf16, #tpu.memory_space<vmem>>, vector<1x32x128xbf16>
    tpu.vector_store %arg7[%c0_8, %c0_9, %c0_10], %13 {strides = array<i32>} : memref<18x32x128xbf16, #tpu.memory_space<vmem>>, vector<1x32x128xbf16>,
    %c17 = arith.constant 17 : index
    %c0_11 = arith.constant 0 : index
    %c0_12 = arith.constant 0 : index
    %16 = vector.load %arg7[%c17, %c0_11, %c0_12] : memref<18x32x128xbf16, #tpu.memory_space<vmem>>, vector<1x32x128xbf16>
    tpu.vector_store %arg7[%c17, %c0_11, %c0_12], %13 {strides = array<i32>} : memref<18x32x128xbf16, #tpu.memory_space<vmem>>, vector<1x32x128xbf16>,
    %c1_13 = arith.constant 1 : index
    %c7 = arith.constant 7 : index
    %c0_14 = arith.constant 0 : index
    %17 = vector.load %arg7[%c1_13, %c7, %c0_14] : memref<18x32x128xbf16, #tpu.memory_space<vmem>>, vector<16x1x128xbf16>
    tpu.vector_store %arg7[%c1_13, %c7, %c0_14], %14 {strides = array<i32>} : memref<18x32x128xbf16, #tpu.memory_space<vmem>>, vector<16x1x128xbf16>,
    %c1_15 = arith.constant 1 : index
    %c24 = arith.constant 24 : index
    %c0_16 = arith.constant 0 : index
    %18 = vector.load %arg7[%c1_15, %c24, %c0_16] : memref<18x32x128xbf16, #tpu.memory_space<vmem>>, vector<16x1x128xbf16>
    tpu.vector_store %arg7[%c1_15, %c24, %c0_16], %14 {strides = array<i32>} : memref<18x32x128xbf16, #tpu.memory_space<vmem>>, vector<16x1x128xbf16>,
    %cst_17 = arith.constant 0.000000e+00 : f32
    %19 = vector.broadcast %cst_17 : f32 to vector<256x128xf32>
    %c0_18 = arith.constant 0 : index
    %c7_19 = arith.constant 7 : index
    %c0_20 = arith.constant 0 : index
    %20 = vector.load %arg7[%c0_18, %c7_19, %c0_20] : memref<18x32x128xbf16, #tpu.memory_space<vmem>>, vector<16x16x128xbf16>
    %21 = vector.shape_cast %20 : vector<16x16x128xbf16> to vector<256x128xbf16>
    %c0_21 = arith.constant 0 : index
    %c0_22 = arith.constant 0 : index
    %c0_23 = arith.constant 0 : index
    %22 = vector.load %arg4[%c0_21, %c0_22, %c0_23] : memref<9x128x128xbf16, #tpu.memory_space<vmem>>, vector<1x128x128xbf16>
    %23 = vector.shape_cast %22 : vector<1x128x128xbf16> to vector<128x128xbf16>
    %cst_24 = arith.constant dense<0.000000e+00> : vector<256x128xf32>
    %24 = tpu.matmul %21, %23, %cst_24 {dimension_numbers = #tpu.dot_dimension_numbers<[1], [0], [0], [1], [0, 0, 1, 1], [], []>} : vector<256x128xbf16>, vector<128x128xbf16>, vector<256x128xf32> -> vector<256x128xf32>
    %25 = arith.addf %19, %24 : vector<256x128xf32>
    %c0_25 = arith.constant 0 : index
    %c8_26 = arith.constant 8 : index
    %c0_27 = arith.constant 0 : index
    %26 = vector.load %arg7[%c0_25, %c8_26, %c0_27] : memref<18x32x128xbf16, #tpu.memory_space<vmem>>, vector<16x16x128xbf16>
    %27 = vector.shape_cast %26 : vector<16x16x128xbf16> to vector<256x128xbf16>
    %c1_28 = arith.constant 1 : index
    %c0_29 = arith.constant 0 : index
    %c0_30 = arith.constant 0 : index
    %28 = vector.load %arg4[%c1_28, %c0_29, %c0_30] : memref<9x128x128xbf16, #tpu.memory_space<vmem>>, vector<1x128x128xbf16>
    %29 = vector.shape_cast %28 : vector<1x128x128xbf16> to vector<128x128xbf16>
    %cst_31 = arith.constant dense<0.000000e+00> : vector<256x128xf32>
    %30 = tpu.matmul %27, %29, %cst_31 {dimension_numbers = #tpu.dot_dimension_numbers<[1], [0], [0], [1], [0, 0, 1, 1], [], []>} : vector<256x128xbf16>, vector<128x128xbf16>, vector<256x128xf32> -> vector<256x128xf32>
    %31 = arith.addf %25, %30 : vector<256x128xf32>
    %c0_32 = arith.constant 0 : index
    %c9 = arith.constant 9 : index
    %c0_33 = arith.constant 0 : index
    %32 = vector.load %arg7[%c0_32, %c9, %c0_33] : memref<18x32x128xbf16, #tpu.memory_space<vmem>>, vector<16x16x128xbf16>
    %33 = vector.shape_cast %32 : vector<16x16x128xbf16> to vector<256x128xbf16>
    %c2 = arith.constant 2 : index
    %c0_34 = arith.constant 0 : index
    %c0_35 = arith.constant 0 : index
    %34 = vector.load %arg4[%c2, %c0_34, %c0_35] : memref<9x128x128xbf16, #tpu.memory_space<vmem>>, vector<1x128x128xbf16>
    %35 = vector.shape_cast %34 : vector<1x128x128xbf16> to vector<128x128xbf16>
    %cst_36 = arith.constant dense<0.000000e+00> : vector<256x128xf32>
    %36 = tpu.matmul %33, %35, %cst_36 {dimension_numbers = #tpu.dot_dimension_numbers<[1], [0], [0], [1], [0, 0, 1, 1], [], []>} : vector<256x128xbf16>, vector<128x128xbf16>, vector<256x128xf32> -> vector<256x128xf32>
    %37 = arith.addf %31, %36 : vector<256x128xf32>
    %c1_37 = arith.constant 1 : index
    %c7_38 = arith.constant 7 : index
    %c0_39 = arith.constant 0 : index
    %38 = vector.load %arg7[%c1_37, %c7_38, %c0_39] : memref<18x32x128xbf16, #tpu.memory_space<vmem>>, vector<16x16x128xbf16>
    %39 = vector.shape_cast %38 : vector<16x16x128xbf16> to vector<256x128xbf16>
    %c3 = arith.constant 3 : index
    %c0_40 = arith.constant 0 : index
    %c0_41 = arith.constant 0 : index
    %40 = vector.load %arg4[%c3, %c0_40, %c0_41] : memref<9x128x128xbf16, #tpu.memory_space<vmem>>, vector<1x128x128xbf16>
    %41 = vector.shape_cast %40 : vector<1x128x128xbf16> to vector<128x128xbf16>
    %cst_42 = arith.constant dense<0.000000e+00> : vector<256x128xf32>
    %42 = tpu.matmul %39, %41, %cst_42 {dimension_numbers = #tpu.dot_dimension_numbers<[1], [0], [0], [1], [0, 0, 1, 1], [], []>} : vector<256x128xbf16>, vector<128x128xbf16>, vector<256x128xf32> -> vector<256x128xf32>
    %43 = arith.addf %37, %42 : vector<256x128xf32>
    %c1_43 = arith.constant 1 : index
    %c8_44 = arith.constant 8 : index
    %c0_45 = arith.constant 0 : index
    %44 = vector.load %arg7[%c1_43, %c8_44, %c0_45] : memref<18x32x128xbf16, #tpu.memory_space<vmem>>, vector<16x16x128xbf16>
    %45 = vector.shape_cast %44 : vector<16x16x128xbf16> to vector<256x128xbf16>
    %c4 = arith.constant 4 : index
    %c0_46 = arith.constant 0 : index
    %c0_47 = arith.constant 0 : index
    %46 = vector.load %arg4[%c4, %c0_46, %c0_47] : memref<9x128x128xbf16, #tpu.memory_space<vmem>>, vector<1x128x128xbf16>
    %47 = vector.shape_cast %46 : vector<1x128x128xbf16> to vector<128x128xbf16>
    %cst_48 = arith.constant dense<0.000000e+00> : vector<256x128xf32>
    %48 = tpu.matmul %45, %47, %cst_48 {dimension_numbers = #tpu.dot_dimension_numbers<[1], [0], [0], [1], [0, 0, 1, 1], [], []>} : vector<256x128xbf16>, vector<128x128xbf16>, vector<256x128xf32> -> vector<256x128xf32>
    %49 = arith.addf %43, %48 : vector<256x128xf32>
    %c1_49 = arith.constant 1 : index
    %c9_50 = arith.constant 9 : index
    %c0_51 = arith.constant 0 : index
    %50 = vector.load %arg7[%c1_49, %c9_50, %c0_51] : memref<18x32x128xbf16, #tpu.memory_space<vmem>>, vector<16x16x128xbf16>
    %51 = vector.shape_cast %50 : vector<16x16x128xbf16> to vector<256x128xbf16>
    %c5 = arith.constant 5 : index
    %c0_52 = arith.constant 0 : index
    %c0_53 = arith.constant 0 : index
    %52 = vector.load %arg4[%c5, %c0_52, %c0_53] : memref<9x128x128xbf16, #tpu.memory_space<vmem>>, vector<1x128x128xbf16>
    %53 = vector.shape_cast %52 : vector<1x128x128xbf16> to vector<128x128xbf16>
    %cst_54 = arith.constant dense<0.000000e+00> : vector<256x128xf32>
    %54 = tpu.matmul %51, %53, %cst_54 {dimension_numbers = #tpu.dot_dimension_numbers<[1], [0], [0], [1], [0, 0, 1, 1], [], []>} : vector<256x128xbf16>, vector<128x128xbf16>, vector<256x128xf32> -> vector<256x128xf32>
    %55 = arith.addf %49, %54 : vector<256x128xf32>
    %c2_55 = arith.constant 2 : index
    %c7_56 = arith.constant 7 : index
    %c0_57 = arith.constant 0 : index
    %56 = vector.load %arg7[%c2_55, %c7_56, %c0_57] : memref<18x32x128xbf16, #tpu.memory_space<vmem>>, vector<16x16x128xbf16>
    %57 = vector.shape_cast %56 : vector<16x16x128xbf16> to vector<256x128xbf16>
    %c6 = arith.constant 6 : index
    %c0_58 = arith.constant 0 : index
    %c0_59 = arith.constant 0 : index
    %58 = vector.load %arg4[%c6, %c0_58, %c0_59] : memref<9x128x128xbf16, #tpu.memory_space<vmem>>, vector<1x128x128xbf16>
    %59 = vector.shape_cast %58 : vector<1x128x128xbf16> to vector<128x128xbf16>
    %cst_60 = arith.constant dense<0.000000e+00> : vector<256x128xf32>
    %60 = tpu.matmul %57, %59, %cst_60 {dimension_numbers = #tpu.dot_dimension_numbers<[1], [0], [0], [1], [0, 0, 1, 1], [], []>} : vector<256x128xbf16>, vector<128x128xbf16>, vector<256x128xf32> -> vector<256x128xf32>
    %61 = arith.addf %55, %60 : vector<256x128xf32>
    %c2_61 = arith.constant 2 : index
    %c8_62 = arith.constant 8 : index
    %c0_63 = arith.constant 0 : index
    %62 = vector.load %arg7[%c2_61, %c8_62, %c0_63] : memref<18x32x128xbf16, #tpu.memory_space<vmem>>, vector<16x16x128xbf16>
    %63 = vector.shape_cast %62 : vector<16x16x128xbf16> to vector<256x128xbf16>
    %c7_64 = arith.constant 7 : index
    %c0_65 = arith.constant 0 : index
    %c0_66 = arith.constant 0 : index
    %64 = vector.load %arg4[%c7_64, %c0_65, %c0_66] : memref<9x128x128xbf16, #tpu.memory_space<vmem>>, vector<1x128x128xbf16>
    %65 = vector.shape_cast %64 : vector<1x128x128xbf16> to vector<128x128xbf16>
    %cst_67 = arith.constant dense<0.000000e+00> : vector<256x128xf32>
    %66 = tpu.matmul %63, %65, %cst_67 {dimension_numbers = #tpu.dot_dimension_numbers<[1], [0], [0], [1], [0, 0, 1, 1], [], []>} : vector<256x128xbf16>, vector<128x128xbf16>, vector<256x128xf32> -> vector<256x128xf32>
    %67 = arith.addf %61, %66 : vector<256x128xf32>
    %c2_68 = arith.constant 2 : index
    %c9_69 = arith.constant 9 : index
    %c0_70 = arith.constant 0 : index
    %68 = vector.load %arg7[%c2_68, %c9_69, %c0_70] : memref<18x32x128xbf16, #tpu.memory_space<vmem>>, vector<16x16x128xbf16>
    %69 = vector.shape_cast %68 : vector<16x16x128xbf16> to vector<256x128xbf16>
    %c8_71 = arith.constant 8 : index
    %c0_72 = arith.constant 0 : index
    %c0_73 = arith.constant 0 : index
    %70 = vector.load %arg4[%c8_71, %c0_72, %c0_73] : memref<9x128x128xbf16, #tpu.memory_space<vmem>>, vector<1x128x128xbf16>
    %71 = vector.shape_cast %70 : vector<1x128x128xbf16> to vector<128x128xbf16>
    %cst_74 = arith.constant dense<0.000000e+00> : vector<256x128xf32>
    %72 = tpu.matmul %69, %71, %cst_74 {dimension_numbers = #tpu.dot_dimension_numbers<[1], [0], [0], [1], [0, 0, 1, 1], [], []>} : vector<256x128xbf16>, vector<128x128xbf16>, vector<256x128xf32> -> vector<256x128xf32>
    %73 = arith.addf %67, %72 : vector<256x128xf32>
    %74 = arith.truncf %73 : vector<256x128xf32> to vector<256x128xbf16>
    %c0_75 = arith.constant 0 : index
    %c0_76 = arith.constant 0 : index
    %75 = vector.load %arg5[%c0_75, %c0_76] : memref<256x128xbf16, #tpu.memory_space<vmem>>, vector<256x128xbf16>
    tpu.vector_store %arg5[%c0_75, %c0_76], %74 {strides = array<i32>} : memref<256x128xbf16, #tpu.memory_space<vmem>>, vector<256x128xbf16>,
    %cst_77 = arith.constant dense<0.000000e+00> : vector<128xf32>
    %76 = vector.multi_reduction <add>, %73, %cst_77 [0] : vector<256x128xf32> to vector<128xf32>
    %77 = vector.shape_cast %76 : vector<128xf32> to vector<1x128xf32>
    %78 = arith.mulf %73, %73 : vector<256x128xf32>
    %cst_78 = arith.constant dense<0.000000e+00> : vector<128xf32>
    %79 = vector.multi_reduction <add>, %78, %cst_78 [0] : vector<256x128xf32> to vector<128xf32>
    %80 = vector.shape_cast %79 : vector<128xf32> to vector<1x128xf32>
    %81 = tpu.iota {dimensions = array<i32: 0>} : vector<8x128xi32>
    %c0_i32 = arith.constant 0 : i32
    %82 = vector.broadcast %c0_i32 : i32 to vector<8x128xi32>
    %83 = arith.cmpi eq, %81, %82 : vector<8x128xi32>
    %c1_i32 = arith.constant 1 : i32
    %84 = vector.broadcast %c1_i32 : i32 to vector<8x128xi32>
    %85 = arith.cmpi eq, %81, %84 : vector<8x128xi32>
    %cst_79 = arith.constant 0.000000e+00 : f32
    %86 = vector.shape_cast %80 : vector<1x128xf32> to vector<1x128xf32>
    %87 = vector.broadcast %86 : vector<1x128xf32> to vector<8x128xf32>
    %88 = vector.broadcast %cst_79 : f32 to vector<8x128xf32>
    %89 = arith.select %85, %87, %88 : vector<8x128xi1>, vector<8x128xf32>
    %90 = vector.shape_cast %77 : vector<1x128xf32> to vector<1x128xf32>
    %91 = vector.broadcast %90 : vector<1x128xf32> to vector<8x128xf32>
    %92 = arith.select %83, %91, %89 : vector<8x128xi1>, vector<8x128xf32>
    %c0_80 = arith.constant 0 : index
    %c0_81 = arith.constant 0 : index
    %93 = vector.load %arg6[%c0_80, %c0_81] : memref<8x128xf32, #tpu.memory_space<vmem>>, vector<8x128xf32>
    tpu.vector_store %arg6[%c0_80, %c0_81], %92 {strides = array<i32>} : memref<8x128xf32, #tpu.memory_space<vmem>>, vector<8x128xf32>,
    return
  }
  func.func @transform_0(%arg0: i32) -> (i32, i32) {
    %c0_i32 = arith.constant 0 : i32
    %c0_i32_0 = arith.constant 0 : i32
    return %arg0, %c0_i32 : i32, i32
  }
  func.func @transform_1(%arg0: i32) -> (i32, i32) {
    %c0_i32 = arith.constant 0 : i32
    %c0_i32_0 = arith.constant 0 : i32
    %c0_i32_1 = arith.constant 0 : i32
    return %c0_i32, %c0_i32_0 : i32, i32
  }
  func.func @transform_2(%arg0: i32) -> (i32, i32) {
    %c0_i32 = arith.constant 0 : i32
    %c0_i32_0 = arith.constant 0 : i32
    %c0_i32_1 = arith.constant 0 : i32
    return %c0_i32, %c0_i32_0 : i32, i32
  }
  func.func @transform_3(%arg0: i32) -> (i32, i32, i32) {
    %c0_i32 = arith.constant 0 : i32
    %c0_i32_0 = arith.constant 0 : i32
    %c0_i32_1 = arith.constant 0 : i32
    %c0_i32_2 = arith.constant 0 : i32
    return %c0_i32, %c0_i32_0, %c0_i32_1 : i32, i32, i32
  }
  func.func @transform_4(%arg0: i32) -> (i32, i32) {
    %c0_i32 = arith.constant 0 : i32
    %c0_i32_0 = arith.constant 0 : i32
    return %arg0, %c0_i32 : i32, i32
  }
  func.func @transform_5(%arg0: i32) -> (i32, i32) {
    %c0_i32 = arith.constant 0 : i32
    %c0_i32_0 = arith.constant 0 : i32
    return %arg0, %c0_i32 : i32, i32
  }
}

module attributes {stable_mosaic.version = 11 : i64} {
  func.func @_stage4_kernel(%arg0: i32, %arg1: memref<128x128xbf16, #tpu.memory_space<vmem>>, %arg2: memref<128x16xf32, #tpu.memory_space<vmem>>, %arg3: memref<16x32xbf16, #tpu.memory_space<vmem>>, %arg4: memref<1x32xf32, #tpu.memory_space<vmem>>, %arg5: memref<1x32xf32, #tpu.memory_space<vmem>>, %arg6: memref<1x32xf32, #tpu.memory_space<vmem>>, %arg7: memref<1x32xf32, #tpu.memory_space<vmem>>, %arg8: memref<128x32xf32, #tpu.memory_space<vmem>>) attributes {dimension_semantics = [#tpu.dimension_semantics<parallel>], iteration_bounds = array<i64: 4>, scalar_prefetch = 0 : i64, scratch_operands = 0 : i64, tpu.core_type = #tpu.core_type<tc>, window_params = [{transform_indices = @transform_0, window_bounds = array<i64: 128, 128>}, {transform_indices = @transform_1, window_bounds = array<i64: 128, 16>}, {pipeline_mode = #tpu.pipeline_mode<synchronous>, transform_indices = @transform_2, window_bounds = array<i64: 16, 32>}, {pipeline_mode = #tpu.pipeline_mode<synchronous>, transform_indices = @transform_3, window_bounds = array<i64: 1, 32>}, {pipeline_mode = #tpu.pipeline_mode<synchronous>, transform_indices = @transform_4, window_bounds = array<i64: 1, 32>}, {pipeline_mode = #tpu.pipeline_mode<synchronous>, transform_indices = @transform_5, window_bounds = array<i64: 1, 32>}, {pipeline_mode = #tpu.pipeline_mode<synchronous>, transform_indices = @transform_6, window_bounds = array<i64: 1, 32>}, {transform_indices = @transform_7, window_bounds = array<i64: 128, 32>}]} {
    %c0 = arith.constant 0 : index
    %c0_0 = arith.constant 0 : index
    %0 = vector.load %arg2[%c0, %c0_0] : memref<128x16xf32, #tpu.memory_space<vmem>>, vector<128x16xf32>
    %1 = arith.truncf %0 : vector<128x16xf32> to vector<128x16xbf16>
    %c0_1 = arith.constant 0 : index
    %c0_2 = arith.constant 0 : index
    %2 = vector.load %arg3[%c0_1, %c0_2] : memref<16x32xbf16, #tpu.memory_space<vmem>>, vector<16x32xbf16>
    %cst = arith.constant dense<0.000000e+00> : vector<128x32xf32>
    %3 = tpu.matmul %1, %2, %cst {dimension_numbers = #tpu.dot_dimension_numbers<[1], [0], [0], [1], [0, 0, 1, 1], [], []>} : vector<128x16xbf16>, vector<16x32xbf16>, vector<128x32xf32> -> vector<128x32xf32>
    %c0_3 = arith.constant 0 : index
    %c0_4 = arith.constant 0 : index
    %4 = vector.load %arg6[%c0_3, %c0_4] : memref<1x32xf32, #tpu.memory_space<vmem>>, vector<1x32xf32>
    %5 = vector.broadcast %4 : vector<1x32xf32> to vector<128x32xf32>
    %6 = arith.mulf %3, %5 : vector<128x32xf32>
    %c0_5 = arith.constant 0 : index
    %c0_6 = arith.constant 0 : index
    %7 = vector.load %arg7[%c0_5, %c0_6] : memref<1x32xf32, #tpu.memory_space<vmem>>, vector<1x32xf32>
    %8 = vector.broadcast %7 : vector<1x32xf32> to vector<128x32xf32>
    %9 = arith.addf %6, %8 : vector<128x32xf32>
    %c0_7 = arith.constant 0 : index
    %c0_8 = arith.constant 0 : index
    %10 = vector.load %arg1[%c0_7, %c0_8] : memref<128x128xbf16, #tpu.memory_space<vmem>>, vector<128x128xbf16>
    %11 = vector.extract_strided_slice %10 {offsets = [0, 0], sizes = [128, 32], strides = [1, 1]} : vector<128x128xbf16> to vector<128x32xbf16>
    %12 = arith.extf %11 : vector<128x32xbf16> to vector<128x32xf32>
    %c0_9 = arith.constant 0 : index
    %c0_10 = arith.constant 0 : index
    %13 = vector.load %arg4[%c0_9, %c0_10] : memref<1x32xf32, #tpu.memory_space<vmem>>, vector<1x32xf32>
    %14 = vector.broadcast %13 : vector<1x32xf32> to vector<128x32xf32>
    %15 = arith.mulf %12, %14 : vector<128x32xf32>
    %c0_11 = arith.constant 0 : index
    %c0_12 = arith.constant 0 : index
    %16 = vector.load %arg5[%c0_11, %c0_12] : memref<1x32xf32, #tpu.memory_space<vmem>>, vector<1x32xf32>
    %17 = vector.broadcast %16 : vector<1x32xf32> to vector<128x32xf32>
    %18 = arith.addf %15, %17 : vector<128x32xf32>
    %19 = arith.addf %18, %9 : vector<128x32xf32>
    %cst_13 = arith.constant 0.000000e+00 : f32
    %20 = vector.broadcast %cst_13 : f32 to vector<128x32xf32>
    %21 = arith.maximumf %19, %20 : vector<128x32xf32>
    %c0_14 = arith.constant 0 : index
    %c0_15 = arith.constant 0 : index
    %22 = vector.load %arg8[%c0_14, %c0_15] : memref<128x32xf32, #tpu.memory_space<vmem>>, vector<128x32xf32>
    tpu.vector_store %arg8[%c0_14, %c0_15], %21 {strides = array<i32>} : memref<128x32xf32, #tpu.memory_space<vmem>>, vector<128x32xf32>,
    return
  }
  func.func @transform_0(%arg0: i32) -> (i32, i32) {
    %c0_i32 = arith.constant 0 : i32
    %c0_i32_0 = arith.constant 0 : i32
    return %arg0, %c0_i32 : i32, i32
  }
  func.func @transform_1(%arg0: i32) -> (i32, i32) {
    %c0_i32 = arith.constant 0 : i32
    %c0_i32_0 = arith.constant 0 : i32
    return %arg0, %c0_i32 : i32, i32
  }
  func.func @transform_2(%arg0: i32) -> (i32, i32) {
    %c0_i32 = arith.constant 0 : i32
    %c0_i32_0 = arith.constant 0 : i32
    %c0_i32_1 = arith.constant 0 : i32
    return %c0_i32, %c0_i32_0 : i32, i32
  }
  func.func @transform_3(%arg0: i32) -> (i32, i32) {
    %c0_i32 = arith.constant 0 : i32
    %c0_i32_0 = arith.constant 0 : i32
    %c0_i32_1 = arith.constant 0 : i32
    return %c0_i32, %c0_i32_0 : i32, i32
  }
  func.func @transform_4(%arg0: i32) -> (i32, i32) {
    %c0_i32 = arith.constant 0 : i32
    %c0_i32_0 = arith.constant 0 : i32
    %c0_i32_1 = arith.constant 0 : i32
    return %c0_i32, %c0_i32_0 : i32, i32
  }
  func.func @transform_5(%arg0: i32) -> (i32, i32) {
    %c0_i32 = arith.constant 0 : i32
    %c0_i32_0 = arith.constant 0 : i32
    %c0_i32_1 = arith.constant 0 : i32
    return %c0_i32, %c0_i32_0 : i32, i32
  }
  func.func @transform_6(%arg0: i32) -> (i32, i32) {
    %c0_i32 = arith.constant 0 : i32
    %c0_i32_0 = arith.constant 0 : i32
    %c0_i32_1 = arith.constant 0 : i32
    return %c0_i32, %c0_i32_0 : i32, i32
  }
  func.func @transform_7(%arg0: i32) -> (i32, i32) {
    %c0_i32 = arith.constant 0 : i32
    %c0_i32_0 = arith.constant 0 : i32
    return %arg0, %c0_i32 : i32, i32
  }
}

module attributes {stable_mosaic.version = 11 : i64} {
  func.func @_stage3_kernel(%arg0: i32, %arg1: memref<128x128xbf16, #tpu.memory_space<vmem>>, %arg2: memref<1x128xf32, #tpu.memory_space<vmem>>, %arg3: memref<1x128xf32, #tpu.memory_space<vmem>>, %arg4: memref<128x128xbf16, #tpu.memory_space<vmem>>, %arg5: memref<128x128xbf16, #tpu.memory_space<vmem>>, %arg6: memref<8x128xf32, #tpu.memory_space<vmem>>) attributes {dimension_semantics = [#tpu.dimension_semantics<parallel>], iteration_bounds = array<i64: 4>, scalar_prefetch = 0 : i64, scratch_operands = 0 : i64, tpu.core_type = #tpu.core_type<tc>, window_params = [{transform_indices = @transform_0, window_bounds = array<i64: 128, 128>}, {pipeline_mode = #tpu.pipeline_mode<synchronous>, transform_indices = @transform_1, window_bounds = array<i64: 1, 128>}, {pipeline_mode = #tpu.pipeline_mode<synchronous>, transform_indices = @transform_2, window_bounds = array<i64: 1, 128>}, {pipeline_mode = #tpu.pipeline_mode<synchronous>, transform_indices = @transform_3, window_bounds = array<i64: 128, 128>}, {transform_indices = @transform_4, window_bounds = array<i64: 128, 128>}, {transform_indices = @transform_5, window_bounds = array<i64: 8, 128>}]} {
    %c0 = arith.constant 0 : index
    %c0_0 = arith.constant 0 : index
    %0 = vector.load %arg1[%c0, %c0_0] : memref<128x128xbf16, #tpu.memory_space<vmem>>, vector<128x128xbf16>
    %1 = arith.extf %0 : vector<128x128xbf16> to vector<128x128xf32>
    %c0_1 = arith.constant 0 : index
    %c0_2 = arith.constant 0 : index
    %2 = vector.load %arg2[%c0_1, %c0_2] : memref<1x128xf32, #tpu.memory_space<vmem>>, vector<1x128xf32>
    %3 = vector.broadcast %2 : vector<1x128xf32> to vector<128x128xf32>
    %4 = arith.mulf %1, %3 : vector<128x128xf32>
    %c0_3 = arith.constant 0 : index
    %c0_4 = arith.constant 0 : index
    %5 = vector.load %arg3[%c0_3, %c0_4] : memref<1x128xf32, #tpu.memory_space<vmem>>, vector<1x128xf32>
    %6 = vector.broadcast %5 : vector<1x128xf32> to vector<128x128xf32>
    %7 = arith.addf %4, %6 : vector<128x128xf32>
    %cst = arith.constant 0.000000e+00 : f32
    %8 = vector.broadcast %cst : f32 to vector<128x128xf32>
    %9 = arith.maximumf %7, %8 : vector<128x128xf32>
    %10 = arith.truncf %9 : vector<128x128xf32> to vector<128x128xbf16>
    %c0_5 = arith.constant 0 : index
    %c0_6 = arith.constant 0 : index
    %11 = vector.load %arg4[%c0_5, %c0_6] : memref<128x128xbf16, #tpu.memory_space<vmem>>, vector<128x128xbf16>
    %cst_7 = arith.constant dense<0.000000e+00> : vector<128x128xf32>
    %12 = tpu.matmul %10, %11, %cst_7 {dimension_numbers = #tpu.dot_dimension_numbers<[1], [0], [0], [1], [0, 0, 1, 1], [], []>} : vector<128x128xbf16>, vector<128x128xbf16>, vector<128x128xf32> -> vector<128x128xf32>
    %13 = arith.truncf %12 : vector<128x128xf32> to vector<128x128xbf16>
    %c0_8 = arith.constant 0 : index
    %c0_9 = arith.constant 0 : index
    %14 = vector.load %arg5[%c0_8, %c0_9] : memref<128x128xbf16, #tpu.memory_space<vmem>>, vector<128x128xbf16>
    tpu.vector_store %arg5[%c0_8, %c0_9], %13 {strides = array<i32>} : memref<128x128xbf16, #tpu.memory_space<vmem>>, vector<128x128xbf16>,
    %cst_10 = arith.constant dense<0.000000e+00> : vector<128xf32>
    %15 = vector.multi_reduction <add>, %12, %cst_10 [0] : vector<128x128xf32> to vector<128xf32>
    %16 = vector.shape_cast %15 : vector<128xf32> to vector<1x128xf32>
    %17 = arith.mulf %12, %12 : vector<128x128xf32>
    %cst_11 = arith.constant dense<0.000000e+00> : vector<128xf32>
    %18 = vector.multi_reduction <add>, %17, %cst_11 [0] : vector<128x128xf32> to vector<128xf32>
    %19 = vector.shape_cast %18 : vector<128xf32> to vector<1x128xf32>
    %20 = tpu.iota {dimensions = array<i32: 0>} : vector<8x128xi32>
    %c0_i32 = arith.constant 0 : i32
    %21 = vector.broadcast %c0_i32 : i32 to vector<8x128xi32>
    %22 = arith.cmpi eq, %20, %21 : vector<8x128xi32>
    %c1_i32 = arith.constant 1 : i32
    %23 = vector.broadcast %c1_i32 : i32 to vector<8x128xi32>
    %24 = arith.cmpi eq, %20, %23 : vector<8x128xi32>
    %cst_12 = arith.constant 0.000000e+00 : f32
    %25 = vector.shape_cast %19 : vector<1x128xf32> to vector<1x128xf32>
    %26 = vector.broadcast %25 : vector<1x128xf32> to vector<8x128xf32>
    %27 = vector.broadcast %cst_12 : f32 to vector<8x128xf32>
    %28 = arith.select %24, %26, %27 : vector<8x128xi1>, vector<8x128xf32>
    %29 = vector.shape_cast %16 : vector<1x128xf32> to vector<1x128xf32>
    %30 = vector.broadcast %29 : vector<1x128xf32> to vector<8x128xf32>
    %31 = arith.select %22, %30, %28 : vector<8x128xi1>, vector<8x128xf32>
    %c0_13 = arith.constant 0 : index
    %c0_14 = arith.constant 0 : index
    %32 = vector.load %arg6[%c0_13, %c0_14] : memref<8x128xf32, #tpu.memory_space<vmem>>, vector<8x128xf32>
    tpu.vector_store %arg6[%c0_13, %c0_14], %31 {strides = array<i32>} : memref<8x128xf32, #tpu.memory_space<vmem>>, vector<8x128xf32>,
    return
  }
  func.func @transform_0(%arg0: i32) -> (i32, i32) {
    %c0_i32 = arith.constant 0 : i32
    %c0_i32_0 = arith.constant 0 : i32
    return %arg0, %c0_i32 : i32, i32
  }
  func.func @transform_1(%arg0: i32) -> (i32, i32) {
    %c0_i32 = arith.constant 0 : i32
    %c0_i32_0 = arith.constant 0 : i32
    %c0_i32_1 = arith.constant 0 : i32
    return %c0_i32, %c0_i32_0 : i32, i32
  }
  func.func @transform_2(%arg0: i32) -> (i32, i32) {
    %c0_i32 = arith.constant 0 : i32
    %c0_i32_0 = arith.constant 0 : i32
    %c0_i32_1 = arith.constant 0 : i32
    return %c0_i32, %c0_i32_0 : i32, i32
  }
  func.func @transform_3(%arg0: i32) -> (i32, i32) {
    %c0_i32 = arith.constant 0 : i32
    %c0_i32_0 = arith.constant 0 : i32
    %c0_i32_1 = arith.constant 0 : i32
    return %c0_i32, %c0_i32_0 : i32, i32
  }
  func.func @transform_4(%arg0: i32) -> (i32, i32) {
    %c0_i32 = arith.constant 0 : i32
    %c0_i32_0 = arith.constant 0 : i32
    return %arg0, %c0_i32 : i32, i32
  }
  func.func @transform_5(%arg0: i32) -> (i32, i32) {
    %c0_i32 = arith.constant 0 : i32
    %c0_i32_0 = arith.constant 0 : i32
    return %arg0, %c0_i32 : i32, i32
  }
}

</mosaic_0001>

<bundles_post_ra>
// kernel: _lambda_.4
= control target key start
LH: loop header
LB: loop body
LE: loop exit
PB: predicated region body
PF: predicated region fallthrough
CT: control target
= control target key end

     0   :  { %s803_s12 = smov 0   ;;  %s940_s0 = inlined_call_operand.vmem [shape: f32[512,16], index: 0, kind: input, shape index: {}]   ;;  %s941_s1 = inlined_call_operand.vmem [shape: bf16[16,256], index: 1, kind: input, shape index: {}]   ;;  %s942_s2 = inlined_call_operand.vmem [shape: bf16[512,128], index: 2, kind: output, shape index: {0}]   ;;  %s943_s3 = inlined_call_operand.vmem [shape: f32[32,256], index: 3, kind: output, shape index: {1}]  }
   0x1 LB: > { %s809_s13 = sadd.s32 4294967295, %s780_s12   ;;  %p661_p0 = scmp.ge.s32.totalorder %s780_s12, 1  ;;  %s780_s12 = sphi %s803_s12, %s14_s12  }
   0x2   : > { %p141_p1 = scmp.lt.s32.totalorder %s780_s12, 5 }
   0x4   : > { %p142_p2 = pnand %p661_p0, %p141_p1 }
   0x5   : > { %v771_v0 = vld [vmem:[%s941_s1 + $0x4] ss:$8 sps:$4 sm:$0xff] (!%p142_p2)   ;;  %s662_s16 = sshll.u32 (!%p142_p2), %s809_s13, 4  ;;  %v773_v1 = vld [vmem:[%s941_s1] ss:$8 sps:$4 sm:$0xff] (!%p142_p2)   ;;  %v782_v2 = vmov (!%p142_p2), 0  }
   0x6   : > { %145 = sbr.rel (%p142_p2) target bundleno = 293 (0x125), region = 28  ;;  %281 = vmatprep.mubr.bf16.mxu0 (!%p142_p2), %v782_v2  ;;  %p171_p3 = scmp.lt.s32.totalorder (!%p142_p2), %s662_s16, 63  ;;  %321 = vmatprep.mubr.bf16.mxu1 (!%p142_p2), %v782_v2  ;;  %vm224_vm0 = vcmask (!%p142_p2), 130048  }
   0x7   : > { %249 = vmatprep.subr.bf16.mxu0 (!%p142_p2), %v771_v0  ;;  %760 = vmatprep.subr.bf16.mxu1 (!%p142_p2), %v771_v0  ;;  %p182_p4 = scmp.lt.s32.totalorder (!%p142_p2), %s809_s13, 3 }
   0x8   : > { %250 = vmatpush1.bf16.msra.mxu0 (!%p142_p2), %v773_v1  ;;  %761 = vmatpush1.bf16.msra.mxu1 (!%p142_p2), %v773_v1 }
   0xd   : > { %s945_s16 = smov (!%p171_p3, %s662_s16), 63  ;;  %s947_s13 = smov (!%p182_p4, %s809_s13), 3 }
   0xe   : > { %s663_s19 = sshll.u32 %s945_s16, 3  ;;  %s665_s23 = sshll.u32 %s945_s16, 2 }
   0xf   : > { %s826_s22 = scalar_lea.vmem %s940_s0, %s663_s19  ;;  %s860_s26 = scalar_lea.vmem %s942_s2, %s665_s23 }
  0x10   : > { %v188_v3 = vld [vmem:[%s826_s22] sm:$0xff]  ;;  %v189_v4 = vld [vmem:[%s826_s22 + $0x8] sm:$0xff]  ;;  %v190_v9 = vld [vmem:[%s826_s22 + $0x10] sm:$0xff]  ;;  %s696_s27 = sshll.u32 %s947_s13, 4 }
  0x11   : > { %v204_v5 = vpack.c.bf16 %v189_v4, %v188_v3  ;;  %v196_v6 = vld [vmem:[%s826_s22 + $0x40] sm:$0xff]  ;;  %v197_v7 = vld [vmem:[%s826_s22 + $0x48] sm:$0xff]  ;;  %v191_v10 = vld [vmem:[%s826_s22 + $0x18] sm:$0xff]  ;;  %s186_s30 = scalar_lea.vmem %s943_s3, %s696_s27 }
  0x12   : > { %v208_v8 = vpack.c.bf16 %v197_v7, %v196_v6  ;;  %v198_v11 = vld [vmem:[%s826_s22 + $0x50] sm:$0xff]  ;;  %v199_v12 = vld [vmem:[%s826_s22 + $0x58] sm:$0xff]  ;;  %v205_v13 = vpack.c.bf16 %v191_v10, %v190_v9  ;;  %v192_v15 = vld [vmem:[%s826_s22 + $0x20] sm:$0xff] }
  0x13   : > { %670 = vmatmul.mubr.msk.bf16.vlgmr.msra.gmra.mrb[0].mxu0 %vm224_vm0, %v204_v5  ;;  %v209_v14 = vpack.c.bf16 %v199_v12, %v198_v11  ;;  %v193_v16 = vld [vmem:[%s826_s22 + $0x28] sm:$0xff]  ;;  %v200_v17 = vld [vmem:[%s826_s22 + $0x60] sm:$0xff]  ;;  %v194_v21 = vld [vmem:[%s826_s22 + $0x30] sm:$0xff] }
  0x14   : > { %291 = vmatprep.mubr.bf16.mxu0 %v782_v2  ;;  %674 = vmatmul.mubr.msk.bf16.vlgmr.msra.gmra.mrb[0].mxu1 %vm224_vm0, %v208_v8  ;;  %v201_v18 = vld [vmem:[%s826_s22 + $0x68] sm:$0xff]  ;;  %v206_v19 = vpack.c.bf16 %v193_v16, %v192_v15  ;;  %v195_v22 = vld [vmem:[%s826_s22 + $0x38] sm:$0xff]  ;;  %v202_v23 = vld [vmem:[%s826_s22 + $0x70] sm:$0xff] }
  0x15   : > { %331 = vmatprep.mubr.bf16.mxu1 %v782_v2  ;;  %v210_v20 = vpack.c.bf16 %v201_v18, %v200_v17  ;;  %v203_v24 = vld [vmem:[%s826_s22 + $0x78] sm:$0xff]  ;;  %v207_v25 = vpack.c.bf16 %v195_v22, %v194_v21 }
  0x16   : > { %v211_v26 = vpack.c.bf16 %v203_v24, %v202_v23 }
  0x1b   : > { %671 = vmatmul.mubr.msk.bf16.gmra.mrb[4].mxu0 %vm224_vm0, %v205_v13 }
  0x1c   : > { %301 = vmatprep.mubr.bf16.mxu0 %v782_v2  ;;  %675 = vmatmul.mubr.msk.bf16.gmra.mrb[4].mxu1 %vm224_vm0, %v209_v14 }
  0x1d   : > { %341 = vmatprep.mubr.bf16.mxu1 %v782_v2 }
  0x23   : > { %672 = vmatmul.mubr.msk.bf16.gmra.mrb[8].mxu0 %vm224_vm0, %v206_v19 }
  0x24   : > { %311 = vmatprep.mubr.bf16.mxu0 %v782_v2  ;;  %676 = vmatmul.mubr.msk.bf16.gmra.mrb[8].mxu1 %vm224_vm0, %v210_v20 }
  0x25   : > { %351 = vmatprep.mubr.bf16.mxu1 %v782_v2 }
  0x2b   : > { %673 = vmatmul.mubr.msk.bf16.gmra.mrb[12].mxu0 %vm224_vm0, %v207_v25 }
  0x2c   : > { %677 = vmatmul.mubr.msk.bf16.gmra.mrb[12].mxu1 %vm224_vm0, %v211_v26 }
  0xe6   : > { %v283_v27 = vpop.f32.mrb[0].mxu0 }
  0xe7   : > { %v285_v28 = vpop.f32.mrb[1].mxu0  ;;  %v853_v29 = vpop.f32.mrb[0].mxu1  ;;  %v484_v32 = vmul.f32 %v283_v27, %v283_v27 }
  0xe8   : > { %v287_v30 = vpop.f32.mrb[2].mxu0  ;;  %v855_v31 = vpop.f32.mrb[1].mxu1  ;;  %v485_v37 = vmul.f32 %v285_v28, %v285_v28 }
  0xe9   : > { %v442_v33 = vadd.f32 %v287_v30, %v283_v27  ;;  %v486_v34 = vmul.f32 %v287_v30, %v287_v30  ;;  %v289_v35 = vpop.f32.mrb[3].mxu0  ;;  %v862_v36 = vpop.f32.mrb[2].mxu1 }
  0xea   : > { %v716_v38 = vpack.c.bf16 %v289_v35, %v285_v28  ;;  %v463_v39 = vadd.f32 %v289_v35, %v285_v28  ;;  %v487_v40 = vmul.f32 %v289_v35, %v289_v35  ;;  %v864_v41 = vpop.f32.mrb[3].mxu1 }
  0xeb   : > { %v516_v42 = vadd.f32 %v486_v34, %v484_v32  ;;  %v736_v43 = vpack.c.bf16 %v864_v41, %v855_v31 }
  0xec   : > { %717 = vst [vmem:[%s860_s26] sm:$0xff] %v716_v38   ;;  %v537_v44 = vadd.f32 %v487_v40, %v485_v37 }
  0xed   : > { %756 = vst [vmem:[%s860_s26 + $0x20] sm:$0xff] %v736_v43  }
  0xee   : > { %v293_v45 = vpop.f32.mrb[4].mxu0 }
  0xef   : > { %v443_v46 = vadd.f32 %v442_v33, %v293_v45  ;;  %v488_v47 = vmul.f32 %v293_v45, %v293_v45  ;;  %v295_v48 = vpop.f32.mrb[5].mxu0  ;;  %v870_v49 = vpop.f32.mrb[4].mxu1 }
  0xf0   : > { %v464_v50 = vadd.f32 %v463_v39, %v295_v48  ;;  %v489_v51 = vmul.f32 %v295_v48, %v295_v48  ;;  %v297_v52 = vpop.f32.mrb[6].mxu0  ;;  %v872_v53 = vpop.f32.mrb[5].mxu1 }
  0xf1   : > { %v517_v54 = vadd.f32 %v516_v42, %v488_v47  ;;  %v444_v55 = vadd.f32 %v443_v46, %v297_v52  ;;  %v490_v56 = vmul.f32 %v297_v52, %v297_v52  ;;  %v299_v57 = vpop.f32.mrb[7].mxu0  ;;  %v874_v58 = vpop.f32.mrb[6].mxu1 }
  0xf2   : > { %v538_v59 = vadd.f32 %v537_v44, %v489_v51  ;;  %v721_v60 = vpack.c.bf16 %v299_v57, %v295_v48  ;;  %v465_v61 = vadd.f32 %v464_v50, %v299_v57  ;;  %v491_v62 = vmul.f32 %v299_v57, %v299_v57  ;;  %v876_v63 = vpop.f32.mrb[7].mxu1 }
  0xf3   : > { %v518_v0 = vadd.f32 %v517_v54, %v490_v56  ;;  %v741_v1 = vpack.c.bf16 %v876_v63, %v872_v53  ;;  %v500_v48 = vmul.f32 %v853_v29, %v853_v29  ;;  %v501_v54 = vmul.f32 %v855_v31, %v855_v31 }
  0xf4   : > { %753 = vst [vmem:[%s860_s26 + $0x8] sm:$0xff] %v721_v60   ;;  %v539_v2 = vadd.f32 %v538_v59, %v491_v62  ;;  %v502_v57 = vmul.f32 %v862_v36, %v862_v36 }
  0xf5   : > { %757 = vst [vmem:[%s860_s26 + $0x28] sm:$0xff] %v741_v1  }
  0xf6   : > { %v303_v3 = vpop.f32.mrb[8].mxu0 }
  0xf7   : > { %v445_v4 = vadd.f32 %v444_v55, %v303_v3  ;;  %v492_v5 = vmul.f32 %v303_v3, %v303_v3  ;;  %v305_v6 = vpop.f32.mrb[9].mxu0  ;;  %v882_v7 = vpop.f32.mrb[8].mxu1 }
  0xf8   : > { %v466_v8 = vadd.f32 %v465_v61, %v305_v6  ;;  %v493_v9 = vmul.f32 %v305_v6, %v305_v6  ;;  %v307_v10 = vpop.f32.mrb[10].mxu0  ;;  %v884_v11 = vpop.f32.mrb[9].mxu1  ;;  %v503_v61 = vmul.f32 %v864_v41, %v864_v41 }
  0xf9   : > { %v519_v12 = vadd.f32 %v518_v0, %v492_v5  ;;  %v446_v13 = vadd.f32 %v445_v4, %v307_v10  ;;  %v494_v14 = vmul.f32 %v307_v10, %v307_v10  ;;  %v309_v15 = vpop.f32.mrb[11].mxu0  ;;  %v886_v16 = vpop.f32.mrb[10].mxu1  ;;  %v504_v0 = vmul.f32 %v870_v49, %v870_v49 }
  0xfa   : > { %v540_v17 = vadd.f32 %v539_v2, %v493_v9  ;;  %v726_v18 = vpack.c.bf16 %v309_v15, %v305_v6  ;;  %v467_v19 = vadd.f32 %v466_v8, %v309_v15  ;;  %v495_v20 = vmul.f32 %v309_v15, %v309_v15  ;;  %v888_v21 = vpop.f32.mrb[11].mxu1 }
  0xfb   : > { %v520_v22 = vadd.f32 %v519_v12, %v494_v14  ;;  %v746_v23 = vpack.c.bf16 %v888_v21, %v884_v11  ;;  %v505_v2 = vmul.f32 %v872_v53, %v872_v53  ;;  %v506_v4 = vmul.f32 %v874_v58, %v874_v58 }
  0xfc   : > { %754 = vst [vmem:[%s860_s26 + $0x10] sm:$0xff] %v726_v18   ;;  %v541_v24 = vadd.f32 %v540_v17, %v495_v20  ;;  %v508_v10 = vmul.f32 %v882_v7, %v882_v7  ;;  %v510_v17 = vmul.f32 %v886_v16, %v886_v16 }
  0xfd   : > { %758 = vst [vmem:[%s860_s26 + $0x30] sm:$0xff] %v746_v23  }
  0xfe   : > { %v313_v25 = vpop.f32.mrb[12].mxu0 }
  0xff   : > { %v447_v26 = vadd.f32 %v446_v13, %v313_v25  ;;  %v496_v27 = vmul.f32 %v313_v25, %v313_v25  ;;  %v315_v28 = vpop.f32.mrb[13].mxu0  ;;  %v353_v30 = vpop.f32.mrb[12].mxu1  ;;  %v509_v13 = vmul.f32 %v884_v11, %v884_v11 }
 0x100   : > { %v468_v32 = vadd.f32 %v467_v19, %v315_v28  ;;  %v497_v33 = vmul.f32 %v315_v28, %v315_v28  ;;  %v317_v34 = vpop.f32.mrb[14].mxu0  ;;  %v355_v35 = vpop.f32.mrb[13].mxu1 }
 0x101   : > { %v521_v37 = vadd.f32 %v520_v22, %v496_v27  ;;  %v448_v38 = vadd.f32 %v447_v26, %v317_v34  ;;  %v498_v39 = vmul.f32 %v317_v34, %v317_v34  ;;  %v319_v40 = vpop.f32.mrb[15].mxu0  ;;  %v357_v42 = vpop.f32.mrb[14].mxu1  ;;  %v513_v20 = vmul.f32 %v355_v35, %v355_v35 }
 0x102   : > { %v542_v43 = vadd.f32 %v541_v24, %v497_v33  ;;  %v731_v44 = vpack.c.bf16 %v319_v40, %v315_v28  ;;  %v469_v45 = vadd.f32 %v468_v32, %v319_v40  ;;  %v499_v46 = vmul.f32 %v319_v40, %v319_v40  ;;  %v359_v47 = vpop.f32.mrb[15].mxu1 }
 0x103   : > { %v449_v50 = vadd.f32 %v448_v38, %v853_v29  ;;  %v522_v51 = vadd.f32 %v521_v37, %v498_v39  ;;  %v751_v52 = vpack.c.bf16 %v359_v47, %v355_v35  ;;  %v514_v27 = vmul.f32 %v357_v42, %v357_v42 }
 0x104   : > { %755 = vst [vmem:[%s860_s26 + $0x18] sm:$0xff] %v731_v44   ;;  %v470_v55 = vadd.f32 %v469_v45, %v855_v31  ;;  %v543_v56 = vadd.f32 %v542_v43, %v499_v46  ;;  %v558_v40 = vlaneseq }
 0x105   : > { %v450_v59 = vadd.f32 %v449_v50, %v862_v36  ;;  %v523_v60 = vadd.f32 %v522_v51, %v500_v48  ;;  %759 = vst [vmem:[%s860_s26 + $0x38] sm:$0xff] %v751_v52  }
 0x106   : > { %v471_v29 = vadd.f32 %v470_v55, %v864_v41  ;;  %v544_v62 = vadd.f32 %v543_v56, %v501_v54  ;;  %v507_v41 = vmul.f32 %v876_v63, %v876_v63  ;;  %v559_v50 = vshrl.u32 %v558_v40, 7 }
 0x107   : > { %v524_v1 = vadd.f32 %v523_v60, %v502_v57  ;;  %v451_v31 = vadd.f32 %v450_v59, %v870_v49 }
 0x108   : > { %v545_v3 = vadd.f32 %v544_v62, %v503_v61  ;;  %v472_v36 = vadd.f32 %v471_v29, %v872_v53  ;;  %vm561_vm1 = vcmp.eq.s32.totalorder %v559_v50, 1  ;;  %vm560_vm2 = vcmp.eq.s32.totalorder %v559_v50, 0 }
 0x109   : > { %v452_v5 = vadd.f32 %v451_v31, %v874_v58  ;;  %v525_v6 = vadd.f32 %v524_v1, %v504_v0 }
 0x10a   : > { %v473_v8 = vadd.f32 %v472_v36, %v876_v63  ;;  %v546_v9 = vadd.f32 %v545_v3, %v505_v2  ;;  %v512_v63 = vmul.f32 %v353_v30, %v353_v30 }
 0x10b   : > { %v453_v49 = vadd.f32 %v452_v5, %v882_v7  ;;  %v526_v12 = vadd.f32 %v525_v6, %v506_v4  ;;  %v511_v7 = vmul.f32 %v888_v21, %v888_v21 }
 0x10c   : > { %v474_v53 = vadd.f32 %v473_v8, %v884_v11  ;;  %v547_v14 = vadd.f32 %v546_v9, %v507_v41 }
 0x10d   : > { %v527_v58 = vadd.f32 %v526_v12, %v508_v10  ;;  %v454_v15 = vadd.f32 %v453_v49, %v886_v16  ;;  %v515_v16 = vmul.f32 %v359_v47, %v359_v47 }
 0x10e   : > { %v548_v18 = vadd.f32 %v547_v14, %v509_v13  ;;  %v475_v19 = vadd.f32 %v474_v53, %v888_v21 }
 0x10f   : > { %v528_v22 = vadd.f32 %v527_v58, %v510_v17  ;;  %v455_v23 = vadd.f32 %v454_v15, %v353_v30 }
 0x110   : > { %v549_v24 = vadd.f32 %v548_v18, %v511_v7  ;;  %v476_v11 = vadd.f32 %v475_v19, %v355_v35 }
 0x111   : > { %v529_v25 = vadd.f32 %v528_v22, %v512_v63  ;;  %v456_v26 = vadd.f32 %v455_v23, %v357_v42 }
 0x112   : > { %v550_v28 = vadd.f32 %v549_v24, %v513_v20  ;;  %v477_v32 = vadd.f32 %v476_v11, %v359_v47 }
 0x113   : > { %v457_v33 = vrot.slane %v456_v26, 4  ;;  %v530_v34 = vadd.f32 %v529_v25, %v514_v27 }
 0x114   : > { %v478_v37 = vrot.slane %v477_v32, 4  ;;  %v551_v38 = vadd.f32 %v550_v28, %v515_v16 }
 0x115   : > { %v458_v39 = vadd.f32 %v457_v33, %v456_v26  ;;  %v531_v21 = vrot.slane %v530_v34, 4 }
 0x116   : > { %v479_v43 = vadd.f32 %v478_v37, %v477_v32  ;;  %v552_v44 = vrot.slane %v551_v38, 4 }
 0x117   : > { %v459_v30 = vrot.slane %v458_v39, 2  ;;  %v532_v45 = vadd.f32 %v531_v21, %v530_v34 }
 0x118   : > { %v480_v35 = vrot.slane %v479_v43, 2  ;;  %v553_v46 = vadd.f32 %v552_v44, %v551_v38 }
 0x119   : > { %v460_v42 = vadd.f32 %v459_v30, %v458_v39  ;;  %v533_v48 = vrot.slane %v532_v45, 2 }
 0x11a   : > { %v481_v51 = vadd.f32 %v480_v35, %v479_v43  ;;  %v554_v47 = vrot.slane %v553_v46, 2 }
 0x11b   : > { %v534_v52 = vadd.f32 %v533_v48, %v532_v45  ;;  %v461_v54 = vrot.slane %v460_v42, 1 }
 0x11c   : > { %v555_v55 = vadd.f32 %v554_v47, %v553_v46  ;;  %v482_v57 = vrot.slane %v481_v51, 1 }
 0x11d   : > { %v535_v56 = vrot.slane %v534_v52, 1  ;;  %v462_v61 = vadd.f32 %v461_v54, %v460_v42 }
 0x11e   : > { %v556_v59 = vrot.slane %v555_v55, 1  ;;  %v483_v0 = vadd.f32 %v482_v57, %v481_v51 }
 0x11f   : > { %v536_v60 = vadd.f32 %v535_v56, %v534_v52 }
 0x120   : > { %v557_v29 = vadd.f32 %v556_v59, %v555_v55 }
 0x121   : > { %v562_v62 = vsel %vm561_vm1, %v536_v60, 0.0 }
 0x122   : > { %v564_v1 = vsel %vm560_vm2, %v462_v61, %v562_v62  ;;  %v563_v31 = vsel %vm561_vm1, %v557_v29, 0.0 }
 0x123   : > { %566 = vst [vmem:[%s186_s30] sm:$0xff] %v564_v1  ;;  %v565_v2 = vsel %vm560_vm2, %v483_v0, %v563_v31 }
 0x124   : > { %567 = vst [vmem:[%s186_s30 + $0x8] sm:$0xff] %v565_v2 }
 0x125 PF: > { %s14_s12 = sadd.s32 1, %s780_s12  }
 0x126   : > { %p11_p5 = scmp.ge.s32.totalorder %s14_s12, 6  }
 0x128   :  { %13 = sbr.rel (!%p11_p5) target bundleno = 1 (0x1), region = 70 }

// kernel: _lambda_.6
= control target key start
LH: loop header
LB: loop body
LE: loop exit
PB: predicated region body
PF: predicated region fallthrough
CT: control target
= control target key end

     0   :  { %s993_s18 = smov 0   ;;  %s1111_s0 = inlined_call_operand.vmem [shape: bf16[512,128], index: 0, kind: input, shape index: {}]   ;;  %s1112_s1 = inlined_call_operand.vmem [shape: f32[1,128], index: 1, kind: input, shape index: {}]   ;;  %s1113_s2 = inlined_call_operand.vmem [shape: f32[1,128], index: 2, kind: input, shape index: {}]   ;;  %s1114_s3 = inlined_call_operand.vmem [shape: bf16[128,128], index: 3, kind: input, shape index: {}]   ;;  %s1115_s4 = inlined_call_operand.vmem [shape: bf16[512,128], index: 4, kind: output, shape index: {0}]   ;;  %s1116_s5 = inlined_call_operand.vmem [shape: f32[32,128], index: 5, kind: output, shape index: {1}]  }
   0x1 LB: > { %s999_s19 = sadd.s32 4294967295, %s961_s18   ;;  %p739_p0 = scmp.ge.s32.totalorder %s961_s18, 1  ;;  %s961_s18 = sphi %s993_s18, %s16_s18  }
   0x2   : > { %p191_p1 = scmp.lt.s32.totalorder %s961_s18, 5 }
   0x4   : > { %p192_p2 = pnand %p739_p0, %p191_p1 }
   0x5   : > { %v947_v0 = vld [vmem:[%s1114_s3] sm:$0xff] (!%p192_p2)   ;;  %s740_s22 = sshll.u32 (!%p192_p2), %s999_s19, 4  ;;  %v948_v1 = vld [vmem:[%s1114_s3 + $0x8] sm:$0xff] (!%p192_p2)   ;;  %v949_v2 = vld [vmem:[%s1114_s3 + $0x10] sm:$0xff] (!%p192_p2)   ;;  %p235_p4 = scmp.lt.s32.totalorder (!%p192_p2), %s999_s19, 3 }
   0x6   : > { %195 = sbr.rel (%p192_p2) target bundleno = 301 (0x12d), region = 36  ;;  %p224_p3 = scmp.lt.s32.totalorder (!%p192_p2), %s740_s22, 63  ;;  %891 = vmatprep.subr.bf16.mxu0 (!%p192_p2), %v947_v0  ;;  %923 = vmatprep.subr.bf16.mxu1 (!%p192_p2), %v947_v0  ;;  %v950_v3 = vld [vmem:[%s1114_s3 + $0x18] sm:$0xff] (!%p192_p2)   ;;  %v1030_v5 = vld [vmem:[%s1112_s1] ss:$0 sm:$0xff] (!%p192_p2)  ;;  %v952_v28 = vld [vmem:[%s1114_s3 + $0x28] sm:$0xff] (!%p192_p2)  }
   0x7   : > { %892 = vmatpush3.bf16.msra.mxu0 (!%p192_p2), %v947_v0  ;;  %931 = vmatpush3.bf16.msra.mxu1 (!%p192_p2), %v947_v0  ;;  %v1037_v10 = vld [vmem:[%s1113_s2] ss:$0 sm:$0xff] (!%p192_p2)  ;;  %v953_v44 = vld [vmem:[%s1114_s3 + $0x30] sm:$0xff] (!%p192_p2)   ;;  %v954_v61 = vld [vmem:[%s1114_s3 + $0x38] sm:$0xff] (!%p192_p2)  }
   0x8   : > { %893 = vmatprep.subr.bf16.mxu0 (!%p192_p2), %v948_v1  ;;  %924 = vmatprep.subr.bf16.mxu1 (!%p192_p2), %v948_v1  ;;  %v951_v16 = vld [vmem:[%s1114_s3 + $0x20] sm:$0xff] (!%p192_p2)  }
   0xb   : > { %894 = vmatpush3.bf16.msra.mxu0 (!%p192_p2), %v948_v1  ;;  %932 = vmatpush3.bf16.msra.mxu1 (!%p192_p2), %v948_v1 }
   0xc   : > { %895 = vmatprep.subr.bf16.mxu0 (!%p192_p2), %v949_v2  ;;  %925 = vmatprep.subr.bf16.mxu1 (!%p192_p2), %v949_v2 }
   0xd   : > { %s1118_s22 = smov (!%p224_p3, %s740_s22), 63  ;;  %s1120_s19 = smov (!%p235_p4, %s999_s19), 3 }
   0xe   : > { %s741_s27 = sshll.u32 %s1118_s22, 2  ;;  %s744_s22 = sshll.u32 %s1120_s19, 3 }
   0xf   : > { %s1021_s30 = scalar_lea.vmem %s1111_s0, %s741_s27  ;;  %896 = vmatpush3.bf16.msra.mxu0 %v949_v2  ;;  %933 = vmatpush3.bf16.msra.mxu1 %v949_v2  ;;  %s1093_s25 = scalar_lea.vmem %s1115_s4, %s741_s27 }
  0x10   : > { %v790_v4 = vld [vmem:[%s1021_s30] sm:$0xff]   ;;  %v861_v8 = vld [vmem:[%s1021_s30 + $0x8] sm:$0xff]   ;;  %v862_v9 = vld [vmem:[%s1021_s30 + $0x10] sm:$0xff]   ;;  %897 = vmatprep.subr.bf16.mxu0 %v950_v3  ;;  %926 = vmatprep.subr.bf16.mxu1 %v950_v3  ;;  %s238_s28 = scalar_lea.vmem %s1116_s5, %s744_s22 }
  0x11   : > { %v791_v6 = vunpack.c.l.bf16 %v790_v4  ;;  %v792_v7 = vunpack.c.h.bf16 %v790_v4  ;;  %v795_v11 = vunpack.c.l.bf16 %v861_v8  ;;  %v796_v14 = vunpack.c.h.bf16 %v861_v8  ;;  %v864_v15 = vld [vmem:[%s1021_s30 + $0x20] sm:$0xff]   ;;  %v863_v22 = vld [vmem:[%s1021_s30 + $0x18] sm:$0xff]   ;;  %v865_v27 = vld [vmem:[%s1021_s30 + $0x28] sm:$0xff]  }
  0x12   : > { %v799_v17 = vunpack.c.l.bf16 %v862_v9  ;;  %v800_v21 = vunpack.c.h.bf16 %v862_v9  ;;  %v807_v23 = vunpack.c.l.bf16 %v864_v15  ;;  %v866_v30 = vld [vmem:[%s1021_s30 + $0x30] sm:$0xff]   ;;  %v803_v32 = vunpack.c.l.bf16 %v863_v22  ;;  %v867_v39 = vld [vmem:[%s1021_s30 + $0x38] sm:$0xff]  }
  0x13   : > { %v279_v12 = vmul.f32 %v791_v6, %v1030_v5  ;;  %v280_v13 = vmul.f32 %v792_v7, %v1030_v5  ;;  %v281_v20 = vmul.f32 %v795_v11, %v1030_v5  ;;  %898 = vmatpush3.bf16.msra.mxu0 %v950_v3  ;;  %934 = vmatpush3.bf16.msra.mxu1 %v950_v3  ;;  %v804_v33 = vunpack.c.h.bf16 %v863_v22 }
  0x14   : > { %v282_v26 = vmul.f32 %v796_v14, %v1030_v5  ;;  %899 = vmatprep.subr.bf16.mxu0 %v951_v16  ;;  %927 = vmatprep.subr.bf16.mxu1 %v951_v16  ;;  %v283_v29 = vmul.f32 %v799_v17, %v1030_v5  ;;  %v808_v34 = vunpack.c.h.bf16 %v864_v15  ;;  %v284_v36 = vmul.f32 %v800_v21, %v1030_v5 }
  0x15   : > { %v302_v18 = vadd.f32 %v1037_v10, %v279_v12  ;;  %v303_v19 = vadd.f32 %v1037_v10, %v280_v13  ;;  %v304_v35 = vadd.f32 %v1037_v10, %v281_v20  ;;  %v287_v37 = vmul.f32 %v807_v23, %v1030_v5 }
  0x16   : > { %v811_v38 = vunpack.c.l.bf16 %v865_v27  ;;  %v305_v40 = vadd.f32 %v1037_v10, %v282_v26  ;;  %v288_v41 = vmul.f32 %v808_v34, %v1030_v5  ;;  %v812_v42 = vunpack.c.h.bf16 %v865_v27 }
  0x17   : > { %v318_v24 = vmax.f32 %v302_v18, 0.0  ;;  %v319_v25 = vmax.f32 %v303_v19, 0.0  ;;  %900 = vmatpush3.bf16.msra.mxu0 %v951_v16  ;;  %935 = vmatpush3.bf16.msra.mxu1 %v951_v16  ;;  %v815_v43 = vunpack.c.l.bf16 %v866_v30  ;;  %v306_v45 = vadd.f32 %v1037_v10, %v283_v29 }
  0x18   : > { %901 = vmatprep.subr.bf16.mxu0 %v952_v28  ;;  %v310_v46 = vadd.f32 %v1037_v10, %v287_v37  ;;  %v289_v47 = vmul.f32 %v811_v38, %v1030_v5  ;;  %v816_v48 = vunpack.c.h.bf16 %v866_v30  ;;  %928 = vmatprep.subr.bf16.mxu1 %v952_v28  ;;  %v311_v49 = vadd.f32 %v1037_v10, %v288_v41 }
  0x19   : > { %v334_v31 = vpack.c.bf16 %v319_v25, %v318_v24  ;;  %v290_v50 = vmul.f32 %v812_v42, %v1030_v5  ;;  %v291_v51 = vmul.f32 %v815_v43, %v1030_v5  ;;  %v819_v52 = vunpack.c.l.bf16 %v867_v39 }
  0x1a   : > { %v326_v53 = vmax.f32 %v310_v46, 0.0  ;;  %v312_v54 = vadd.f32 %v1037_v10, %v289_v47  ;;  %v292_v55 = vmul.f32 %v816_v48, %v1030_v5  ;;  %v820_v56 = vunpack.c.h.bf16 %v867_v39 }
  0x1b   : > { %907 = vmatprep.mubr.bf16.mxu0 %v334_v31  ;;  %902 = vmatpush3.bf16.msra.mxu0 %v952_v28  ;;  %v307_v57 = vadd.f32 %v1037_v10, %v284_v36  ;;  %v327_v58 = vmax.f32 %v311_v49, 0.0  ;;  %v313_v59 = vadd.f32 %v1037_v10, %v290_v50  ;;  %v314_v60 = vadd.f32 %v1037_v10, %v291_v51 }
  0x1c   : > { %936 = vmatpush3.bf16.msra.mxu1 %v952_v28  ;;  %903 = vmatprep.subr.bf16.mxu0 %v953_v44  ;;  %v285_v62 = vmul.f32 %v803_v32, %v1030_v5  ;;  %v315_v63 = vadd.f32 %v1037_v10, %v292_v55  ;;  %v320_v0 = vmax.f32 %v304_v35, 0.0  ;;  %v321_v1 = vmax.f32 %v305_v40, 0.0 }
  0x1d   : > { %929 = vmatprep.subr.bf16.mxu1 %v953_v44  ;;  %v286_v2 = vmul.f32 %v804_v33, %v1030_v5  ;;  %v338_v3 = vpack.c.bf16 %v327_v58, %v326_v53  ;;  %v328_v4 = vmax.f32 %v312_v54, 0.0  ;;  %v329_v6 = vmax.f32 %v313_v59, 0.0 }
  0x1e   : > { %v293_v7 = vmul.f32 %v819_v52, %v1030_v5  ;;  %v294_v8 = vmul.f32 %v820_v56, %v1030_v5  ;;  %v322_v9 = vmax.f32 %v306_v45, 0.0  ;;  %v323_v11 = vmax.f32 %v307_v57, 0.0 }
  0x1f   : > { %904 = vmatpush3.bf16.msra.mxu0 %v953_v44  ;;  %v330_v12 = vmax.f32 %v314_v60, 0.0  ;;  %v331_v13 = vmax.f32 %v315_v63, 0.0  ;;  %v308_v14 = vadd.f32 %v1037_v10, %v285_v62  ;;  %v309_v15 = vadd.f32 %v1037_v10, %v286_v2  ;;  %915 = vmatprep.mubr.bf16.mxu1 %v338_v3 }
  0x20   : > { %937 = vmatpush3.bf16.msra.mxu1 %v953_v44  ;;  %905 = vmatprep.subr.bf16.mxu0 %v954_v61  ;;  %v335_v16 = vpack.c.bf16 %v321_v1, %v320_v0  ;;  %v339_v17 = vpack.c.bf16 %v329_v6, %v328_v4  ;;  %v316_v18 = vadd.f32 %v1037_v10, %v293_v7 }
  0x21   : > { %930 = vmatprep.subr.bf16.mxu1 %v954_v61  ;;  %v317_v19 = vadd.f32 %v1037_v10, %v294_v8  ;;  %v336_v5 = vpack.c.bf16 %v323_v11, %v322_v9  ;;  %v340_v20 = vpack.c.bf16 %v331_v13, %v330_v12  ;;  %v324_v21 = vmax.f32 %v308_v14, 0.0 }
  0x22   : > { %v325_v22 = vmax.f32 %v309_v15, 0.0  ;;  %v332_v23 = vmax.f32 %v316_v18, 0.0 }
  0x23   : > { %906 = vmatpush3.bf16.msra.mxu0 %v954_v61  ;;  %v333_v24 = vmax.f32 %v317_v19, 0.0 }
  0x24   : > { %938 = vmatpush3.bf16.msra.mxu1 %v954_v61  ;;  %v337_v25 = vpack.c.bf16 %v325_v22, %v324_v21 }
  0x25   : > { %v341_v26 = vpack.c.bf16 %v333_v24, %v332_v23 }
  0x26   : > { %908 = vmatmul.mubr.bf16.vlgmr.msra.gmra.mrb[0].mxu0 %v335_v16 }
  0x27   : > { %916 = vmatmul.mubr.bf16.vlgmr.msra.gmra.mrb[0].mxu1 %v339_v17  ;;  %911 = vmatprep.mubr.bf16.mxu0 %v336_v5 }
  0x28   : > { %919 = vmatprep.mubr.bf16.mxu1 %v340_v20 }
  0x2e   : > { %912 = vmatmul.mubr.bf16.gmra.mrb[4].mxu0 %v337_v25 }
  0x2f   : > { %920 = vmatmul.mubr.bf16.gmra.mrb[4].mxu1 %v341_v26 }
  0xf9   : > { %v909_v27 = vpop.f32.mrb[0].mxu0 }
  0xfa   : > { %v917_v28 = vpop.f32.mrb[0].mxu1  ;;  %v440_v10 = vpop.f32.mrb[1].mxu0  ;;  %v606_v41 = vmul.f32 %v909_v27, %v909_v27 }
  0xfb   : > { %v472_v29 = vpop.f32.mrb[1].mxu1  ;;  %v910_v30 = vpop.f32.mrb[2].mxu0  ;;  %v604_v32 = vmul.f32 %v440_v10, %v440_v10  ;;  %v614_v15 = vmul.f32 %v917_v28, %v917_v28 }
  0xfc   : > { %v918_v31 = vpop.f32.mrb[2].mxu1  ;;  %v829_v33 = vpack.c.bf16 %v910_v30, %v909_v27  ;;  %v443_v34 = vpop.f32.mrb[3].mxu0  ;;  %v607_v44 = vmul.f32 %v910_v30, %v910_v30  ;;  %v612_v8 = vmul.f32 %v472_v29, %v472_v29 }
  0xfd   : > { %v849_v35 = vpack.c.bf16 %v918_v31, %v917_v28  ;;  %v475_v36 = vpop.f32.mrb[3].mxu1  ;;  %v824_v37 = vpack.c.bf16 %v443_v34, %v440_v10  ;;  %v583_v38 = vadd.f32 %v443_v34, %v440_v10  ;;  %v605_v39 = vmul.f32 %v443_v34, %v443_v34 }
  0xfe   : > { %v844_v40 = vpack.c.bf16 %v475_v36, %v472_v29  ;;  %868 = vst [vmem:[%s1093_s25 + $0x8] sm:$0xff] %v829_v33   ;;  %v613_v14 = vmul.f32 %v475_v36, %v475_v36  ;;  %v615_v18 = vmul.f32 %v918_v31, %v918_v31 }
  0xff   : > { %872 = vst [vmem:[%s1093_s25 + $0x28] sm:$0xff] %v849_v35   ;;  %825 = vst [vmem:[%s1093_s25] sm:$0xff] %v824_v37   ;;  %v584_v42 = vadd.f32 %v909_v27, %v583_v38  ;;  %v620_v43 = vadd.f32 %v605_v39, %v604_v32 }
 0x100   : > { %871 = vst [vmem:[%s1093_s25 + $0x20] sm:$0xff] %v844_v40  }
 0x101   : > { %v621_v45 = vadd.f32 %v620_v43, %v606_v41  ;;  %v913_v46 = vpop.f32.mrb[4].mxu0  ;;  %v585_v47 = vadd.f32 %v910_v30, %v584_v42 }
 0x102   : > { %v921_v48 = vpop.f32.mrb[4].mxu1  ;;  %v456_v49 = vpop.f32.mrb[5].mxu0  ;;  %v610_v1 = vmul.f32 %v913_v46, %v913_v46 }
 0x103   : > { %v488_v50 = vpop.f32.mrb[5].mxu1  ;;  %v586_v51 = vadd.f32 %v585_v47, %v456_v49  ;;  %v608_v52 = vmul.f32 %v456_v49, %v456_v49  ;;  %v622_v53 = vadd.f32 %v621_v45, %v607_v44  ;;  %v914_v54 = vpop.f32.mrb[6].mxu0  ;;  %v618_v26 = vmul.f32 %v921_v48, %v921_v48 }
 0x104   : > { %v922_v55 = vpop.f32.mrb[6].mxu1  ;;  %v839_v56 = vpack.c.bf16 %v914_v54, %v913_v46  ;;  %v459_v57 = vpop.f32.mrb[7].mxu0  ;;  %v611_v4 = vmul.f32 %v914_v54, %v914_v54  ;;  %v616_v20 = vmul.f32 %v488_v50, %v488_v50 }
 0x105   : > { %v859_v58 = vpack.c.bf16 %v922_v55, %v921_v48  ;;  %v491_v59 = vpop.f32.mrb[7].mxu1  ;;  %v623_v60 = vadd.f32 %v622_v53, %v608_v52  ;;  %v834_v61 = vpack.c.bf16 %v459_v57, %v456_v49  ;;  %v587_v62 = vadd.f32 %v586_v51, %v459_v57 }
 0x106   : > { %v609_v63 = vmul.f32 %v459_v57, %v459_v57  ;;  %870 = vst [vmem:[%s1093_s25 + $0x18] sm:$0xff] %v839_v56   ;;  %v854_v0 = vpack.c.bf16 %v491_v59, %v488_v50  ;;  %v617_v25 = vmul.f32 %v491_v59, %v491_v59 }
 0x107   : > { %874 = vst [vmem:[%s1093_s25 + $0x38] sm:$0xff] %v859_v58   ;;  %869 = vst [vmem:[%s1093_s25 + $0x10] sm:$0xff] %v834_v61   ;;  %v588_v2 = vadd.f32 %v913_v46, %v587_v62 }
 0x108   : > { %v624_v3 = vadd.f32 %v623_v60, %v609_v63  ;;  %873 = vst [vmem:[%s1093_s25 + $0x30] sm:$0xff] %v854_v0  }
 0x109   : > { %v589_v7 = vadd.f32 %v914_v54, %v588_v2 }
 0x10a   : > { %v625_v6 = vadd.f32 %v624_v3, %v610_v1 }
 0x10b   : > { %v590_v9 = vadd.f32 %v589_v7, %v472_v29  ;;  %v619_v29 = vmul.f32 %v922_v55, %v922_v55 }
 0x10c   : > { %v626_v11 = vadd.f32 %v625_v6, %v611_v4 }
 0x10d   : > { %v591_v13 = vadd.f32 %v590_v9, %v475_v36  ;;  %v641_v36 = vlaneseq }
 0x10e   : > { %v627_v12 = vadd.f32 %v626_v11, %v612_v8 }
 0x10f   : > { %v592_v16 = vadd.f32 %v917_v28, %v591_v13  ;;  %v642_v40 = vshrl.u32 %v641_v36, 7 }
 0x110   : > { %v628_v17 = vadd.f32 %v627_v12, %v613_v14 }
 0x111   : > { %v593_v5 = vadd.f32 %v918_v31, %v592_v16  ;;  %vm644_vm0 = vcmp.eq.s32.totalorder %v642_v40, 1  ;;  %vm643_vm1 = vcmp.eq.s32.totalorder %v642_v40, 0 }
 0x112   : > { %v629_v19 = vadd.f32 %v628_v17, %v614_v15 }
 0x113   : > { %v594_v21 = vadd.f32 %v593_v5, %v488_v50 }
 0x114   : > { %v630_v22 = vadd.f32 %v629_v19, %v615_v18 }
 0x115   : > { %v595_v24 = vadd.f32 %v594_v21, %v491_v59 }
 0x116   : > { %v631_v23 = vadd.f32 %v630_v22, %v616_v20 }
 0x117   : > { %v596_v27 = vadd.f32 %v921_v48, %v595_v24 }
 0x118   : > { %v632_v10 = vadd.f32 %v631_v23, %v617_v25 }
 0x119   : > { %v597_v30 = vadd.f32 %v922_v55, %v596_v27 }
 0x11a   : > { %v633_v32 = vadd.f32 %v632_v10, %v618_v26 }
 0x11b   : > { %v598_v33 = vrot.slane %v597_v30, 4 }
 0x11c   : > { %v634_v28 = vadd.f32 %v633_v32, %v619_v29 }
 0x11d   : > { %v599_v34 = vadd.f32 %v598_v33, %v597_v30 }
 0x11e   : > { %v635_v35 = vrot.slane %v634_v28, 4 }
 0x11f   : > { %v600_v31 = vrot.slane %v599_v34, 2 }
 0x120   : > { %v636_v37 = vadd.f32 %v635_v35, %v634_v28 }
 0x121   : > { %v601_v38 = vadd.f32 %v600_v31, %v599_v34 }
 0x122   : > { %v637_v39 = vrot.slane %v636_v37, 2 }
 0x123   : > { %v602_v42 = vrot.slane %v601_v38, 1 }
 0x124   : > { %v638_v41 = vadd.f32 %v637_v39, %v636_v37 }
 0x125   : > { %v603_v45 = vadd.f32 %v602_v42, %v601_v38 }
 0x126   : > { %v639_v43 = vrot.slane %v638_v41, 1 }
 0x128   : > { %v640_v44 = vadd.f32 %v639_v43, %v638_v41 }
 0x12a   : > { %v645_v46 = vsel %vm644_vm0, %v640_v44, 0.0 }
 0x12b   : > { %v646_v47 = vsel %vm643_vm1, %v603_v45, %v645_v46 }
 0x12c   : > { %647 = vst [vmem:[%s238_s28] sm:$0xff] %v646_v47 }
 0x12d PF: > { %s16_s18 = sadd.s32 1, %s961_s18  }
 0x12e   : > { %p13_p5 = scmp.ge.s32.totalorder %s16_s18, 6  }
 0x130   :  { %15 = sbr.rel (!%p13_p5) target bundleno = 1 (0x1), region = 78 }

// kernel: _lambda_.7
= control target key start
LH: loop header
LB: loop body
LE: loop exit
PB: predicated region body
PF: predicated region fallthrough
CT: control target
= control target key end

     0   :  { %12 = vsyncpa [#allocation3], 0  ;;  %s1194_s0 = inlined_call_operand.vmem [shape: bf16[512,128], index: 0, kind: input, shape index: {}]   ;;  %s1195_s1 = inlined_call_operand.vmem [shape: f32[512,16], index: 1, kind: input, shape index: {}]   ;;  %s1196_s2 = inlined_call_operand.vmem [shape: bf16[16,32], index: 2, kind: input, shape index: {}]   ;;  %s1197_s3 = inlined_call_operand.vmem [shape: f32[1,32], index: 3, kind: input, shape index: {}]   ;;  %s1198_s4 = inlined_call_operand.vmem [shape: f32[1,32], index: 4, kind: input, shape index: {}]   ;;  %s1199_s5 = inlined_call_operand.vmem [shape: f32[1,32], index: 5, kind: input, shape index: {}]   ;;  %s1200_s6 = inlined_call_operand.vmem [shape: f32[1,32], index: 6, kind: input, shape index: {}]   ;;  %s1201_s7 = inlined_call_operand.hbm [shape: f32[512,32], index: 7, kind: output, shape index: {}]  }
   0x1   :  { %14 = vsyncpa [#allocation3 + $0x1], 0  ;;  %s963_s24 = smov 0   ;;  %s965_s25 = smov 0  }
   0x2   :  { %s967_s26 = smov 0   ;;  %s969_s27 = smov 0  }
   0x3 LB: > { %s984_s28 = sadd.s32 4294967295, %s918_s27   ;;  %s718_s29 = sadd.s32 4294967294, %s918_s27   ;;  %s918_s27 = sphi %s969_s27, %s1207_s27   ;;  %s914_s26 = sphi %s967_s26, %s1206_s26   ;;  %s910_s25 = sphi %s965_s25, %s1205_s25   ;;  %s906_s24 = sphi %s963_s24, %s1204_s24  }
   0x4   : > { %s988_s30 = sadd.s32 1, %s918_s27   ;;  %s184_s8 = sadd.s32 1, %s914_s26 }
   0x5   : > { %s181_s9 = ssub.s32 %s918_s27, %s988_s30  ;;  %p194_p0 = scmp.ne.s32.totalorder %s914_s26, %s910_s25 }
   0x6   : > { %p182_p1 = scmp.eq.s32.totalorder %s181_s9, 0  ;;  %p195_p2 = scmp.eq.s32.totalorder %s984_s28, 3 }
   0x7   : > { %p200_p3 = scmp.ne.s32.totalorder %s910_s25, %s906_s24  ;;  %p201_p4 = scmp.eq.s32.totalorder %s718_s29, 3 }
   0x8   : > { %s999_s10 = scalar_select %p182_p1, %s914_s26, %s184_s8  }
   0x9   : > { %p1001_p5 = por %p195_p2, %p194_p0  ;;  %p1005_p6 = por %p201_p4, %p200_p3 }
   0xa   : > { %p721_p7 = scmp.ge.s32.totalorder %s918_s27, 1  ;;  %p252_p8 = scmp.lt.s32.totalorder %s918_s27, 5 }
   0xc   : > { %p253_p9 = pnand %p721_p7, %p252_p8 }
   0xd   : > { %v855_v0 = vld [vmem:[%s1196_s2] sm:$0xff] (!%p253_p9)   ;;  %s723_s15 = sshll.u32 (!%p253_p9), %s984_s28, 4  ;;  %vm335_vm0 = vcmask (!%p253_p9), 130048   ;;  %vm613_vm1 = vcmask (!%p253_p9), 261120   ;;  %s745_s21 = sshll.u32 (!%p253_p9), %s984_s28, 11 }
   0xe   : > { %256 = sbr.rel (%p253_p9) target bundleno = 276 (0x114), region = 48  ;;  %p290_p10 = scmp.lt.s32.totalorder (!%p253_p9), %s723_s15, 63  ;;  %794 = vmatprep.subr.bf16.mxu0 (!%p253_p9), %v855_v0  ;;  %812 = vmatprep.subr.bf16.mxu1 (!%p253_p9), %v855_v0  ;;  %v738_v30 = vld [vmem:[%s1197_s3] ss:$0 sm:$0xff] (!%p253_p9) }
   0xf   : > { %795 = vmatpush3.bf16.msra.mxu0 (!%p253_p9), %v855_v0  ;;  %813 = vmatpush3.bf16.msra.mxu1 (!%p253_p9), %v855_v0  ;;  %v739_v41 = vld [vmem:[%s1198_s4] ss:$0 sm:$0xff] (!%p253_p9)  ;;  %s1137_s29 = scalar_lea.hbm (!%p253_p9), %s1201_s7, %s745_s21  ;;  %s920_s13 = smov (!%p253_p9), [#allocation2]  }
  0x10   : > { %s860_s14 = sshll.u32 (!%p253_p9), %s920_s13, 4  ;;  %s861_s14 = int_to_ptr.vmem [resolvable:$false] %s860_s14 }
  0x15   : > { %s1209_s15 = smov (!%p290_p10, %s723_s15), 63 }
  0x16   : > { %s726_s16 = sshll.u32 %s1209_s15, 3  ;;  %s724_s20 = sshll.u32 %s1209_s15, 2 }
  0x17   : > { %s299_s19 = scalar_lea.vmem %s1195_s1, %s726_s16  ;;  %s293_s23 = scalar_lea.vmem %s1194_s0, %s724_s20 }
  0x18   : > { %v303_v1 = vld [vmem:[%s299_s19] sm:$0xff]  ;;  %v304_v2 = vld [vmem:[%s299_s19 + $0x8] sm:$0xff]  ;;  %v305_v6 = vld [vmem:[%s299_s19 + $0x10] sm:$0xff]  ;;  %s286_s16 = sand.u32 1, %s910_s25   ;;  %s862_s15 = scalar_lea.vmem %s861_s14, 4096 }
  0x19   : > { %v311_v3 = vld [vmem:[%s299_s19 + $0x40] sm:$0xff]  ;;  %v319_v4 = vpack.c.bf16 %v304_v2, %v303_v1  ;;  %v312_v5 = vld [vmem:[%s299_s19 + $0x48] sm:$0xff]  ;;  %v306_v7 = vld [vmem:[%s299_s19 + $0x18] sm:$0xff]  ;;  %s1153_s8 = scalar_lea.sflag [#allocation3], %s286_s16 }
  0x1a   : > { %v323_v8 = vpack.c.bf16 %v312_v5, %v311_v3  ;;  %v320_v9 = vpack.c.bf16 %v306_v7, %v305_v6  ;;  %v313_v10 = vld [vmem:[%s299_s19 + $0x50] sm:$0xff]  ;;  %v314_v11 = vld [vmem:[%s299_s19 + $0x58] sm:$0xff]  ;;  %v307_v12 = vld [vmem:[%s299_s19 + $0x20] sm:$0xff] }
  0x1b   : > { %796 = vmatprep.mubr.msk.bf16.mxu0 %vm335_vm0, %v319_v4  ;;  %v324_v13 = vpack.c.bf16 %v314_v11, %v313_v10  ;;  %v308_v14 = vld [vmem:[%s299_s19 + $0x28] sm:$0xff]  ;;  %v315_v15 = vld [vmem:[%s299_s19 + $0x60] sm:$0xff]  ;;  %v309_v19 = vld [vmem:[%s299_s19 + $0x30] sm:$0xff] }
  0x1c   : > { %v316_v16 = vld [vmem:[%s299_s19 + $0x68] sm:$0xff]  ;;  %804 = vmatprep.mubr.msk.bf16.mxu1 %vm335_vm0, %v323_v8  ;;  %797 = vmatmul.mubr.msk.bf16.vlgmr.msra.gmra.mrb[0].mxu0 %vm335_vm0, %v320_v9  ;;  %v321_v17 = vpack.c.bf16 %v308_v14, %v307_v12  ;;  %v310_v20 = vld [vmem:[%s299_s19 + $0x38] sm:$0xff]  ;;  %v317_v21 = vld [vmem:[%s299_s19 + $0x70] sm:$0xff] }
  0x1d   : > { %v325_v18 = vpack.c.bf16 %v316_v16, %v315_v15  ;;  %805 = vmatmul.mubr.msk.bf16.vlgmr.msra.gmra.mrb[0].mxu1 %vm335_vm0, %v324_v13  ;;  %v318_v22 = vld [vmem:[%s299_s19 + $0x78] sm:$0xff]  ;;  %v322_v23 = vpack.c.bf16 %v310_v20, %v309_v19  ;;  %v778_v25 = vld [vmem:[%s293_s23 + $0x8] sm:$0xff]   ;;  %v747_v28 = vld [vmem:[%s293_s23] sm:$0xff]   ;;  %s722_s19 = sshll.u32 %s286_s16, 7 }
  0x1e   : > { %800 = vmatprep.mubr.msk.bf16.mxu0 %vm335_vm0, %v321_v17  ;;  %v326_v24 = vpack.c.bf16 %v318_v22, %v317_v21  ;;  %v782_v26 = vld [vmem:[%s293_s23 + $0x28] sm:$0xff]   ;;  %v752_v27 = vunpack.c.l.bf16 %v778_v25  ;;  %v781_v29 = vld [vmem:[%s293_s23 + $0x20] sm:$0xff]   ;;  %v780_v32 = vld [vmem:[%s293_s23 + $0x18] sm:$0xff]   ;;  %v748_v34 = vunpack.c.l.bf16 %v747_v28  ;;  %v753_v39 = vunpack.c.h.bf16 %v778_v25  ;;  %s1084_s20 = scalar_lea.vmem [#allocation2], %s722_s19 }
  0x1f   : > { %808 = vmatprep.mubr.msk.bf16.mxu1 %vm335_vm0, %v325_v18  ;;  %v768_v31 = vunpack.c.l.bf16 %v782_v26  ;;  %v784_v33 = vld [vmem:[%s293_s23 + $0x38] sm:$0xff]   ;;  %v764_v35 = vunpack.c.l.bf16 %v781_v29  ;;  %v779_v36 = vld [vmem:[%s293_s23 + $0x10] sm:$0xff]   ;;  %v769_v40 = vunpack.c.h.bf16 %v782_v26  ;;  %v749_v42 = vunpack.c.h.bf16 %v747_v28  ;;  %v1042_v2 = vld [vmem:[%s1199_s5] ss:$0 sm:$0xff]  ;;  %s644_s22 = sshll.u32 %s1084_s20, 4  ;;  %s1139_s22 = int_to_ptr.vmem [resolvable:$true] %s644_s22 }
  0x20   : > { %v783_v37 = vld [vmem:[%s293_s23 + $0x30] sm:$0xff]   ;;  %v544_v38 = vmul.f32 %v752_v27, %v738_v30  ;;  %v765_v43 = vunpack.c.h.bf16 %v781_v29  ;;  %v760_v44 = vunpack.c.l.bf16 %v780_v32  ;;  %v776_v45 = vunpack.c.l.bf16 %v784_v33  ;;  %v1048_v11 = vld [vmem:[%s1200_s6] ss:$0 sm:$0xff]  ;;  %s856_s9 = scalar_lea.vmem %s1139_s22, 2048  ;;  %p863_p0 = scmp.lt.s32.totalorder %s1139_s22, %s861_s14 }
  0x21   : > { %v552_v46 = vmul.f32 %v768_v31, %v738_v30  ;;  %v756_v47 = vunpack.c.l.bf16 %v779_v36  ;;  %v772_v48 = vunpack.c.l.bf16 %v783_v37  ;;  %v761_v49 = vunpack.c.h.bf16 %v780_v32  ;;  %p857_p11 = scmp.ne.s32.totalorder %s1139_s22, %s856_s9  ;;  %p864_p1 = scmp.lt.s32.totalorder %s862_s15, %s856_s9 }
  0x22   : > { %v542_v50 = vmul.f32 %v748_v34, %v738_v30  ;;  %v550_v51 = vmul.f32 %v764_v35, %v738_v30  ;;  %v777_v52 = vunpack.c.h.bf16 %v784_v33  ;;  %v757_v53 = vunpack.c.h.bf16 %v779_v36 }
  0x23   : > { %v567_v54 = vadd.f32 %v739_v41, %v544_v38  ;;  %v545_v55 = vmul.f32 %v753_v39, %v738_v30  ;;  %v553_v56 = vmul.f32 %v769_v40, %v738_v30  ;;  %v773_v57 = vunpack.c.h.bf16 %v783_v37  ;;  %p858_p12 = pnand %p857_p11, %p1001_p5  ;;  %p865_p2 = por %p864_p1, %p863_p0 }
  0x24   : > { %801 = vmatmul.mubr.msk.bf16.gmra.mrb[4].mxu0 %vm335_vm0, %v322_v23  ;;  %v543_v58 = vmul.f32 %v749_v42, %v738_v30  ;;  %v551_v59 = vmul.f32 %v765_v43, %v738_v30  ;;  %v548_v60 = vmul.f32 %v760_v44, %v738_v30  ;;  %v556_v61 = vmul.f32 %v776_v45, %v738_v30 }
  0x25   : > { %809 = vmatmul.mubr.msk.bf16.gmra.mrb[4].mxu1 %vm335_vm0, %v326_v24  ;;  %v575_v62 = vadd.f32 %v739_v41, %v552_v46  ;;  %v546_v63 = vmul.f32 %v756_v47, %v738_v30  ;;  %v554_v0 = vmul.f32 %v772_v48, %v738_v30  ;;  %v549_v1 = vmul.f32 %v761_v49, %v738_v30  ;;  %p859_p13 = pneg %p858_p12 }
  0x26   : > { %v565_v3 = vadd.f32 %v739_v41, %v542_v50  ;;  %v573_v4 = vadd.f32 %v739_v41, %v550_v51  ;;  %v557_v5 = vmul.f32 %v777_v52, %v738_v30  ;;  %v547_v6 = vmul.f32 %v757_v53, %v738_v30 }
  0x27   : > { %v568_v7 = vadd.f32 %v739_v41, %v545_v55  ;;  %v576_v8 = vadd.f32 %v739_v41, %v553_v56  ;;  %v555_v9 = vmul.f32 %v773_v57, %v738_v30  ;;  %v566_v12 = vadd.f32 %v739_v41, %v543_v58  ;;  %p866_p3 = pnand %p865_p2, %p859_p13 }
  0x28   : > { %v574_v13 = vadd.f32 %v739_v41, %v551_v59  ;;  %v1050_v14 = vadd.f32 %v739_v41, %v548_v60  ;;  %v1052_v15 = vadd.f32 %v739_v41, %v556_v61  ;;  %v1055_v19 = vadd.f32 %v739_v41, %v546_v63 }
  0x29   : > { %v1057_v20 = vadd.f32 %v739_v41, %v554_v0  ;;  %v1059_v21 = vadd.f32 %v739_v41, %v549_v1  ;;  %v1063_v26 = vadd.f32 %v739_v41, %v557_v5  ;;  %v1065_v27 = vadd.f32 %v739_v41, %v547_v6 }
  0x2a   : > { %v1072_v33 = vadd.f32 %v739_v41, %v555_v9 }
  0xef   : > { %v798_v10 = vpop.f32.mrb[0].mxu0 }
  0xf0   : > { %v466_v16 = vmul.f32 %v798_v10, %v1042_v2  ;;  %v806_v17 = vpop.f32.mrb[0].mxu1  ;;  %v394_v18 = vpop.f32.mrb[1].mxu0 }
  0xf1   : > { %v474_v22 = vmul.f32 %v806_v17, %v1042_v2  ;;  %v464_v23 = vmul.f32 %v1042_v2, %v394_v18  ;;  %v426_v24 = vpop.f32.mrb[1].mxu1  ;;  %v799_v25 = vpop.f32.mrb[2].mxu0 }
  0xf2   : > { %v489_v28 = vadd.f32 %v1048_v11, %v466_v16  ;;  %v472_v29 = vmul.f32 %v1042_v2, %v426_v24  ;;  %v467_v30 = vmul.f32 %v799_v25, %v1042_v2  ;;  %v807_v31 = vpop.f32.mrb[2].mxu1  ;;  %v397_v32 = vpop.f32.mrb[3].mxu0 }
  0xf3   : > { %v497_v34 = vadd.f32 %v1048_v11, %v474_v22  ;;  %v487_v35 = vadd.f32 %v1048_v11, %v464_v23  ;;  %v475_v36 = vmul.f32 %v807_v31, %v1042_v2  ;;  %v465_v37 = vmul.f32 %v1042_v2, %v397_v32  ;;  %v429_v38 = vpop.f32.mrb[3].mxu1 }
  0xf4   : > { %v583_v39 = vadd.f32 %v567_v54, %v489_v28  ;;  %v495_v40 = vadd.f32 %v1048_v11, %v472_v29  ;;  %v490_v42 = vadd.f32 %v1048_v11, %v467_v30  ;;  %v473_v43 = vmul.f32 %v1042_v2, %v429_v38 }
  0xf5   : > { %v591_v44 = vadd.f32 %v575_v62, %v497_v34  ;;  %v581_v45 = vadd.f32 %v565_v3, %v487_v35  ;;  %v498_v41 = vadd.f32 %v1048_v11, %v475_v36  ;;  %v488_v46 = vadd.f32 %v1048_v11, %v465_v37 }
  0xf6   : > { %v599_v47 = vmax.f32 %v583_v39, 0.0  ;;  %v589_v48 = vadd.f32 %v573_v4, %v495_v40  ;;  %v584_v49 = vadd.f32 %v568_v7, %v490_v42  ;;  %v496_v50 = vadd.f32 %v1048_v11, %v473_v43 }
  0xf7   : > { %v607_v51 = vmax.f32 %v591_v44, 0.0  ;;  %v597_v52 = vmax.f32 %v581_v45, 0.0  ;;  %v592_v53 = vadd.f32 %v576_v8, %v498_v41  ;;  %v582_v54 = vadd.f32 %v566_v12, %v488_v46  ;;  %v802_v55 = vpop.f32.mrb[4].mxu0 }
  0xf8   : > { %616 = vst.msk [vmem:[%s1084_s20 + $0x10] sm:$0xff] %vm613_vm1, %v599_v47  ;;  %v605_v56 = vmax.f32 %v589_v48, 0.0  ;;  %v600_v57 = vmax.f32 %v584_v49, 0.0  ;;  %v590_v58 = vadd.f32 %v574_v13, %v496_v50  ;;  %v470_v59 = vmul.f32 %v802_v55, %v1042_v2  ;;  %v810_v60 = vpop.f32.mrb[4].mxu1  ;;  %v410_v61 = vpop.f32.mrb[5].mxu0 }
  0xf9   : > { %624 = vst.msk [vmem:[%s1084_s20 + $0x50] sm:$0xff] %vm613_vm1, %v607_v51  ;;  %614 = vst.msk [vmem:[%s1084_s20] sm:$0xff] %vm613_vm1, %v597_v52  ;;  %v608_v62 = vmax.f32 %v592_v53, 0.0  ;;  %v598_v63 = vmax.f32 %v582_v54, 0.0  ;;  %v478_v0 = vmul.f32 %v810_v60, %v1042_v2  ;;  %v468_v1 = vmul.f32 %v1042_v2, %v410_v61  ;;  %v442_v3 = vpop.f32.mrb[5].mxu1  ;;  %v803_v4 = vpop.f32.mrb[6].mxu0 }
  0xfa   : > { %622 = vst.msk [vmem:[%s1084_s20 + $0x40] sm:$0xff] %vm613_vm1, %v605_v56  ;;  %617 = vst.msk [vmem:[%s1084_s20 + $0x18] sm:$0xff] %vm613_vm1, %v600_v57  ;;  %v606_v5 = vmax.f32 %v590_v58, 0.0  ;;  %v493_v6 = vadd.f32 %v1048_v11, %v470_v59  ;;  %v476_v7 = vmul.f32 %v1042_v2, %v442_v3  ;;  %v471_v8 = vmul.f32 %v803_v4, %v1042_v2  ;;  %v811_v9 = vpop.f32.mrb[6].mxu1  ;;  %v413_v10 = vpop.f32.mrb[7].mxu0 }
  0xfb   : > { %625 = vst.msk [vmem:[%s1084_s20 + $0x58] sm:$0xff] %vm613_vm1, %v608_v62  ;;  %615 = vst.msk [vmem:[%s1084_s20 + $0x8] sm:$0xff] %vm613_vm1, %v598_v63  ;;  %v501_v12 = vadd.f32 %v1048_v11, %v478_v0  ;;  %v491_v13 = vadd.f32 %v1048_v11, %v468_v1  ;;  %v479_v16 = vmul.f32 %v811_v9, %v1042_v2  ;;  %v445_v18 = vpop.f32.mrb[7].mxu1 }
  0xfc   : > { %v469_v17 = vmul.f32 %v1042_v2, %v413_v10  ;;  %623 = vst.msk [vmem:[%s1084_s20 + $0x48] sm:$0xff] %vm613_vm1, %v606_v5  ;;  %v587_v22 = vadd.f32 %v1050_v14, %v493_v6  ;;  %v499_v23 = vadd.f32 %v1048_v11, %v476_v7  ;;  %v494_v24 = vadd.f32 %v1048_v11, %v471_v8 }
  0xfd   : > { %v477_v25 = vmul.f32 %v1042_v2, %v445_v18  ;;  %v595_v28 = vadd.f32 %v1052_v15, %v501_v12  ;;  %v585_v29 = vadd.f32 %v1055_v19, %v491_v13  ;;  %v502_v30 = vadd.f32 %v1048_v11, %v479_v16 }
  0xfe   : > { %v492_v31 = vadd.f32 %v1048_v11, %v469_v17  ;;  %v603_v32 = vmax.f32 %v587_v22, 0.0  ;;  %v593_v14 = vadd.f32 %v1057_v20, %v499_v23  ;;  %v588_v34 = vadd.f32 %v1059_v21, %v494_v24 }
  0xff   : > { %v500_v35 = vadd.f32 %v1048_v11, %v477_v25  ;;  %v611_v2 = vmax.f32 %v595_v28, 0.0  ;;  %v601_v15 = vmax.f32 %v585_v29, 0.0  ;;  %v596_v19 = vadd.f32 %v1063_v26, %v502_v30 }
 0x100   : > { %v586_v36 = vadd.f32 %v1065_v27, %v492_v31  ;;  %620 = vst.msk [vmem:[%s1084_s20 + $0x30] sm:$0xff] %vm613_vm1, %v603_v32  ;;  %v609_v20 = vmax.f32 %v593_v14, 0.0  ;;  %v604_v21 = vmax.f32 %v588_v34, 0.0 }
 0x101   : > { %v594_v11 = vadd.f32 %v1072_v33, %v500_v35  ;;  %628 = vst.msk [vmem:[%s1084_s20 + $0x70] sm:$0xff] %vm613_vm1, %v611_v2  ;;  %618 = vst.msk [vmem:[%s1084_s20 + $0x20] sm:$0xff] %vm613_vm1, %v601_v15  ;;  %v612_v37 = vmax.f32 %v596_v19, 0.0 }
 0x102   : > { %v602_v38 = vmax.f32 %v586_v36, 0.0  ;;  %626 = vst.msk [vmem:[%s1084_s20 + $0x60] sm:$0xff] %vm613_vm1, %v609_v20  ;;  %621 = vst.msk [vmem:[%s1084_s20 + $0x38] sm:$0xff] %vm613_vm1, %v604_v21 }
 0x103   : > { %v610_v26 = vmax.f32 %v594_v11, 0.0  ;;  %629 = vst.msk [vmem:[%s1084_s20 + $0x78] sm:$0xff] %vm613_vm1, %v612_v37 }
 0x104   : > { %619 = vst.msk [vmem:[%s1084_s20 + $0x28] sm:$0xff] %vm613_vm1, %v602_v38 }
 0x105   : > { %627 = vst.msk [vmem:[%s1084_s20 + $0x68] sm:$0xff] %vm613_vm1, %v610_v26 }
 0x106   : > { %869 = shalt.err (!%p866_p3)
}
 0x107   : > { %s870_s16 = scalar_lea.hbm %s1137_s29, 2048  ;;  %s874_s19 = scalar_lea.hbm %s1201_s7, 8192 }
 0x108   : > { %p871_p4 = scmp.ne.s32.totalorder %s1137_s29, %s870_s16  ;;  %p875_p9 = scmp.lt.u32.totalorder %s1137_s29, %s1201_s7 }
 0x109   : > { %p876_p10 = scmp.lt.u32.totalorder %s874_s19, %s870_s16  ;;  %p878_p12 = scmp.lt.u32.totalorder %s870_s16, %s1137_s29 }
 0x10a   : > { %p872_p7 = pnand %p871_p4, %p1001_p5 }
 0x10b   : > { %p877_p11 = por %p876_p10, %p875_p9 }
 0x10c   : > { %p873_p8 = pneg %p872_p7 }
 0x10d   : > { %p879_p13 = por %p878_p12, %p877_p11 }
 0x10f   : > { %p880_p0 = pnand %p879_p13, %p873_p8 }
 0x111   : > { %883 = shalt.err (!%p880_p0)
}
 0x112   : > { %s921_s28 = smov 128   ;;  %s922_s23 = smov 8  }
 0x113   : > { %814 = dma.vmem_to_hbm [thread:$0]  (%p1001_p5), %s1139_s22, 2048, %s1137_s29, %s1153_s8, %s921_s28, %s921_s28, %s922_s23  }
 0x114 PF: > { %p820_p1 = scmp.ge.s32.totalorder %s918_s27, 2  ;;  %s659_s9 = sand.u32 1, %s906_s24  }
 0x115   : > { %s660_s13 = scalar_lea.sflag [#allocation3], %s659_s9 }
 0x116   : > { %p817_p2 = pnand %p820_p1, %p1005_p6 }
 0x118   : > { %901 = dma.done.wait (!%p817_p2), %s660_s13, 2048  }
 0x119   : > { %903 = vsyncadd (!%p817_p2), %s660_s13, 4294965248  ;;  %p17_p3 = scmp.ge.s32.totalorder %s988_s30, 6   ;;  %s1204_s24 = smov %s910_s25 }
 0x11a   : > { %s1205_s25 = smov %s914_s26  ;;  %s1206_s26 = smov %s999_s10 }
 0x11b   : > { %s1207_s27 = smov %s988_s30  ;;  %19 = sbr.rel (!%p17_p3) target bundleno = 3 (0x3), region = 86 }
 0x122   :  { %665 = vsyncpa [#allocation3], 1 }
 0x123   :  { %667 = vsyncpa [#allocation3 + $0x1], 1 }

// kernel: _lambda_.5
= control target key start
LH: loop header
LB: loop body
LE: loop exit
PB: predicated region body
PF: predicated region fallthrough
CT: control target
= control target key end

     0   :  { %s6990_s18 = smov 0   ;;  %s8178_s0 = inlined_call_operand.vmem [shape: bf16[512,128], index: 0, kind: input, shape index: {}]   ;;  %s8179_s1 = inlined_call_operand.vmem [shape: f32[1,128], index: 1, kind: input, shape index: {}]   ;;  %s8180_s2 = inlined_call_operand.vmem [shape: f32[1,128], index: 2, kind: input, shape index: {}]   ;;  %s8181_s3 = inlined_call_operand.vmem [shape: bf16[9,128,128], index: 3, kind: input, shape index: {}]   ;;  %s8182_s4 = inlined_call_operand.vmem [shape: bf16[512,128], index: 4, kind: output, shape index: {0}]   ;;  %s8183_s5 = inlined_call_operand.vmem [shape: f32[16,128], index: 5, kind: output, shape index: {1}]  }
   0x1 LB: > { %s6996_s19 = sadd.s32 4294967295, %s6957_s18   ;;  %p5450_p0 = scmp.ge.s32.totalorder %s6957_s18, 1  ;;  %s6957_s18 = sphi %s6990_s18, %s16_s18  }
   0x2   : > { %p191_p1 = scmp.lt.s32.totalorder %s6957_s18, 3 }
   0x4   : > { %p192_p2 = pnand %p5450_p0, %p191_p1 }
   0x5   : > { %v6827_v0 = vld [vmem:[%s8181_s3 + $0x40] sm:$0xff] (!%p192_p2)   ;;  %v6959_v2 = vmov (!%p192_p2), 0   ;;  %v6829_v3 = vld [vmem:[%s8181_s3 + $0x48] sm:$0xff] (!%p192_p2)   ;;  %s5451_s26 = sshll.u32 (!%p192_p2), %s6996_s19, 5  ;;  %v6831_v5 = vld [vmem:[%s8181_s3 + $0x50] sm:$0xff] (!%p192_p2)   ;;  %vm1002_vm0 = vcmask (!%p192_p2), 1043456  }
   0x6   : > { %195 = sbr.rel (%p192_p2) target bundleno = 618 (0x26a), region = 36  ;;  %v6828_v1 = vld [vmem:[%s8181_s3 + $0x100] sm:$0xff] (!%p192_p2)   ;;  %511 = vst [vmem:[#allocation2] sm:$0xff] (!%p192_p2), %v6959_v2  ;;  %512 = vst [vmem:[#allocation2 + $0x8] sm:$0xff] (!%p192_p2), %v6959_v2  ;;  %6114 = vmatprep.subr.bf16.mxu1 (!%p192_p2), %v6827_v0  ;;  %v6830_v4 = vld [vmem:[%s8181_s3 + $0x108] sm:$0xff] (!%p192_p2)   ;;  %p224_p3 = scmp.lt.s32.totalorder (!%p192_p2), %s5451_s26, 63 }
   0x7   : > { %514 = vst [vmem:[#allocation2 + $0x110] sm:$0xff] (!%p192_p2), %v6959_v2  ;;  %515 = vst [vmem:[#allocation2 + $0x118] sm:$0xff] (!%p192_p2), %v6959_v2  ;;  %6306 = vmatprep.subr.bf16.mxu0 (!%p192_p2), %v6828_v1  ;;  %6115 = vmatpush3.bf16.msra.mxu1 (!%p192_p2), %v6827_v0  ;;  %v6832_v6 = vld [vmem:[%s8181_s3 + $0x110] sm:$0xff] (!%p192_p2)   ;;  %v6833_v7 = vld [vmem:[%s8181_s3 + $0x58] sm:$0xff] (!%p192_p2)   ;;  %vm567_vm1 = vcmask (!%p192_p2), 1044484   ;;  %vm516_vm5 = vcmask (!%p192_p2), 1043459  }
   0x8   : > { %6307 = vmatpush3.bf16.msra.mxu0 (!%p192_p2), %v6828_v1  ;;  %6116 = vmatprep.subr.bf16.mxu1 (!%p192_p2), %v6829_v3  ;;  %v6834_v8 = vld [vmem:[%s8181_s3 + $0x118] sm:$0xff] (!%p192_p2)   ;;  %v6835_v9 = vld [vmem:[%s8181_s3 + $0x60] sm:$0xff] (!%p192_p2)   ;;  %v6837_v11 = vld [vmem:[%s8181_s3 + $0x68] sm:$0xff] (!%p192_p2)   ;;  %vm568_vm2 = vsmask.f32 (!%p192_p2), 4352  ;;  %p235_p4 = scmp.lt.s32.totalorder (!%p192_p2), %s6996_s19, 1 }
   0x9   : > { %6308 = vmatprep.subr.bf16.mxu0 (!%p192_p2), %v6830_v4  ;;  %v6836_v10 = vld [vmem:[%s8181_s3 + $0x120] sm:$0xff] (!%p192_p2)   ;;  %v6838_v12 = vld [vmem:[%s8181_s3 + $0x128] sm:$0xff] (!%p192_p2)   ;;  %v6839_v22 = vld [vmem:[%s8181_s3 + $0x70] sm:$0xff] (!%p192_p2)   ;;  %vm1518_vm4 = vsmask.f32 (!%p192_p2), 3328 }
   0xa   : > { %v7051_v20 = vld [vmem:[%s8179_s1] ss:$0 sm:$0xff] (!%p192_p2)  ;;  %v6840_v28 = vld [vmem:[%s8181_s3 + $0x130] sm:$0xff] (!%p192_p2)   ;;  %v6841_v45 = vld [vmem:[%s8181_s3 + $0x78] sm:$0xff] (!%p192_p2)   ;;  %vm517_vm6 = vsmask.f32 (!%p192_p2), 7950 }
   0xb   : > { %6117 = vmatpush3.bf16.msra.mxu1 (!%p192_p2), %v6829_v3  ;;  %v7056_v21 = vld [vmem:[%s8180_s2] ss:$0 sm:$0xff] (!%p192_p2)  ;;  %v6842_v50 = vld [vmem:[%s8181_s3 + $0x138] sm:$0xff] (!%p192_p2)   ;;  %vm7117_vm3 = vmand (!%p192_p2), %vm567_vm1, %vm568_vm2 }
   0xc   : > { %6309 = vmatpush3.bf16.msra.mxu0 (!%p192_p2), %v6830_v4  ;;  %6118 = vmatprep.subr.bf16.mxu1 (!%p192_p2), %v6831_v5  ;;  %v7096_v62 = vld [vmem:[%s8181_s3] sm:$0xff] (!%p192_p2)   ;;  %vm7482_vm7 = vmand (!%p192_p2), %vm516_vm5, %vm517_vm6 }
   0xd   : > { %s8189_s26 = smov (!%p224_p3, %s5451_s26), 63  ;;  %6310 = vmatprep.subr.bf16.mxu0 %v6832_v6  ;;  %v619_v13 = vld [vmem:[#allocation2 + $0x8] sm:$0xf]  ;;  %v954_v14 = vld [vmem:[#allocation2] sm:$0xf0]  ;;  %s8191_s19 = smov (!%p235_p4, %s6996_s19), 1 }
   0xe   : > { %s5452_s12 = sshll.u32 %s8189_s26, 2  ;;  %v1003_v16 = vrot.slane %v954_v14, 4  ;;  %v1004_v17 = vrot.slane %v619_v13, 4  ;;  %v659_v23 = vshrl.u32 %v619_v13, 16  ;;  %v662_v31 = vshll.u32 %v619_v13, 16  ;;  %v7104_v3 = vld [vmem:[%s8181_s3 + $0x140] sm:$0xff]  }
   0xf   : > { %6119 = vmatpush3.bf16.msra.mxu1 %v6831_v5  ;;  %s7039_s21 = scalar_lea.vmem %s8178_s0, %s5452_s12  ;;  %s8148_s29 = scalar_lea.vmem %s8182_s4, %s5452_s12 }
  0x10   : > { %6311 = vmatpush3.bf16.msra.mxu0 %v6832_v6  ;;  %6120 = vmatprep.subr.bf16.mxu1 %v6833_v7  ;;  %v5725_v15 = vld [vmem:[%s7039_s21] sm:$0xff]   ;;  %v1005_v24 = vsel %vm1002_vm0, %v1003_v16, %v1004_v17  ;;  %v5868_v27 = vld [vmem:[%s7039_s21 + $0x8] sm:$0xff]   ;;  %v5869_v34 = vld [vmem:[%s7039_s21 + $0x10] sm:$0xff]   ;;  %v7071_v35 = vrot.slane %v659_v23, 3  ;;  %v7082_v49 = vrot.slane %v662_v31, 4  ;;  %s5455_s26 = sshll.u32 %s8191_s19, 3 }
  0x11   : > { %6312 = vmatprep.subr.bf16.mxu0 %v6834_v8  ;;  %v5726_v18 = vunpack.c.l.bf16 %v5725_v15  ;;  %v5727_v19 = vunpack.c.h.bf16 %v5725_v15  ;;  %v5730_v29 = vunpack.c.l.bf16 %v5868_v27  ;;  %v5731_v30 = vunpack.c.h.bf16 %v5868_v27  ;;  %6130 = vmatprep.mubr.bf16.mxu1 %v1005_v24  ;;  %v5870_v40 = vld [vmem:[%s7039_s21 + $0x18] sm:$0xff]   ;;  %v5871_v55 = vld [vmem:[%s7039_s21 + $0x20] sm:$0xff]   ;;  %v5872_v60 = vld [vmem:[%s7039_s21 + $0x28] sm:$0xff]  }
  0x12   : > { %v5734_v38 = vunpack.c.l.bf16 %v5869_v34  ;;  %v5735_v39 = vunpack.c.h.bf16 %v5869_v34  ;;  %v5738_v43 = vunpack.c.l.bf16 %v5870_v40  ;;  %v5739_v44 = vunpack.c.h.bf16 %v5870_v40 }
  0x13   : > { %6121 = vmatpush3.bf16.msra.mxu1 %v6833_v7  ;;  %v311_v25 = vmul.f32 %v5726_v18, %v7051_v20  ;;  %v312_v26 = vmul.f32 %v5727_v19, %v7051_v20  ;;  %v313_v36 = vmul.f32 %v5730_v29, %v7051_v20  ;;  %v314_v37 = vmul.f32 %v5731_v30, %v7051_v20 }
  0x14   : > { %6313 = vmatpush3.bf16.msra.mxu0 %v6834_v8  ;;  %6122 = vmatprep.subr.bf16.mxu1 %v6835_v9  ;;  %v315_v48 = vmul.f32 %v5734_v38, %v7051_v20  ;;  %v316_v52 = vmul.f32 %v5735_v39, %v7051_v20  ;;  %v317_v53 = vmul.f32 %v5738_v43, %v7051_v20  ;;  %v5742_v59 = vunpack.c.l.bf16 %v5871_v55 }
  0x15   : > { %6314 = vmatprep.subr.bf16.mxu0 %v6836_v10  ;;  %v350_v32 = vadd.f32 %v7056_v21, %v311_v25  ;;  %v351_v33 = vadd.f32 %v7056_v21, %v312_v26  ;;  %v352_v46 = vadd.f32 %v7056_v21, %v313_v36  ;;  %v353_v47 = vadd.f32 %v7056_v21, %v314_v37 }
  0x16   : > { %v318_v54 = vmul.f32 %v5739_v44, %v7051_v20  ;;  %v354_v58 = vadd.f32 %v7056_v21, %v315_v48  ;;  %v355_v63 = vadd.f32 %v7056_v21, %v316_v52  ;;  %v356_v0 = vadd.f32 %v7056_v21, %v317_v53 }
  0x17   : > { %6123 = vmatpush3.bf16.msra.mxu1 %v6835_v9  ;;  %v382_v41 = vmax.f32 %v350_v32, 0.0  ;;  %v383_v42 = vmax.f32 %v351_v33, 0.0  ;;  %v384_v56 = vmax.f32 %v352_v46, 0.0  ;;  %v385_v57 = vmax.f32 %v353_v47, 0.0  ;;  %v570_v32 = vld [vmem:[#allocation2 + $0x18] sm:$0x10] }
  0x18   : > { %6315 = vmatpush3.bf16.msra.mxu0 %v6836_v10  ;;  %6124 = vmatprep.subr.bf16.mxu1 %v6837_v11  ;;  %v357_v1 = vadd.f32 %v7056_v21, %v318_v54  ;;  %v386_v4 = vmax.f32 %v354_v58, 0.0  ;;  %v5743_v5 = vunpack.c.h.bf16 %v5871_v55  ;;  %v319_v6 = vmul.f32 %v5742_v59, %v7051_v20  ;;  %v7127_v33 = vld [vmem:[%s7039_s21 + $0x40] sm:$0xff]  }
  0x19   : > { %6316 = vmatprep.subr.bf16.mxu0 %v6838_v12  ;;  %v414_v51 = vpack.c.bf16 %v383_v42, %v382_v41  ;;  %v415_v2 = vpack.c.bf16 %v385_v57, %v384_v56  ;;  %v387_v7 = vmax.f32 %v355_v63, 0.0  ;;  %v388_v8 = vmax.f32 %v356_v0, 0.0  ;;  %v6846_v56 = vld [vmem:[%s8181_s3 + $0x8] sm:$0xff]  }
  0x1a   : > { %v389_v9 = vmax.f32 %v357_v1, 0.0  ;;  %v5746_v10 = vunpack.c.l.bf16 %v5872_v60  ;;  %v320_v13 = vmul.f32 %v5743_v5, %v7051_v20  ;;  %v358_v14 = vadd.f32 %v7056_v21, %v319_v6 }
  0x1b   : > { %6125 = vmatpush3.bf16.msra.mxu1 %v6837_v11  ;;  %v446_v61 = vrot.slane %v414_v51, 4  ;;  %v5873_v11 = vld [vmem:[%s7039_s21 + $0x30] sm:$0xff]   ;;  %v5747_v15 = vunpack.c.h.bf16 %v5872_v60  ;;  %v416_v16 = vpack.c.bf16 %v387_v7, %v386_v4  ;;  %v571_v42 = vsel %vm7117_vm3, 0, %v570_v32 }
  0x1c   : > { %6317 = vmatpush3.bf16.msra.mxu0 %v6838_v12  ;;  %6126 = vmatprep.subr.bf16.mxu1 %v6839_v22  ;;  %v447_v12 = vrot.slane %v415_v2, 4  ;;  %v417_v17 = vpack.c.bf16 %v389_v9, %v388_v8  ;;  %v321_v18 = vmul.f32 %v5746_v10, %v7051_v20  ;;  %v5750_v19 = vunpack.c.l.bf16 %v5873_v11  ;;  %572 = vst [vmem:[#allocation2 + $0x18] sm:$0x10] %v571_v42  ;;  %v6845_v9 = vld [vmem:[%s8181_s3 + $0x148] sm:$0xff]  }
  0x1d   : > { %6318 = vmatprep.subr.bf16.mxu0 %v6840_v28  ;;  %479 = vst [vmem:[#allocation2 + $0x18] ss:$-4 sps:$4 sm:$0xff] %v446_v61   ;;  %v359_v23 = vadd.f32 %v7056_v21, %v320_v13  ;;  %v390_v24 = vmax.f32 %v358_v14, 0.0  ;;  %v322_v25 = vmul.f32 %v5747_v15, %v7051_v20  ;;  %v5751_v26 = vunpack.c.h.bf16 %v5873_v11 }
  0x1e   : > { %481 = vst [vmem:[#allocation2 + $0x28] ss:$-4 sps:$4 sm:$0xff] %v447_v12   ;;  %v449_v29 = vrot.slane %v417_v17, 4  ;;  %v7123_v30 = vadd.f32 %v7056_v21, %v321_v18  ;;  %v323_v31 = vmul.f32 %v5750_v19, %v7051_v20 }
  0x1f   : > { %6127 = vmatpush3.bf16.msra.mxu1 %v6839_v22  ;;  %v5874_v22 = vld [vmem:[%s7039_s21 + $0x38] sm:$0xff]   ;;  %v391_v34 = vmax.f32 %v359_v23, 0.0  ;;  %v7130_v36 = vadd.f32 %v7056_v21, %v322_v25  ;;  %v324_v37 = vmul.f32 %v5751_v26, %v7051_v20 }
  0x20   : > { %6319 = vmatpush3.bf16.msra.mxu0 %v6840_v28  ;;  %6128 = vmatprep.subr.bf16.mxu1 %v6841_v45  ;;  %v448_v28 = vrot.slane %v416_v16, 4  ;;  %v5754_v38 = vunpack.c.l.bf16 %v5874_v22  ;;  %485 = vst [vmem:[#allocation2 + $0x48] ss:$-4 sps:$4 sm:$0xff] %v449_v29   ;;  %v392_v39 = vmax.f32 %v7123_v30, 0.0  ;;  %v7135_v40 = vadd.f32 %v7056_v21, %v323_v31  ;;  %v6849_v29 = vld [vmem:[%s8181_s3 + $0x10] sm:$0xff]  }
  0x21   : > { %6320 = vmatprep.subr.bf16.mxu0 %v6842_v50  ;;  %v5755_v41 = vunpack.c.h.bf16 %v5874_v22  ;;  %v7141_v46 = vpack.c.bf16 %v391_v34, %v390_v24  ;;  %v7144_v47 = vadd.f32 %v7056_v21, %v324_v37 }
  0x22   : > { %483 = vst [vmem:[#allocation2 + $0x38] ss:$-4 sps:$4 sm:$0xff] %v448_v28   ;;  %v325_v48 = vmul.f32 %v5754_v38, %v7051_v20  ;;  %v6847_v38 = vld [vmem:[%s8181_s3 + $0x150] sm:$0xff]  }
  0x23   : > { %6129 = vmatpush3.bf16.msra.mxu1 %v6841_v45  ;;  %v326_v4 = vmul.f32 %v5755_v41, %v7051_v20 }
  0x24   : > { %6321 = vmatpush3.bf16.msra.mxu0 %v6842_v50  ;;  %6162 = vmatprep.subr.bf16.mxu1 %v7096_v62  ;;  %v2066_v43 = vld [vmem:[#allocation2 + $0x18] sm:$0xf]  ;;  %v7139_v44 = vld [vmem:[#allocation2 + $0x10] sm:$0xf0]  ;;  %v5758_v50 = vunpack.c.l.bf16 %v7127_v33  ;;  %v364_v41 = vadd.f32 %v7056_v21, %v325_v48 }
  0x25   : > { %6354 = vmatprep.subr.bf16.mxu0 %v7104_v3  ;;  %v621_v45 = vld [vmem:[#allocation2 + $0x18] sm:$0xf]  ;;  %v2691_v51 = vrot.slane %v7139_v44, 4  ;;  %v2692_v52 = vrot.slane %v2066_v43, 4  ;;  %v955_v55 = vld [vmem:[#allocation2 + $0x10] sm:$0xf0] }
  0x26   : > { %v676_v53 = vshrl.u32 %v621_v45, 16  ;;  %v679_v54 = vshll.u32 %v621_v45, 16  ;;  %v1006_v57 = vrot.slane %v955_v55, 4  ;;  %v1007_v58 = vrot.slane %v621_v45, 4  ;;  %v2068_v1 = vld [vmem:[#allocation2 + $0x28] sm:$0xf] }
  0x27   : > { %v1537_v59 = vshrl.u32 %v955_v55, 16  ;;  %v1540_v60 = vshll.u32 %v955_v55, 16  ;;  %v2693_v61 = vsel %vm1002_vm0, %v2691_v51, %v2692_v52  ;;  %v2644_v2 = vld [vmem:[#allocation2 + $0x20] sm:$0xf0]  ;;  %v2123_v8 = vshrl.u32 %v2068_v1, 16 }
  0x28   : > { %v7153_v63 = vrot.slane %v676_v53, 3  ;;  %v7155_v0 = vrot.slane %v679_v54, 4  ;;  %6322 = vmatprep.mubr.bf16.mxu0 %v2693_v61  ;;  %v1008_v5 = vsel %vm1002_vm0, %v1006_v57, %v1007_v58  ;;  %v7166_v10 = vld [vmem:[#allocation2 + $0x28] sm:$0xf]  ;;  %v2126_v11 = vshll.u32 %v2068_v1, 16 }
  0x29   : > { %v7159_v6 = vrot.slane %v1537_v59, 4  ;;  %v7161_v7 = vrot.slane %v1540_v60, 5  ;;  %6131 = vmatmul.mubr.bf16.vlgmr.msra.gmra.mrb[0].mxu1 %v1008_v5  ;;  %v2694_v12 = vrot.slane %v2644_v2, 4  ;;  %v2695_v13 = vrot.slane %v2068_v1, 4  ;;  %v956_v15 = vld [vmem:[#allocation2 + $0x20] sm:$0xf0] }
  0x2a   : > { %v3047_v14 = vshrl.u32 %v2644_v2, 16  ;;  %v7168_v16 = vrot.slane %v2123_v8, 3  ;;  %v3050_v17 = vshll.u32 %v2644_v2, 16  ;;  %6163 = vmatpush3.bf16.msra.mxu1 %v7096_v62  ;;  %v1009_v18 = vrot.slane %v956_v15, 4  ;;  %v2070_v22 = vld [vmem:[#allocation2 + $0x38] sm:$0xf] }
  0x2b   : > { %v1010_v19 = vrot.slane %v7166_v10, 4  ;;  %v7172_v23 = vrot.slane %v2126_v11, 4  ;;  %v2696_v24 = vsel %vm1002_vm0, %v2694_v12, %v2695_v13  ;;  %v7177_v26 = vld [vmem:[#allocation2 + $0x30] sm:$0xf0]  ;;  %v2698_v28 = vrot.slane %v2070_v22, 4  ;;  %6164 = vmatprep.subr.bf16.mxu1 %v6846_v56  ;;  %v6852_v5 = vld [vmem:[%s8181_s3 + $0x18] sm:$0xff]  }
  0x2c   : > { %v7175_v25 = vrot.slane %v3047_v14, 4  ;;  %6323 = vmatmul.mubr.bf16.vlgmr.msra.gmra.mrb[0].mxu0 %v2696_v24  ;;  %v7182_v62 = vrot.slane %v3050_v17, 5  ;;  %v2697_v32 = vrot.slane %v7177_v26, 4  ;;  %v625_v34 = vld [vmem:[#allocation2 + $0x38] sm:$0xf]  ;;  %v365_v52 = vadd.f32 %v7056_v21, %v326_v4  ;;  %v6855_v24 = vld [vmem:[%s8181_s3 + $0x20] sm:$0xff]  }
  0x2d   : > { %v1011_v31 = vsel %vm1002_vm0, %v1009_v18, %v1010_v19  ;;  %v957_v37 = vld [vmem:[#allocation2 + $0x30] sm:$0xf0]  ;;  %6355 = vmatpush3.bf16.msra.mxu0 %v7104_v3  ;;  %v1013_v43 = vrot.slane %v625_v34, 4  ;;  %v2072_v45 = vld [vmem:[#allocation2 + $0x48] sm:$0xf]  ;;  %v5759_v53 = vunpack.c.h.bf16 %v7127_v33  ;;  %v327_v3 = vmul.f32 %v5758_v50, %v7051_v20 }
  0x2e   : > { %6134 = vmatprep.mubr.bf16.mxu1 %v1011_v31  ;;  %v1012_v42 = vrot.slane %v957_v37, 4  ;;  %v7191_v51 = vld [vmem:[#allocation2 + $0x40] sm:$0xf0]  ;;  %6356 = vmatprep.subr.bf16.mxu0 %v6845_v9  ;;  %v2699_v54 = vsel %vm1002_vm0, %v2697_v32, %v2698_v28  ;;  %v2701_v57 = vrot.slane %v2072_v45, 4  ;;  %v627_v48 = vld [vmem:[#allocation2 + $0x48] sm:$0xf]  ;;  %v3053_v45 = vor.u32 %v7182_v62, %v7175_v25 }
  0x2f   : > { %v2700_v55 = vrot.slane %v7191_v51, 4  ;;  %6165 = vmatpush3.bf16.msra.mxu1 %v6846_v56  ;;  %v958_v58 = vld [vmem:[#allocation2 + $0x40] sm:$0xf0]  ;;  %6326 = vmatprep.mubr.bf16.mxu0 %v2699_v54  ;;  %v1016_v61 = vrot.slane %v627_v48, 4  ;;  %v450_v1 = vrot.slane %v7141_v46, 4  ;;  %v7206_v56 = vld [vmem:[%s8181_s3 + $0x158] sm:$0xff]   ;;  %v328_v18 = vmul.f32 %v5759_v53, %v7051_v20 }
  0x30   : > { %v1014_v59 = vsel %vm1002_vm0, %v1012_v42, %v1013_v43  ;;  %v1015_v60 = vrot.slane %v958_v58, 4  ;;  %6166 = vmatprep.subr.bf16.mxu1 %v6849_v29  ;;  %v393_v4 = vmax.f32 %v7130_v36, 0.0  ;;  %v394_v33 = vmax.f32 %v7135_v40, 0.0  ;;  %v3013_v8 = vld [vmem:[#allocation2 + $0x18] sm:$0x1f]  ;;  %v5877_v34 = vld [vmem:[%s7039_s21 + $0x50] sm:$0xff]  }
  0x31   : > { %v2702_v2 = vsel %vm1002_vm0, %v2700_v55, %v2701_v57  ;;  %v395_v50 = vmax.f32 %v7144_v47, 0.0  ;;  %6357 = vmatpush3.bf16.msra.mxu0 %v6845_v9  ;;  %6135 = vmatmul.mubr.bf16.gmra.mrb[4].mxu1 %v1014_v59  ;;  %487 = vst [vmem:[#allocation2 + $0x58] ss:$-4 sps:$4 sm:$0xff] %v450_v1   ;;  %v396_v11 = vmax.f32 %v364_v41, 0.0  ;;  %v397_v12 = vmax.f32 %v365_v52, 0.0  ;;  %v7227_v37 = vld [vmem:[%s7039_s21 + $0x58] sm:$0xff]  }
  0x32   : > { %v1017_v46 = vsel %vm1002_vm0, %v1015_v60, %v1016_v61  ;;  %6358 = vmatprep.subr.bf16.mxu0 %v6847_v38  ;;  %v419_v36 = vpack.c.bf16 %v393_v4, %v392_v39  ;;  %v3030_v47 = vshrl.u32 %v7139_v44, 16  ;;  %v3033_v13 = vshll.u32 %v7139_v44, 16  ;;  %v573_v14 = vld [vmem:[#allocation2 + $0x28] sm:$0x10]  ;;  %v6850_v41 = vld [vmem:[%s8181_s3 + $0x160] sm:$0xff]  }
  0x33   : > { %6138 = vmatprep.mubr.bf16.mxu1 %v1017_v46  ;;  %v420_v40 = vpack.c.bf16 %v395_v50, %v394_v33  ;;  %6167 = vmatpush3.bf16.msra.mxu1 %v6849_v29  ;;  %v421_v9 = vpack.c.bf16 %v397_v12, %v396_v11  ;;  %v3038_v15 = vshrl.u32 %v3013_v8, 16  ;;  %v3041_v17 = vshll.u32 %v3013_v8, 16  ;;  %v5876_v44 = vld [vmem:[%s7039_s21 + $0x48] sm:$0xff]   ;;  %v576_v57 = vld [vmem:[#allocation2 + $0x38] sm:$0x10] }
  0x34   : > { %6327 = vmatmul.mubr.bf16.gmra.mrb[4].mxu0 %v2702_v2  ;;  %v451_v19 = vrot.slane %v419_v36, 4  ;;  %6168 = vmatprep.subr.bf16.mxu1 %v6852_v5  ;;  %v3032_v30 = vrot.slane %v3030_v47, 4  ;;  %v3035_v39 = vrot.slane %v3033_v13, 5  ;;  %v366_v32 = vadd.f32 %v7056_v21, %v327_v3  ;;  %v6857_v36 = vld [vmem:[%s8181_s3 + $0x28] sm:$0xff]  }
  0x35   : > { %v452_v22 = vrot.slane %v420_v40, 4  ;;  %6359 = vmatpush3.bf16.msra.mxu0 %v6847_v38  ;;  %v453_v28 = vrot.slane %v421_v9, 4  ;;  %v3040_v29 = vrot.slane %v3038_v15, 4  ;;  %v3043_v31 = vrot.slane %v3041_v17, 5  ;;  %v7259_v40 = vld [vmem:[%s7039_s21 + $0x60] sm:$0xff]  }
  0x36   : > { %6360 = vmatprep.subr.bf16.mxu0 %v7206_v56  ;;  %489 = vst [vmem:[#allocation2 + $0x68] ss:$-4 sps:$4 sm:$0xff] %v451_v19   ;;  %v3036_v42 = vor.u32 %v3035_v39, %v3032_v30  ;;  %v367_v43 = vadd.f32 %v7056_v21, %v328_v18  ;;  %v574_v38 = vsel %vm7117_vm3, 0, %v573_v14  ;;  %v398_v53 = vmax.f32 %v366_v32, 0.0 }
  0x37   : > { %491 = vst [vmem:[#allocation2 + $0x78] ss:$-4 sps:$4 sm:$0xff] %v452_v22   ;;  %493 = vst [vmem:[#allocation2 + $0x88] ss:$-4 sps:$4 sm:$0xff] %v453_v28   ;;  %6169 = vmatpush3.bf16.msra.mxu1 %v6852_v5  ;;  %v3044_v52 = vor.u32 %v3043_v31, %v3040_v29  ;;  %v5762_v54 = vunpack.c.l.bf16 %v5876_v44  ;;  %v5763_v55 = vunpack.c.h.bf16 %v5876_v44  ;;  %v5766_v59 = vunpack.c.l.bf16 %v5877_v34  ;;  %v6851_v5 = vld [vmem:[%s8181_s3 + $0x168] sm:$0xff]   ;;  %v6859_v22 = vld [vmem:[%s8181_s3 + $0x30] sm:$0xff]  }
  0x38   : > { %575 = vst [vmem:[#allocation2 + $0x28] sm:$0x10] %v574_v38  ;;  %v2074_v48 = vld [vmem:[#allocation2 + $0x58] sm:$0xf]  ;;  %v7238_v58 = vld [vmem:[#allocation2 + $0x50] sm:$0xf0]  ;;  %6170 = vmatprep.subr.bf16.mxu1 %v6855_v24  ;;  %v5767_v60 = vunpack.c.h.bf16 %v5877_v34  ;;  %v5770_v61 = vunpack.c.l.bf16 %v7227_v37  ;;  %v5771_v1 = vunpack.c.h.bf16 %v7227_v37  ;;  %v5774_v32 = vunpack.c.l.bf16 %v7259_v40 }
  0x39   : > { %v7240_v3 = vld [vmem:[#allocation2 + $0x58] sm:$0xf]  ;;  %6361 = vmatpush3.bf16.msra.mxu0 %v7206_v56  ;;  %v2703_v2 = vrot.slane %v7238_v58, 4  ;;  %v2704_v4 = vrot.slane %v2074_v48, 4  ;;  %v959_v33 = vld [vmem:[#allocation2 + $0x50] sm:$0xf0]  ;;  %v7251_v8 = vsel %vm1518_vm4, %v3036_v42, %v3044_v52  ;;  %v329_v12 = vmul.f32 %v5762_v54, %v7051_v20 }
  0x3a   : > { %v1019_v50 = vrot.slane %v7240_v3, 4  ;;  %v1018_v46 = vrot.slane %v959_v33, 4  ;;  %6362 = vmatprep.subr.bf16.mxu0 %v6850_v41  ;;  %v399_v11 = vmax.f32 %v367_v43, 0.0  ;;  %v330_v56 = vmul.f32 %v5763_v55, %v7051_v20  ;;  %v7283_v44 = vld [vmem:[%s8181_s3 + $0x170] sm:$0xff]   ;;  %v7303_v48 = vld [vmem:[%s8181_s3 + $0x38] sm:$0xff]  }
  0x3b   : > { %v2705_v47 = vsel %vm1002_vm0, %v2703_v2, %v2704_v4  ;;  %6171 = vmatpush3.bf16.msra.mxu1 %v6855_v24  ;;  %v577_v13 = vsel %vm7117_vm3, 0, %v576_v57  ;;  %v3064_v14 = vshrl.u32 %v7177_v26, 16  ;;  %v3067_v9 = vshll.u32 %v7177_v26, 16 }
  0x3c   : > { %6330 = vmatprep.mubr.bf16.mxu0 %v2705_v47  ;;  %v1020_v15 = vsel %vm1002_vm0, %v1018_v46, %v1019_v50  ;;  %v422_v17 = vpack.c.bf16 %v399_v11, %v398_v53  ;;  %v7268_v18 = vadd.f32 %v7056_v21, %v329_v12  ;;  %v7271_v19 = vadd.f32 %v7056_v21, %v330_v56 }
  0x3d   : > { %578 = vst [vmem:[#allocation2 + $0x38] sm:$0x10] %v577_v13  ;;  %6139 = vmatmul.mubr.bf16.gmra.mrb[8].mxu1 %v1020_v15  ;;  %v2076_v30 = vld [vmem:[#allocation2 + $0x68] sm:$0xf]  ;;  %v7276_v39 = vld [vmem:[#allocation2 + $0x60] sm:$0xf0]  ;;  %6363 = vmatpush3.bf16.msra.mxu0 %v6850_v41  ;;  %v331_v28 = vmul.f32 %v5766_v59, %v7051_v20  ;;  %v332_v29 = vmul.f32 %v5767_v60, %v7051_v20 }
  0x3e   : > { %v7278_v24 = vld [vmem:[#allocation2 + $0x68] sm:$0xf]  ;;  %v333_v31 = vmul.f32 %v5770_v61, %v7051_v20  ;;  %v2706_v34 = vrot.slane %v7276_v39, 4  ;;  %v2707_v37 = vrot.slane %v2076_v30, 4  ;;  %6364 = vmatprep.subr.bf16.mxu0 %v6851_v5  ;;  %v960_v41 = vld [vmem:[#allocation2 + $0x60] sm:$0xf0]  ;;  %6172 = vmatprep.subr.bf16.mxu1 %v6857_v36  ;;  %v334_v33 = vmul.f32 %v5771_v1, %v7051_v20 }
  0x3f   : > { %v1022_v42 = vrot.slane %v7278_v24, 4  ;;  %v454_v43 = vrot.slane %v422_v17, 4  ;;  %v1021_v38 = vrot.slane %v960_v41, 4  ;;  %v2078_v52 = vld [vmem:[#allocation2 + $0x78] sm:$0xf]  ;;  %v400_v54 = vmax.f32 %v7268_v18, 0.0  ;;  %6173 = vmatpush3.bf16.msra.mxu1 %v6857_v36 }
  0x40   : > { %v7291_v53 = vld [vmem:[#allocation2 + $0x70] sm:$0xf0]  ;;  %v7295_v55 = vadd.f32 %v7056_v21, %v331_v28  ;;  %v7298_v57 = vadd.f32 %v7056_v21, %v332_v29  ;;  %v2708_v59 = vsel %vm1002_vm0, %v2706_v34, %v2707_v37  ;;  %v2710_v61 = vrot.slane %v2078_v52, 4  ;;  %v7307_v2 = vld [vmem:[#allocation2 + $0x78] sm:$0xf]  ;;  %6174 = vmatprep.subr.bf16.mxu1 %v6859_v22 }
  0x41   : > { %v2709_v60 = vrot.slane %v7291_v53, 4  ;;  %v961_v4 = vld [vmem:[#allocation2 + $0x70] sm:$0xf0]  ;;  %495 = vst [vmem:[#allocation2 + $0x98] ss:$-4 sps:$4 sm:$0xff] %v454_v43   ;;  %6331 = vmatmul.mubr.bf16.gmra.mrb[8].mxu0 %v2708_v59  ;;  %v1023_v50 = vsel %vm1002_vm0, %v1021_v38, %v1022_v42  ;;  %v1025_v11 = vrot.slane %v7307_v2, 4  ;;  %v7315_v36 = vadd.f32 %v7056_v21, %v333_v31 }
  0x42   : > { %v1024_v46 = vrot.slane %v961_v4, 4  ;;  %v2080_v12 = vld [vmem:[#allocation2 + $0x88] sm:$0xf]  ;;  %v7312_v56 = vld [vmem:[#allocation2 + $0x80] sm:$0xf0]  ;;  %6365 = vmatpush3.bf16.msra.mxu0 %v6851_v5  ;;  %6142 = vmatprep.mubr.bf16.mxu1 %v1023_v50  ;;  %v7320_v18 = vadd.f32 %v7056_v21, %v334_v33  ;;  %v6854_v5 = vld [vmem:[%s8181_s3 + $0x178] sm:$0xff]  }
  0x43   : > { %v2711_v47 = vsel %vm1002_vm0, %v2709_v60, %v2710_v61  ;;  %v2712_v13 = vrot.slane %v7312_v56, 4  ;;  %v2713_v1 = vrot.slane %v2080_v12, 4  ;;  %v635_v15 = vld [vmem:[#allocation2 + $0x88] sm:$0xf]  ;;  %v962_v17 = vld [vmem:[#allocation2 + $0x80] sm:$0xf0]  ;;  %6366 = vmatprep.subr.bf16.mxu0 %v7283_v44  ;;  %6175 = vmatpush3.bf16.msra.mxu1 %v6859_v22 }
  0x44   : > { %6334 = vmatprep.mubr.bf16.mxu0 %v2711_v47  ;;  %v1026_v30 = vsel %vm1002_vm0, %v1024_v46, %v1025_v11  ;;  %v1027_v28 = vrot.slane %v962_v17, 4  ;;  %v1028_v29 = vrot.slane %v635_v15, 4  ;;  %v3014_v31 = vld [vmem:[#allocation2 + $0x28] sm:$0x1f]  ;;  %v401_v34 = vmax.f32 %v7271_v19, 0.0  ;;  %v7335_v59 = vld [vmem:[%s8181_s3 + $0x180] sm:$0xff]   ;;  %6176 = vmatprep.subr.bf16.mxu1 %v7303_v48 }
  0x45   : > { %v2714_v37 = vsel %vm1002_vm0, %v2712_v13, %v2713_v1  ;;  %v3055_v41 = vshrl.u32 %v3014_v31, 16  ;;  %v3058_v42 = vshll.u32 %v3014_v31, 16  ;;  %v3015_v43 = vld [vmem:[#allocation2 + $0x38] sm:$0x1f]  ;;  %v3066_v38 = vrot.slane %v3064_v14, 4  ;;  %6143 = vmatmul.mubr.bf16.gmra.mrb[12].mxu1 %v1026_v30  ;;  %v7343_v14 = vld [vmem:[%s8181_s3 + $0x80] sm:$0xff]  }
  0x46   : > { %v1029_v52 = vsel %vm1002_vm0, %v1027_v28, %v1028_v29  ;;  %v423_v60 = vpack.c.bf16 %v401_v34, %v400_v54  ;;  %v3069_v19 = vrot.slane %v3067_v9, 5  ;;  %v3072_v61 = vshrl.u32 %v3015_v43, 16  ;;  %6367 = vmatpush3.bf16.msra.mxu0 %v7283_v44  ;;  %v579_v54 = vld [vmem:[#allocation2 + $0x48] sm:$0x10]  ;;  %v582_v29 = vld [vmem:[#allocation2 + $0x58] sm:$0x10] }
  0x47   : > { %6146 = vmatprep.mubr.bf16.mxu1 %v1029_v52  ;;  %v3057_v22 = vrot.slane %v3055_v41, 4  ;;  %v3060_v4 = vrot.slane %v3058_v42, 5  ;;  %v3075_v33 = vshll.u32 %v3015_v43, 16  ;;  %v402_v50 = vmax.f32 %v7295_v55, 0.0  ;;  %6368 = vmatprep.subr.bf16.mxu0 %v6854_v5  ;;  %v585_v41 = vld [vmem:[#allocation2 + $0x68] sm:$0x10] }
  0x48   : > { %v637_v26 = vld [vmem:[#allocation2 + $0x98] sm:$0xf]  ;;  %v963_v9 = vld [vmem:[#allocation2 + $0x90] sm:$0xf0]  ;;  %v455_v46 = vrot.slane %v423_v60, 4  ;;  %v3070_v11 = vor.u32 %v3069_v19, %v3066_v38  ;;  %v3074_v12 = vrot.slane %v3072_v61, 4  ;;  %v5775_v47 = vunpack.c.h.bf16 %v7259_v40  ;;  %6177 = vmatpush3.bf16.msra.mxu1 %v7303_v48 }
  0x49   : > { %v1030_v13 = vrot.slane %v963_v9, 4  ;;  %v1031_v1 = vrot.slane %v637_v26, 4  ;;  %v3061_v15 = vor.u32 %v3060_v4, %v3057_v22  ;;  %v3077_v17 = vrot.slane %v3075_v33, 5  ;;  %6335 = vmatmul.mubr.bf16.gmra.mrb[12].mxu0 %v2714_v37  ;;  %6210 = vmatprep.subr.bf16.mxu1 %v7343_v14  ;;  %v5880_v52 = vld [vmem:[%s7039_s21 + $0x68] sm:$0xff]  }
  0x4a   : > { %497 = vst [vmem:[#allocation2 + $0xa8] ss:$-4 sps:$4 sm:$0xff] %v455_v46   ;;  %v403_v44 = vmax.f32 %v7298_v57, 0.0  ;;  %v580_v55 = vsel %vm7117_vm3, 0, %v579_v54  ;;  %v3081_v30 = vshrl.u32 %v7191_v51, 16  ;;  %v3084_v28 = vshll.u32 %v7191_v51, 16  ;;  %6369 = vmatpush3.bf16.msra.mxu0 %v6854_v5  ;;  %6370 = vmatprep.mubr.bf16.mxu0 %v7251_v8 }
  0x4b   : > { %v1032_v31 = vsel %vm1002_vm0, %v1030_v13, %v1031_v1  ;;  %v3062_v57 = vsel %vm1518_vm4, %v3053_v45, %v3061_v15  ;;  %v3078_v48 = vor.u32 %v3077_v17, %v3074_v12  ;;  %581 = vst [vmem:[#allocation2 + $0x48] sm:$0x10] %v580_v55  ;;  %v404_v34 = vmax.f32 %v7315_v36, 0.0  ;;  %6402 = vmatprep.subr.bf16.mxu0 %v7335_v59  ;;  %v6858_v22 = vld [vmem:[%s8181_s3 + $0x188] sm:$0xff]   ;;  %v588_v12 = vld [vmem:[#allocation2 + $0x78] sm:$0x10] }
  0x4c   : > { %v424_v51 = vpack.c.bf16 %v403_v44, %v402_v50  ;;  %v7363_v37 = vrot.slane %v3081_v30, 4  ;;  %v7365_v5 = vrot.slane %v3084_v28, 5  ;;  %v405_v8 = vmax.f32 %v7320_v18, 0.0 }
  0x4d   : > { %v3079_v42 = vsel %vm1518_vm4, %v3070_v11, %v3078_v48  ;;  %v583_v25 = vsel %vm7117_vm3, 0, %v582_v29  ;;  %v3098_v62 = vshrl.u32 %v7238_v58, 16  ;;  %v3101_v45 = vshll.u32 %v7238_v58, 16  ;;  %6147 = vmatmul.mubr.bf16.gmra.mrb[16].mxu1 %v1032_v31  ;;  %v6860_v29 = vld [vmem:[%s8181_s3 + $0x190] sm:$0xff]  }
  0x4e   : > { %v456_v36 = vrot.slane %v424_v51, 4  ;;  %v3087_v43 = vor.u32 %v7365_v5, %v7363_v37  ;;  %v425_v38 = vpack.c.bf16 %v405_v8, %v404_v34  ;;  %584 = vst [vmem:[#allocation2 + $0x58] sm:$0x10] %v583_v25  ;;  %v335_v18 = vmul.f32 %v5774_v32, %v7051_v20  ;;  %v7409_v48 = vld [vmem:[%s7039_s21 + $0x70] sm:$0xff]  }
  0x4f   : > { %v7379_v60 = vrot.slane %v3098_v62, 4  ;;  %v7381_v19 = vrot.slane %v3101_v45, 5  ;;  %v336_v61 = vmul.f32 %v5775_v47, %v7051_v20  ;;  %v586_v58 = vsel %vm7117_vm3, 0, %v585_v41 }
  0x50   : > { %499 = vst [vmem:[#allocation2 + $0xb8] ss:$-4 sps:$4 sm:$0xff] %v456_v36   ;;  %v457_v4 = vrot.slane %v425_v38, 4  ;;  %v374_v33 = vadd.f32 %v7056_v21, %v335_v18  ;;  %587 = vst [vmem:[#allocation2 + $0x68] sm:$0x10] %v586_v58  ;;  %v3115_v40 = vshrl.u32 %v7276_v39, 16  ;;  %v5778_v46 = vunpack.c.l.bf16 %v5880_v52 }
  0x51   : > { %v3118_v32 = vshll.u32 %v7276_v39, 16  ;;  %v639_v50 = vld [vmem:[#allocation2 + $0xa8] sm:$0xf]  ;;  %v964_v54 = vld [vmem:[#allocation2 + $0xa0] sm:$0xf0]  ;;  %v3104_v26 = vor.u32 %v7381_v19, %v7379_v60  ;;  %v375_v9 = vadd.f32 %v7056_v21, %v336_v61  ;;  %v5779_v11 = vunpack.c.h.bf16 %v5880_v52  ;;  %6371 = vmatmul.mubr.bf16.vlgmr.msra.gmra.mrb[0].mxu0 %v3062_v57  ;;  %v6862_v36 = vld [vmem:[%s8181_s3 + $0x198] sm:$0xff]  }
  0x52   : > { %v1033_v47 = vrot.slane %v964_v54, 4  ;;  %v1034_v13 = vrot.slane %v639_v50, 4  ;;  %v3016_v1 = vld [vmem:[#allocation2 + $0x48] sm:$0x1f]  ;;  %501 = vst [vmem:[#allocation2 + $0xc8] ss:$-4 sps:$4 sm:$0xff] %v457_v4   ;;  %6403 = vmatpush3.bf16.msra.mxu0 %v7335_v59  ;;  %6374 = vmatprep.mubr.bf16.mxu0 %v3079_v42  ;;  %v337_v31 = vmul.f32 %v5778_v46, %v7051_v20  ;;  %v5782_v4 = vunpack.c.l.bf16 %v7409_v48 }
  0x53   : > { %v406_v15 = vmax.f32 %v374_v33, 0.0  ;;  %v7395_v17 = vrot.slane %v3115_v40, 4  ;;  %v3089_v39 = vshrl.u32 %v3016_v1, 16  ;;  %v3092_v44 = vshll.u32 %v3016_v1, 16  ;;  %6404 = vmatprep.subr.bf16.mxu0 %v6858_v22  ;;  %v7438_v60 = vld [vmem:[%s8179_s1] ss:$0 sm:$0xff] }
  0x54   : > { %v407_v55 = vmax.f32 %v375_v9, 0.0  ;;  %v7398_v30 = vrot.slane %v3118_v32, 5  ;;  %v1035_v28 = vsel %vm1002_vm0, %v1033_v47, %v1034_v13  ;;  %v338_v57 = vmul.f32 %v5779_v11, %v7051_v20 }
  0x55   : > { %v589_v59 = vsel %vm7117_vm3, 0, %v588_v12  ;;  %6150 = vmatprep.mubr.bf16.mxu1 %v1035_v28  ;;  %v3091_v34 = vrot.slane %v3089_v39, 4  ;;  %v3094_v51 = vrot.slane %v3092_v44, 5  ;;  %v3017_v8 = vld [vmem:[#allocation2 + $0x58] sm:$0x1f]  ;;  %v376_v45 = vadd.f32 %v7056_v21, %v337_v31 }
  0x56   : > { %v426_v41 = vpack.c.bf16 %v407_v55, %v406_v15  ;;  %v3121_v42 = vor.u32 %v7398_v30, %v7395_v17  ;;  %590 = vst [vmem:[#allocation2 + $0x78] sm:$0x10] %v589_v59  ;;  %v3106_v25 = vshrl.u32 %v3017_v8, 16  ;;  %v3109_v62 = vshll.u32 %v3017_v8, 16  ;;  %6405 = vmatpush3.bf16.msra.mxu0 %v6858_v22  ;;  %v618_v8 = vld [vmem:[#allocation2] sm:$0xf8] }
  0x57   : > { %v377_v20 = vadd.f32 %v7056_v21, %v338_v57  ;;  %v641_v38 = vld [vmem:[#allocation2 + $0xb8] sm:$0xf]  ;;  %v965_v18 = vld [vmem:[#allocation2 + $0xb0] sm:$0xf0]  ;;  %v3095_v52 = vor.u32 %v3094_v51, %v3091_v34  ;;  %v3132_v58 = vshrl.u32 %v7291_v53, 16  ;;  %6406 = vmatprep.subr.bf16.mxu0 %v6860_v29  ;;  %v5783_v12 = vunpack.c.h.bf16 %v7409_v48 }
  0x58   : > { %v458_v61 = vrot.slane %v426_v41, 4  ;;  %v1036_v33 = vrot.slane %v965_v18, 4  ;;  %v1037_v40 = vrot.slane %v641_v38, 4  ;;  %v3108_v32 = vrot.slane %v3106_v25, 4  ;;  %v3018_v54 = vld [vmem:[#allocation2 + $0x68] sm:$0x1f] }
  0x59   : > { %v3111_v50 = vrot.slane %v3109_v62, 5  ;;  %v3096_v21 = vsel %vm1518_vm4, %v3087_v43, %v3095_v52  ;;  %v643_v9 = vld [vmem:[#allocation2 + $0xc8] sm:$0xf]  ;;  %v966_v46 = vld [vmem:[#allocation2 + $0xc0] sm:$0xf0]  ;;  %v3123_v22 = vshrl.u32 %v3018_v54, 16  ;;  %v340_v19 = vmul.f32 %v7438_v60, %v5783_v12 }
  0x5a   : > { %503 = vst [vmem:[#allocation2 + $0xd8] ss:$-4 sps:$4 sm:$0xff] %v458_v61   ;;  %v3126_v11 = vshll.u32 %v3018_v54, 16  ;;  %v1038_v47 = vsel %vm1002_vm0, %v1036_v33, %v1037_v40  ;;  %6375 = vmatmul.mubr.bf16.gmra.mrb[4].mxu0 %v3096_v21  ;;  %v1039_v13 = vrot.slane %v966_v46, 4  ;;  %v1040_v1 = vrot.slane %v643_v9, 4 }
  0x5b   : > { %v3112_v15 = vor.u32 %v3111_v50, %v3108_v32  ;;  %6151 = vmatmul.mubr.bf16.gmra.mrb[20].mxu1 %v1038_v47  ;;  %v3125_v17 = vrot.slane %v3123_v22, 4  ;;  %6407 = vmatpush3.bf16.msra.mxu0 %v6860_v29  ;;  %v408_v37 = vmax.f32 %v376_v45, 0.0  ;;  %v409_v5 = vmax.f32 %v377_v20, 0.0  ;;  %v591_v43 = vld [vmem:[#allocation2 + $0x88] sm:$0x10]  ;;  %v6864_v29 = vld [vmem:[%s8181_s3 + $0x1a0] sm:$0xff]  }
  0x5c   : > { %v3128_v39 = vrot.slane %v3126_v11, 5  ;;  %v1041_v44 = vsel %vm1002_vm0, %v1039_v13, %v1040_v1  ;;  %v3134_v28 = vrot.slane %v3132_v58, 4  ;;  %v3135_v31 = vshll.u32 %v7291_v53, 16  ;;  %6408 = vmatprep.subr.bf16.mxu0 %v6862_v36  ;;  %v7448_v52 = vld [vmem:[%s8180_s2] ss:$0 sm:$0xff]  ;;  %v6866_v50 = vld [vmem:[%s8181_s3 + $0x1a8] sm:$0xff]  }
  0x5d   : > { %v3113_v55 = vsel %vm1518_vm4, %v3104_v26, %v3112_v15  ;;  %v3019_v30 = vld [vmem:[#allocation2 + $0x78] sm:$0x1f]  ;;  %6154 = vmatprep.mubr.bf16.mxu1 %v1041_v44  ;;  %v427_v59 = vpack.c.bf16 %v409_v5, %v408_v37  ;;  %v339_v53 = vmul.f32 %v7438_v60, %v5782_v4  ;;  %v592_v26 = vsel %vm7117_vm3, 0, %v591_v43  ;;  %v2651_v22 = vld [vmem:[#allocation2 + $0x90] sm:$0xf0] }
  0x5e   : > { %6378 = vmatprep.mubr.bf16.mxu0 %v3113_v55  ;;  %v3129_v57 = vor.u32 %v3128_v39, %v3125_v17  ;;  %v3140_v48 = vshrl.u32 %v3019_v30, 16  ;;  %v3143_v34 = vshll.u32 %v3019_v30, 16  ;;  %v3137_v51 = vrot.slane %v3135_v31, 5  ;;  %593 = vst [vmem:[#allocation2 + $0x88] sm:$0x10] %v592_v26  ;;  %v6868_v15 = vld [vmem:[%s8181_s3 + $0x1b0] sm:$0xff]  }
  0x5f   : > { %v459_v25 = vrot.slane %v427_v59, 4  ;;  %6409 = vmatpush3.bf16.msra.mxu0 %v6862_v36  ;;  %v378_v61 = vadd.f32 %v7448_v52, %v339_v53  ;;  %v379_v58 = vadd.f32 %v7448_v52, %v340_v19  ;;  %v3149_v4 = vshrl.u32 %v7312_v56, 16  ;;  %v594_v32 = vld [vmem:[#allocation2 + $0x98] sm:$0x10]  ;;  %v597_v1 = vld [vmem:[#allocation2 + $0xa8] sm:$0x10] }
  0x60   : > { %v3130_v41 = vsel %vm1518_vm4, %v3121_v42, %v3129_v57  ;;  %v3142_v62 = vrot.slane %v3140_v48, 4  ;;  %v3145_v45 = vrot.slane %v3143_v34, 5  ;;  %v3138_v18 = vor.u32 %v3137_v51, %v3134_v28  ;;  %6410 = vmatprep.subr.bf16.mxu0 %v6864_v29  ;;  %v2652_v28 = vld [vmem:[#allocation2 + $0xa0] sm:$0xf0]  ;;  %v7473_v31 = vld [vmem:[%s7039_s21 + $0x78] sm:$0xff]   ;;  %s238_s21 = scalar_lea.vmem %s8183_s5, %s5455_s26 }
  0x61   : > { %v645_v20 = vld [vmem:[#allocation2 + $0xd8] sm:$0xf]  ;;  %v967_v38 = vld [vmem:[#allocation2 + $0xd0] sm:$0xf0]  ;;  %505 = vst [vmem:[#allocation2 + $0xe8] ss:$-4 sps:$4 sm:$0xff] %v459_v25   ;;  %v665_v37 = vor.u32 %v7082_v49, %v7071_v35  ;;  %v682_v35 = vor.u32 %v7155_v0, %v7153_v63 }
  0x62   : > { %v1042_v42 = vrot.slane %v967_v38, 4  ;;  %v1043_v33 = vrot.slane %v645_v20, 4  ;;  %v3146_v40 = vor.u32 %v3145_v45, %v3142_v62  ;;  %v3152_v36 = vshll.u32 %v7312_v56, 16  ;;  %6379 = vmatmul.mubr.bf16.gmra.mrb[8].mxu0 %v3130_v41  ;;  %v519_v56 = vld [vmem:[#allocation2 + $0x10] sm:$0x8]  ;;  %v6870_v26 = vld [vmem:[%s8181_s3 + $0x1b8] sm:$0xff]  }
  0x63   : > { %v410_v54 = vmax.f32 %v378_v61, 0.0  ;;  %v411_v21 = vmax.f32 %v379_v58, 0.0  ;;  %v7457_v9 = vrot.slane %v3149_v4, 4  ;;  %v651_v46 = vshrl.u32 %v618_v8, 16  ;;  %6411 = vmatpush3.bf16.msra.mxu0 %v6864_v29  ;;  %v522_v59 = vld [vmem:[#allocation2 + $0x20] sm:$0x8] }
  0x64   : > { %v1044_v11 = vsel %vm1002_vm0, %v1042_v42, %v1043_v33  ;;  %v3147_v12 = vsel %vm1518_vm4, %v3138_v18, %v3146_v40  ;;  %v7461_v47 = vrot.slane %v3152_v36, 5  ;;  %v654_v13 = vshll.u32 %v618_v8, 16  ;;  %6412 = vmatprep.subr.bf16.mxu0 %v6866_v50  ;;  %v600_v4 = vld [vmem:[#allocation2 + $0xb8] sm:$0x10]  ;;  %v6865_v63 = vld [vmem:[%s8181_s3 + $0x88] sm:$0xff]  }
  0x65   : > { %6155 = vmatmul.mubr.bf16.gmra.mrb[24].mxu1 %v1044_v11  ;;  %6382 = vmatprep.mubr.bf16.mxu0 %v3147_v12  ;;  %v428_v17 = vpack.c.bf16 %v411_v21, %v410_v54  ;;  %v653_v39 = vrot.slane %v651_v46, 3  ;;  %v595_v5 = vsel %vm7117_vm3, 0, %v594_v32  ;;  %v3166_v55 = vshrl.u32 %v2651_v22, 16  ;;  %v3020_v57 = vld [vmem:[#allocation2 + $0x88] sm:$0x1f]  ;;  %v7508_v46 = vld [vmem:[%s8181_s3 + $0x1c0] sm:$0xff]  }
  0x66   : > { %v3155_v43 = vor.u32 %v7461_v47, %v7457_v9  ;;  %v656_v44 = vrot.slane %v654_v13, 4  ;;  %596 = vst [vmem:[#allocation2 + $0x98] sm:$0x10] %v595_v5  ;;  %v3169_v30 = vshll.u32 %v2651_v22, 16  ;;  %v598_v49 = vsel %vm7117_vm3, 0, %v597_v1 }
  0x67   : > { %v460_v29 = vrot.slane %v428_v17, 4  ;;  %v3157_v48 = vshrl.u32 %v3020_v57, 16  ;;  %v3160_v34 = vshll.u32 %v3020_v57, 16  ;;  %v7479_v53 = vrot.slane %v3166_v55, 4  ;;  %599 = vst [vmem:[#allocation2 + $0xa8] sm:$0x10] %v598_v49  ;;  %6413 = vmatpush3.bf16.msra.mxu0 %v6866_v50 }
  0x68   : > { %v657_v51 = vor.u32 %v656_v44, %v653_v39  ;;  %v7489_v8 = vld [vmem:[#allocation2 + $0xe8] sm:$0xf]  ;;  %v968_v41 = vld [vmem:[#allocation2 + $0xe0] sm:$0xf0]  ;;  %v7491_v25 = vrot.slane %v3169_v30, 5  ;;  %v520_v62 = vsel %vm7482_vm7, 0, %v519_v56  ;;  %6414 = vmatprep.subr.bf16.mxu0 %v6868_v15  ;;  %v5786_v45 = vunpack.c.l.bf16 %v7473_v31 }
  0x69   : > { %507 = vst [vmem:[#allocation2 + $0xf8] ss:$-4 sps:$4 sm:$0xff] %v460_v29   ;;  %v5787_v20 = vunpack.c.h.bf16 %v7473_v31  ;;  %v1045_v38 = vrot.slane %v968_v41, 4  ;;  %v1046_v18 = vrot.slane %v7489_v8, 4  ;;  %v3159_v61 = vrot.slane %v3157_v48, 4 }
  0x6a   : > { %v3162_v58 = vrot.slane %v3160_v34, 5  ;;  %521 = vst [vmem:[#allocation2 + $0x10] sm:$0x8] %v520_v62  ;;  %v666_v42 = vsel %vm568_vm2, %v657_v51, %v665_v37  ;;  %v3172_v33 = vor.u32 %v7491_v25, %v7479_v53  ;;  %v3183_v40 = vshrl.u32 %v2652_v28, 16  ;;  %v2653_v9 = vld [vmem:[#allocation2 + $0xb0] sm:$0xf0] }
  0x6b   : > { %v3186_v36 = vshll.u32 %v2652_v28, 16  ;;  %v1047_v32 = vsel %vm1002_vm0, %v1045_v38, %v1046_v18  ;;  %v523_v54 = vsel %vm7482_vm7, 0, %v522_v59  ;;  %v693_v21 = vshrl.u32 %v7166_v10, 16  ;;  %6415 = vmatpush3.bf16.msra.mxu0 %v6868_v15  ;;  %v525_v62 = vld [vmem:[#allocation2 + $0x30] sm:$0x8] }
  0x6c   : > { %v3163_v50 = vor.u32 %v3162_v58, %v3159_v61  ;;  %6158 = vmatprep.mubr.bf16.mxu1 %v1047_v32  ;;  %v3185_v11 = vrot.slane %v3183_v40, 4  ;;  %524 = vst [vmem:[#allocation2 + $0x20] sm:$0x8] %v523_v54  ;;  %v696_v47 = vshll.u32 %v7166_v10, 16  ;;  %v601_v13 = vsel %vm7117_vm3, 0, %v600_v4  ;;  %6416 = vmatprep.subr.bf16.mxu0 %v6870_v26 }
  0x6d   : > { %v3021_v22 = vld [vmem:[#allocation2 + $0x98] sm:$0x1f]  ;;  %v3188_v12 = vrot.slane %v3186_v36, 5  ;;  %v7514_v17 = vrot.slane %v693_v21, 3  ;;  %602 = vst [vmem:[#allocation2 + $0xb8] sm:$0x10] %v601_v13  ;;  %v7521_v29 = vmul.f32 %v7438_v60, %v5786_v45 }
  0x6e   : > { %v3164_v56 = vsel %vm1518_vm4, %v3155_v43, %v3163_v50  ;;  %v3174_v1 = vshrl.u32 %v3021_v22, 16  ;;  %v3177_v15 = vshll.u32 %v3021_v22, 16  ;;  %v3022_v39 = vld [vmem:[#allocation2 + $0xa8] sm:$0x1f]  ;;  %v7516_v5 = vrot.slane %v696_v47, 4 }
  0x6f   : > { %6383 = vmatmul.mubr.bf16.gmra.mrb[12].mxu0 %v3164_v56  ;;  %v3189_v37 = vor.u32 %v3188_v12, %v3185_v11  ;;  %v3200_v44 = vshrl.u32 %v2653_v9, 16  ;;  %v3203_v55 = vshll.u32 %v2653_v9, 16  ;;  %v7524_v43 = vmul.f32 %v7438_v60, %v5787_v20  ;;  %v603_v40 = vld [vmem:[#allocation2 + $0xc8] sm:$0x10]  ;;  %v528_v9 = vld [vmem:[#allocation2 + $0x40] sm:$0x8] }
  0x70   : > { %v7518_v30 = vld [vmem:[#allocation2 + $0xf8] sm:$0xf]  ;;  %v969_v10 = vld [vmem:[#allocation2 + $0xf0] sm:$0xf0]  ;;  %v3176_v28 = vrot.slane %v3174_v1, 4  ;;  %v3179_v31 = vrot.slane %v3177_v15, 5  ;;  %6417 = vmatpush3.bf16.msra.mxu0 %v6870_v26  ;;  %v699_v25 = vor.u32 %v7516_v5, %v7514_v17 }
  0x71   : > { %v1048_v57 = vrot.slane %v969_v10, 4  ;;  %v1049_v49 = vrot.slane %v7518_v30, 4  ;;  %v620_v59 = vld [vmem:[#allocation2 + $0x10] sm:$0xf8]  ;;  %v3191_v48 = vshrl.u32 %v3022_v39, 16  ;;  %v3194_v34 = vshll.u32 %v3022_v39, 16  ;;  %6450 = vmatprep.subr.bf16.mxu0 %v7508_v46 }
  0x72   : > { %v3180_v51 = vor.u32 %v3179_v31, %v3176_v28  ;;  %v668_v53 = vshrl.u32 %v620_v59, 16  ;;  %v671_v41 = vshll.u32 %v620_v59, 16  ;;  %v3202_v26 = vrot.slane %v3200_v44, 4 }
  0x73   : > { %v1050_v45 = vsel %vm1002_vm0, %v1048_v57, %v1049_v49  ;;  %v3193_v60 = vrot.slane %v3191_v48, 4  ;;  %v3196_v20 = vrot.slane %v3194_v34, 5  ;;  %v622_v58 = vld [vmem:[#allocation2 + $0x20] sm:$0xf8]  ;;  %v3205_v4 = vrot.slane %v3203_v55, 5 }
  0x74   : > { %6159 = vmatmul.mubr.bf16.gmra.mrb[28].mxu1 %v1050_v45  ;;  %v3181_v38 = vsel %vm1518_vm4, %v3172_v33, %v3180_v51  ;;  %v670_v18 = vrot.slane %v668_v53, 3  ;;  %v673_v61 = vrot.slane %v671_v41, 4  ;;  %v685_v32 = vshrl.u32 %v622_v58, 16  ;;  %v3023_v54 = vld [vmem:[#allocation2 + $0xb8] sm:$0x1f] }
  0x75   : > { %6178 = vmatprep.mubr.bf16.mxu1 %v666_v42  ;;  %6386 = vmatprep.mubr.bf16.mxu0 %v3181_v38  ;;  %v3197_v36 = vor.u32 %v3196_v20, %v3193_v60  ;;  %v688_v50 = vshll.u32 %v622_v58, 16  ;;  %v526_v21 = vsel %vm7482_vm7, 0, %v525_v62  ;;  %v3206_v11 = vor.u32 %v3205_v4, %v3202_v26  ;;  %v2654_v33 = vld [vmem:[#allocation2 + $0xc0] sm:$0xf0]  ;;  %v6901_v42 = vld [vmem:[#allocation2 + $0x38] sm:$0xf] }
  0x76   : > { %v674_v22 = vor.u32 %v673_v61, %v670_v18  ;;  %v3208_v12 = vshrl.u32 %v3023_v54, 16  ;;  %v3211_v47 = vshll.u32 %v3023_v54, 16  ;;  %527 = vst [vmem:[#allocation2 + $0x30] sm:$0x8] %v526_v21  ;;  %v687_v56 = vrot.slane %v685_v32, 3 }
  0x77   : > { %v3198_v13 = vsel %vm1518_vm4, %v3189_v37, %v3197_v36  ;;  %v690_v1 = vrot.slane %v688_v50, 4  ;;  %v710_v15 = vshrl.u32 %v6901_v42, 16  ;;  %v713_v44 = vshll.u32 %v6901_v42, 16  ;;  %v606_v55 = vld [vmem:[#allocation2 + $0xd8] sm:$0x10] }
  0x78   : > { %v683_v17 = vsel %vm568_vm2, %v674_v22, %v682_v35  ;;  %6387 = vmatmul.mubr.bf16.gmra.mrb[16].mxu0 %v3198_v13  ;;  %v3210_v39 = vrot.slane %v3208_v12, 4  ;;  %v3213_v5 = vrot.slane %v3211_v47, 5  ;;  %v604_v37 = vsel %vm7117_vm3, 0, %v603_v40  ;;  %v531_v57 = vld [vmem:[#allocation2 + $0x50] sm:$0x8] }
  0x79   : > { %v691_v10 = vor.u32 %v690_v1, %v687_v56  ;;  %v7539_v28 = vrot.slane %v710_v15, 3  ;;  %v3217_v31 = vshrl.u32 %v2654_v33, 16  ;;  %v7543_v59 = vrot.slane %v713_v44, 4  ;;  %605 = vst [vmem:[#allocation2 + $0xc8] sm:$0x10] %v604_v37 }
  0x7a   : > { %v3214_v49 = vor.u32 %v3213_v5, %v3210_v39  ;;  %v3220_v0 = vshll.u32 %v2654_v33, 16  ;;  %v529_v35 = vsel %vm7482_vm7, 0, %v528_v9  ;;  %v2655_v48 = vld [vmem:[#allocation2 + $0xd0] sm:$0xf0]  ;;  %v6902_v53 = vld [vmem:[#allocation2 + $0x48] sm:$0xf] }
  0x7b   : > { %v700_v34 = vsel %vm568_vm2, %v691_v10, %v699_v25  ;;  %v7551_v51 = vrot.slane %v3217_v31, 4  ;;  %530 = vst [vmem:[#allocation2 + $0x40] sm:$0x8] %v529_v35  ;;  %v727_v41 = vshrl.u32 %v6902_v53, 16  ;;  %v730_v62 = vshll.u32 %v6902_v53, 16 }
  0x7c   : > { %6179 = vmatmul.mubr.bf16.vlgmr.msra.gmra.mrb[0].mxu1 %v683_v17  ;;  %v3215_v45 = vsel %vm1518_vm4, %v3206_v11, %v3214_v49  ;;  %v716_v60 = vor.u32 %v7543_v59, %v7539_v28  ;;  %v7556_v20 = vrot.slane %v3220_v0, 5  ;;  %v607_v26 = vsel %vm7117_vm3, 0, %v606_v55  ;;  %v609_v38 = vld [vmem:[#allocation2 + $0xe8] sm:$0x10]  ;;  %v2656_v54 = vld [vmem:[#allocation2 + $0xe0] sm:$0xf0] }
  0x7d   : > { %6211 = vmatpush3.bf16.msra.mxu1 %v7343_v14  ;;  %6182 = vmatprep.mubr.bf16.mxu1 %v700_v34  ;;  %v624_v25 = vld [vmem:[#allocation2 + $0x30] sm:$0xf8]  ;;  %v7561_v18 = vrot.slane %v727_v41, 3  ;;  %v7563_v61 = vrot.slane %v730_v62, 4  ;;  %608 = vst [vmem:[#allocation2 + $0xd8] sm:$0x10] %v607_v26 }
  0x7e   : > { %v3234_v58 = vshrl.u32 %v2655_v48, 16  ;;  %v3237_v4 = vshll.u32 %v2655_v48, 16  ;;  %6390 = vmatprep.mubr.bf16.mxu0 %v3215_v45  ;;  %v702_v40 = vshrl.u32 %v624_v25, 16  ;;  %v705_v36 = vshll.u32 %v624_v25, 16  ;;  %6212 = vmatprep.subr.bf16.mxu1 %v6865_v63  ;;  %v6867_v14 = vld [vmem:[%s8181_s3 + $0x90] sm:$0xff]  }
  0x7f   : > { %v3223_v32 = vor.u32 %v7556_v20, %v7551_v51  ;;  %v532_v50 = vsel %vm7482_vm7, 0, %v531_v57  ;;  %v733_v21 = vor.u32 %v7563_v61, %v7561_v18  ;;  %v744_v11 = vshrl.u32 %v7240_v3, 16  ;;  %v534_v49 = vld [vmem:[#allocation2 + $0x60] sm:$0x8] }
  0x80   : > { %v7574_v9 = vrot.slane %v3234_v58, 4  ;;  %v7576_v22 = vrot.slane %v3237_v4, 5  ;;  %533 = vst [vmem:[#allocation2 + $0x50] sm:$0x8] %v532_v50  ;;  %v704_v12 = vrot.slane %v702_v40, 3  ;;  %v707_v47 = vrot.slane %v705_v36, 4 }
  0x81   : > { %v747_v33 = vshll.u32 %v7240_v3, 16  ;;  %v610_v13 = vsel %vm7117_vm3, 0, %v609_v38  ;;  %v3024_v56 = vld [vmem:[#allocation2 + $0xc8] sm:$0x1f]  ;;  %6213 = vmatpush3.bf16.msra.mxu1 %v6865_v63  ;;  %v7584_v42 = vrot.slane %v744_v11, 3  ;;  %v3251_v15 = vshrl.u32 %v2656_v54, 16 }
  0x82   : > { %v3240_v1 = vor.u32 %v7576_v22, %v7574_v9  ;;  %611 = vst [vmem:[#allocation2 + $0xe8] sm:$0x10] %v610_v13  ;;  %v3254_v17 = vshll.u32 %v2656_v54, 16  ;;  %v708_v39 = vor.u32 %v707_v47, %v704_v12  ;;  %v3225_v5 = vshrl.u32 %v3024_v56, 16  ;;  %v626_v55 = vld [vmem:[#allocation2 + $0x40] sm:$0xf8]  ;;  %6214 = vmatprep.subr.bf16.mxu1 %v6867_v14 }
  0x83   : > { %v3228_v44 = vshll.u32 %v3024_v56, 16  ;;  %v7586_v10 = vrot.slane %v747_v33, 4  ;;  %v6869_v3 = vld [vmem:[%s8181_s3 + $0x98] sm:$0xff]   ;;  %v719_v28 = vshrl.u32 %v626_v55, 16  ;;  %v722_v37 = vshll.u32 %v626_v55, 16  ;;  %v6871_v36 = vld [vmem:[%s8181_s3 + $0xa0] sm:$0xff]  }
  0x84   : > { %v7591_v31 = vrot.slane %v3251_v15, 4  ;;  %v7593_v57 = vrot.slane %v3254_v17, 5  ;;  %v717_v59 = vsel %vm568_vm2, %v708_v39, %v716_v60  ;;  %v3227_v63 = vrot.slane %v3225_v5, 4  ;;  %v3025_v35 = vld [vmem:[#allocation2 + $0xd8] sm:$0x1f] }
  0x85   : > { %v3230_v0 = vrot.slane %v3228_v44, 5  ;;  %v750_v48 = vor.u32 %v7586_v10, %v7584_v42  ;;  %6183 = vmatmul.mubr.bf16.gmra.mrb[4].mxu1 %v717_v59  ;;  %v721_v34 = vrot.slane %v719_v28, 3  ;;  %v724_v51 = vrot.slane %v722_v37, 4  ;;  %v612_v38 = vld [vmem:[#allocation2 + $0xf8] sm:$0x10] }
  0x86   : > { %v3242_v53 = vshrl.u32 %v3025_v35, 16  ;;  %v3245_v41 = vshll.u32 %v3025_v35, 16  ;;  %v3257_v20 = vor.u32 %v7593_v57, %v7591_v31  ;;  %6215 = vmatpush3.bf16.msra.mxu1 %v6867_v14  ;;  %v535_v60 = vsel %vm7482_vm7, 0, %v534_v49  ;;  %v2657_v4 = vld [vmem:[#allocation2 + $0xf0] sm:$0xf0] }
  0x87   : > { %v3231_v62 = vor.u32 %v3230_v0, %v3227_v63  ;;  %v628_v45 = vld [vmem:[#allocation2 + $0x50] sm:$0xf8]  ;;  %v761_v26 = vshrl.u32 %v7278_v24, 16  ;;  %v725_v25 = vor.u32 %v724_v51, %v721_v34  ;;  %536 = vst [vmem:[#allocation2 + $0x60] sm:$0x8] %v535_v60  ;;  %6216 = vmatprep.subr.bf16.mxu1 %v6869_v3  ;;  %v764_v22 = vshll.u32 %v7278_v24, 16 }
  0x88   : > { %v3244_v18 = vrot.slane %v3242_v53, 4  ;;  %v3247_v61 = vrot.slane %v3245_v41, 5  ;;  %v736_v58 = vshrl.u32 %v628_v45, 16  ;;  %v537_v40 = vld [vmem:[#allocation2 + $0x70] sm:$0x8]  ;;  %v739_v14 = vshll.u32 %v628_v45, 16 }
  0x89   : > { %v3232_v50 = vsel %vm1518_vm4, %v3223_v32, %v3231_v62  ;;  %v3026_v54 = vld [vmem:[#allocation2 + $0xe8] sm:$0x1f]  ;;  %v7607_v9 = vrot.slane %v761_v26, 3  ;;  %v734_v11 = vsel %vm568_vm2, %v725_v25, %v733_v21  ;;  %v7611_v42 = vrot.slane %v764_v22, 4  ;;  %v540_v51 = vld [vmem:[#allocation2 + $0x80] sm:$0x8] }
  0x8a   : > { %6391 = vmatmul.mubr.bf16.gmra.mrb[20].mxu0 %v3232_v50  ;;  %v3248_v12 = vor.u32 %v3247_v61, %v3244_v18  ;;  %v738_v47 = vrot.slane %v736_v58, 3  ;;  %v3259_v33 = vshrl.u32 %v3026_v54, 16  ;;  %6186 = vmatprep.mubr.bf16.mxu1 %v734_v11  ;;  %v741_v13 = vrot.slane %v739_v14, 4  ;;  %v6873_v21 = vld [vmem:[%s8181_s3 + $0xa8] sm:$0xff]   ;;  %v3576_v53 = vld [vmem:[#allocation2 + $0x20] sm:$0xf8] }
  0x8b   : > { %v3262_v56 = vshll.u32 %v3026_v54, 16  ;;  %v613_v32 = vsel %vm7117_vm3, 0, %v612_v38  ;;  %6217 = vmatpush3.bf16.msra.mxu1 %v6869_v3  ;;  %v3268_v24 = vshrl.u32 %v2657_v4, 16  ;;  %v3271_v39 = vshll.u32 %v2657_v4, 16  ;;  %v615_v49 = vld [vmem:[#allocation2 + $0x108] sm:$0x10] }
  0x8c   : > { %v3249_v15 = vsel %vm1518_vm4, %v3240_v1, %v3248_v12  ;;  %v3261_v17 = vrot.slane %v3259_v33, 4  ;;  %614 = vst [vmem:[#allocation2 + $0xf8] sm:$0x10] %v613_v32  ;;  %6218 = vmatprep.subr.bf16.mxu1 %v6871_v36  ;;  %v742_v5 = vor.u32 %v741_v13, %v738_v47  ;;  %v767_v55 = vor.u32 %v7611_v42, %v7607_v9  ;;  %v6903_v57 = vld [vmem:[#allocation2 + $0x88] sm:$0xf]  ;;  %v6877_v54 = vld [vmem:[%s8181_s3 + $0xb8] sm:$0xff]  }
  0x8d   : > { %6394 = vmatprep.mubr.bf16.mxu0 %v3249_v15  ;;  %v3264_v44 = vrot.slane %v3262_v56, 5  ;;  %v538_v10 = vsel %vm7482_vm7, 0, %v537_v40  ;;  %v7623_v3 = vrot.slane %v3268_v24, 4  ;;  %v7625_v1 = vrot.slane %v3271_v39, 5  ;;  %v3577_v40 = vld [vmem:[#allocation2 + $0x28] sm:$0xf] }
  0x8e   : > { %539 = vst [vmem:[#allocation2 + $0x70] sm:$0x8] %v538_v10  ;;  %v778_v28 = vshrl.u32 %v7307_v2, 16  ;;  %v781_v37 = vshll.u32 %v7307_v2, 16  ;;  %v751_v59 = vsel %vm568_vm2, %v742_v5, %v750_v48  ;;  %v630_v0 = vld [vmem:[#allocation2 + $0x60] sm:$0xf8]  ;;  %v380_v35 = vadd.f32 %v7448_v52, %v7521_v29 }
  0x8f   : > { %v3265_v63 = vor.u32 %v3264_v44, %v3261_v17  ;;  %v381_v34 = vadd.f32 %v7448_v52, %v7524_v43  ;;  %6219 = vmatpush3.bf16.msra.mxu1 %v6871_v36  ;;  %v753_v41 = vshrl.u32 %v630_v0, 16  ;;  %v756_v62 = vshll.u32 %v630_v0, 16  ;;  %v6875_v48 = vld [vmem:[%s8181_s3 + $0xb0] sm:$0xff]  }
  0x90   : > { %6187 = vmatmul.mubr.bf16.gmra.mrb[8].mxu1 %v751_v59  ;;  %v3274_v2 = vor.u32 %v7625_v1, %v7623_v3  ;;  %v7636_v45 = vrot.slane %v778_v28, 3  ;;  %6220 = vmatprep.subr.bf16.mxu1 %v6873_v21  ;;  %v7645_v29 = vrot.slane %v781_v37, 4  ;;  %v412_v43 = vmax.f32 %v380_v35, 0.0  ;;  %v543_v32 = vld [vmem:[#allocation2 + $0x90] sm:$0x8] }
  0x91   : > { %v3266_v52 = vsel %vm1518_vm4, %v3257_v20, %v3265_v63  ;;  %v413_v60 = vmax.f32 %v381_v34, 0.0  ;;  %v755_v26 = vrot.slane %v753_v41, 3  ;;  %v758_v38 = vrot.slane %v756_v62, 4  ;;  %v3579_v3 = vld [vmem:[#allocation2 + $0x38] sm:$0xf] }
  0x92   : > { %6395 = vmatmul.mubr.bf16.gmra.mrb[24].mxu0 %v3266_v52  ;;  %v616_v25 = vsel %vm7117_vm3, 0, %v615_v49  ;;  %v541_v18 = vsel %vm7482_vm7, 0, %v540_v51  ;;  %v784_v58 = vor.u32 %v7645_v29, %v7636_v45  ;;  %v795_v20 = vshrl.u32 %v6903_v57, 16  ;;  %v6904_v49 = vld [vmem:[#allocation2 + $0x98] sm:$0xf] }
  0x93   : > { %v3027_v61 = vld [vmem:[#allocation2 + $0xf8] sm:$0x1f]  ;;  %v429_v31 = vpack.c.bf16 %v413_v60, %v412_v43  ;;  %617 = vst [vmem:[#allocation2 + $0x108] sm:$0x10] %v616_v25  ;;  %542 = vst [vmem:[#allocation2 + $0x80] sm:$0x8] %v541_v18  ;;  %6221 = vmatpush3.bf16.msra.mxu1 %v6873_v21  ;;  %v759_v36 = vor.u32 %v758_v38, %v755_v26 }
  0x94   : > { %v798_v4 = vshll.u32 %v6903_v57, 16  ;;  %v3276_v50 = vshrl.u32 %v3027_v61, 16  ;;  %v3279_v14 = vshll.u32 %v3027_v61, 16  ;;  %v3609_v27 = vshrl.u32 %v3576_v53, 16  ;;  %6222 = vmatprep.subr.bf16.mxu1 %v6875_v48  ;;  %v3578_v63 = vld [vmem:[#allocation2 + $0x30] sm:$0xf8] }
  0x95   : > { %v632_v9 = vld [vmem:[#allocation2 + $0x70] sm:$0xf8]  ;;  %v461_v22 = vrot.slane %v429_v31, 4  ;;  %v7656_v11 = vrot.slane %v795_v20, 3  ;;  %v3612_v47 = vshll.u32 %v3576_v53, 16  ;;  %v768_v33 = vsel %vm568_vm2, %v759_v36, %v767_v55  ;;  %v7666_v55 = vld [vmem:[%s8181_s3 + $0xc0] sm:$0xff]  }
  0x96   : > { %v7658_v12 = vrot.slane %v798_v4, 4  ;;  %v3278_v13 = vrot.slane %v3276_v50, 4  ;;  %v3281_v56 = vrot.slane %v3279_v14, 5  ;;  %v770_v42 = vshrl.u32 %v632_v9, 16  ;;  %6190 = vmatprep.mubr.bf16.mxu1 %v768_v33  ;;  %v546_v45 = vld [vmem:[#allocation2 + $0xa0] sm:$0x8] }
  0x97   : > { %v773_v15 = vshll.u32 %v632_v9, 16  ;;  %509 = vst [vmem:[#allocation2 + $0x108] ss:$-4 sps:$4 sm:$0xff] %v461_v22   ;;  %v3611_v24 = vrot.slane %v3609_v27, 3  ;;  %v3614_v39 = vrot.slane %v3612_v47, 4  ;;  %6223 = vmatpush3.bf16.msra.mxu1 %v6875_v48  ;;  %v3617_v44 = vshrl.u32 %v3577_v40, 16 }
  0x98   : > { %v801_v17 = vor.u32 %v7658_v12, %v7656_v11  ;;  %v3282_v21 = vor.u32 %v3281_v56, %v3278_v13  ;;  %v772_v5 = vrot.slane %v770_v42, 3  ;;  %v3620_v10 = vshll.u32 %v3577_v40, 16  ;;  %6224 = vmatprep.subr.bf16.mxu1 %v6877_v54 }
  0x99   : > { %v775_v1 = vrot.slane %v773_v15, 4  ;;  %v3615_v28 = vor.u32 %v3614_v39, %v3611_v24  ;;  %v544_v37 = vsel %vm7482_vm7, 0, %v543_v32  ;;  %v812_v59 = vshrl.u32 %v6904_v49, 16  ;;  %v3580_v24 = vld [vmem:[#allocation2 + $0x40] sm:$0xf8] }
  0x9a   : > { %v3283_v0 = vsel %vm1518_vm4, %v3274_v2, %v3282_v21  ;;  %v634_v35 = vld [vmem:[#allocation2 + $0x80] sm:$0xf8]  ;;  %v3619_v34 = vrot.slane %v3617_v44, 3  ;;  %v3622_v51 = vrot.slane %v3620_v10, 4  ;;  %545 = vst [vmem:[#allocation2 + $0x90] sm:$0x8] %v544_v37 }
  0x9b   : > { %v815_v53 = vshll.u32 %v6904_v49, 16  ;;  %6398 = vmatprep.mubr.bf16.mxu0 %v3283_v0  ;;  %v776_v41 = vor.u32 %v775_v1, %v772_v5  ;;  %v787_v62 = vshrl.u32 %v634_v35, 16  ;;  %v790_v48 = vshll.u32 %v634_v35, 16  ;;  %6225 = vmatpush3.bf16.msra.mxu1 %v6877_v54  ;;  %v6905_v44 = vld [vmem:[#allocation2 + $0xa8] sm:$0xf] }
  0x9c   : > { %v7671_v52 = vrot.slane %v812_v59, 3  ;;  %v3623_v43 = vor.u32 %v3622_v51, %v3619_v34  ;;  %v3626_v26 = vshrl.u32 %v3578_v63, 16  ;;  %v3629_v38 = vshll.u32 %v3578_v63, 16  ;;  %6258 = vmatprep.subr.bf16.mxu1 %v7666_v55  ;;  %v549_v59 = vld [vmem:[#allocation2 + $0xb0] sm:$0x8] }
  0x9d   : > { %v7673_v60 = vrot.slane %v815_v53, 4  ;;  %v785_v2 = vsel %vm568_vm2, %v776_v41, %v784_v58  ;;  %v789_v25 = vrot.slane %v787_v62, 3  ;;  %v792_v18 = vrot.slane %v790_v48, 4  ;;  %v3583_v34 = vld [vmem:[#allocation2 + $0x58] sm:$0xf] }
  0x9e   : > { %v3634_v61 = vshrl.u32 %v3579_v3, 16  ;;  %6191 = vmatmul.mubr.bf16.gmra.mrb[12].mxu1 %v785_v2  ;;  %v2658_v31 = vld [vmem:[#allocation2 + $0x100] sm:$0xf0]  ;;  %v3028_v57 = vld [vmem:[#allocation2 + $0x108] sm:$0x1f]  ;;  %v3624_v20 = vsel %vm568_vm2, %v3615_v28, %v3623_v43  ;;  %v3628_v40 = vrot.slane %v3626_v26, 3 }
  0x9f   : > { %v818_v4 = vor.u32 %v7673_v60, %v7671_v52  ;;  %v3631_v36 = vrot.slane %v3629_v38, 4  ;;  %v3285_v50 = vshrl.u32 %v2658_v31, 16  ;;  %v3288_v14 = vshll.u32 %v2658_v31, 16  ;;  %v3582_v48 = vld [vmem:[#allocation2 + $0x50] sm:$0xf8] }
  0xa0   : > { %v3293_v27 = vshrl.u32 %v3028_v57, 16  ;;  %v3296_v54 = vshll.u32 %v3028_v57, 16  ;;  %v793_v29 = vor.u32 %v792_v18, %v789_v25  ;;  %v3636_v9 = vrot.slane %v3634_v61, 3  ;;  %v6906_v18 = vld [vmem:[#allocation2 + $0xb8] sm:$0xf] }
  0xa1   : > { %v3632_v58 = vor.u32 %v3631_v36, %v3628_v40  ;;  %v3637_v22 = vshll.u32 %v3579_v3, 16  ;;  %v3287_v11 = vrot.slane %v3285_v50, 4  ;;  %v3290_v12 = vrot.slane %v3288_v14, 5  ;;  %v636_v13 = vld [vmem:[#allocation2 + $0x90] sm:$0xf8] }
  0xa2   : > { %v3295_v47 = vrot.slane %v3293_v27, 4  ;;  %v3298_v33 = vrot.slane %v3296_v54, 5  ;;  %v802_v56 = vsel %vm568_vm2, %v793_v29, %v801_v17  ;;  %v804_v42 = vshrl.u32 %v636_v13, 16  ;;  %v3581_v3 = vld [vmem:[#allocation2 + $0x48] sm:$0xf] }
  0xa3   : > { %v807_v32 = vshll.u32 %v636_v13, 16  ;;  %v3639_v15 = vrot.slane %v3637_v22, 4  ;;  %v3291_v39 = vor.u32 %v3290_v12, %v3287_v11  ;;  %6194 = vmatprep.mubr.bf16.mxu1 %v802_v56  ;;  %v547_v5 = vsel %vm7482_vm7, 0, %v546_v45  ;;  %v552_v31 = vld [vmem:[#allocation2 + $0xc0] sm:$0x8] }
  0xa4   : > { %v3299_v21 = vor.u32 %v3298_v33, %v3295_v47  ;;  %v829_v10 = vshrl.u32 %v6905_v44, 16  ;;  %v806_v1 = vrot.slane %v804_v42, 3  ;;  %548 = vst [vmem:[#allocation2 + $0xa0] sm:$0x8] %v547_v5  ;;  %v832_v49 = vshll.u32 %v6905_v44, 16 }
  0xa5   : > { %v809_v28 = vrot.slane %v807_v32, 4  ;;  %v3640_v37 = vor.u32 %v3639_v15, %v3636_v9  ;;  %v3643_v0 = vshrl.u32 %v3580_v24, 16  ;;  %v3646_v35 = vshll.u32 %v3580_v24, 16  ;;  %v6874_v9 = vld [vmem:[%s8181_s3 + $0x1c8] sm:$0xff]   ;;  %v3584_v13 = vld [vmem:[#allocation2 + $0x60] sm:$0xf8] }
  0xa6   : > { %v3300_v17 = vsel %vm1518_vm4, %v3291_v39, %v3299_v21  ;;  %v7687_v63 = vrot.slane %v829_v10, 3  ;;  %v7690_v41 = vrot.slane %v832_v49, 4  ;;  %v3651_v62 = vshrl.u32 %v3581_v3, 16  ;;  %v6907_v15 = vld [vmem:[#allocation2 + $0xc8] sm:$0xf] }
  0xa7   : > { %6399 = vmatmul.mubr.bf16.gmra.mrb[28].mxu0 %v3300_v17  ;;  %v810_v51 = vor.u32 %v809_v28, %v806_v1  ;;  %v3641_v53 = vsel %vm568_vm2, %v3632_v58, %v3640_v37  ;;  %v3645_v52 = vrot.slane %v3643_v0, 3  ;;  %v3648_v43 = vrot.slane %v3646_v35, 4  ;;  %v7709_v10 = vld [vmem:[#allocation2 + $0x68] sm:$0xf]  ;;  %v555_v35 = vld [vmem:[#allocation2 + $0xd0] sm:$0x8] }
  0xa8   : > { %6418 = vmatprep.mubr.bf16.mxu0 %v3624_v20  ;;  %v3654_v60 = vshll.u32 %v3581_v3, 16  ;;  %v550_v26 = vsel %vm7482_vm7, 0, %v549_v59  ;;  %v835_v2 = vor.u32 %v7690_v41, %v7687_v63  ;;  %v3653_v25 = vrot.slane %v3651_v62, 3 }
  0xa9   : > { %v819_v38 = vsel %vm568_vm2, %v810_v51, %v818_v4  ;;  %551 = vst [vmem:[#allocation2 + $0xb0] sm:$0x8] %v550_v26  ;;  %v846_v61 = vshrl.u32 %v6906_v18, 16  ;;  %v3649_v57 = vor.u32 %v3648_v43, %v3645_v52  ;;  %v849_v20 = vshll.u32 %v6906_v18, 16 }
  0xaa   : > { %6195 = vmatmul.mubr.bf16.gmra.mrb[16].mxu1 %v819_v38  ;;  %v3656_v40 = vrot.slane %v3654_v60, 4  ;;  %v3660_v36 = vshrl.u32 %v3582_v48, 16  ;;  %v3663_v14 = vshll.u32 %v3582_v48, 16  ;;  %v3668_v27 = vshrl.u32 %v3583_v34, 16  ;;  %v3586_v60 = vld [vmem:[#allocation2 + $0x70] sm:$0xf8] }
  0xab   : > { %v7697_v50 = vrot.slane %v846_v61, 3  ;;  %v3671_v54 = vshll.u32 %v3583_v34, 16  ;;  %v638_v45 = vld [vmem:[#allocation2 + $0xa0] sm:$0xf8]  ;;  %v7699_v29 = vrot.slane %v849_v20, 4  ;;  %v553_v22 = vsel %vm7482_vm7, 0, %v552_v31 }
  0xac   : > { %v3657_v4 = vor.u32 %v3656_v40, %v3653_v25  ;;  %v3662_v58 = vrot.slane %v3660_v36, 3  ;;  %v821_v11 = vshrl.u32 %v638_v45, 16  ;;  %v824_v12 = vshll.u32 %v638_v45, 16  ;;  %554 = vst [vmem:[#allocation2 + $0xc0] sm:$0x8] %v553_v22  ;;  %v6876_v34 = vld [vmem:[%s8181_s3 + $0x1d0] sm:$0xff]  }
  0xad   : > { %v3665_v47 = vrot.slane %v3663_v14, 4  ;;  %v3670_v33 = vrot.slane %v3668_v27, 3  ;;  %v852_v42 = vor.u32 %v7699_v29, %v7697_v50  ;;  %v3673_v32 = vrot.slane %v3671_v54, 4  ;;  %v7724_v36 = vld [vmem:[#allocation2 + $0x78] sm:$0xf] }
  0xae   : > { %v3658_v56 = vsel %vm568_vm2, %v3649_v57, %v3657_v4  ;;  %v863_v24 = vshrl.u32 %v6907_v15, 16  ;;  %v823_v39 = vrot.slane %v821_v11, 3  ;;  %v826_v21 = vrot.slane %v824_v12, 4  ;;  %v6878_v50 = vld [vmem:[%s8181_s3 + $0x1d8] sm:$0xff]   ;;  %v558_v4 = vld [vmem:[#allocation2 + $0xe0] sm:$0x8] }
  0xaf   : > { %6419 = vmatmul.mubr.bf16.vlgmr.msra.gmra.mrb[0].mxu0 %v3641_v53  ;;  %v3666_v5 = vor.u32 %v3665_v47, %v3662_v58  ;;  %v866_v44 = vshll.u32 %v6907_v15, 16  ;;  %v3674_v1 = vor.u32 %v3673_v32, %v3670_v33  ;;  %v3677_v37 = vshrl.u32 %v3584_v13, 16  ;;  %v7732_v11 = vld [vmem:[#allocation2 + $0x88] sm:$0xf] }
  0xb0   : > { %6451 = vmatpush3.bf16.msra.mxu0 %v7508_v46  ;;  %6422 = vmatprep.mubr.bf16.mxu0 %v3658_v56  ;;  %v640_v3 = vld [vmem:[#allocation2 + $0xb0] sm:$0xf8]  ;;  %v7712_v28 = vrot.slane %v863_v24, 3  ;;  %v3680_v49 = vshll.u32 %v3584_v13, 16  ;;  %v827_v59 = vor.u32 %v826_v21, %v823_v39  ;;  %v3685_v41 = vshrl.u32 %v7709_v10, 16  ;;  %v6880_v39 = vld [vmem:[%s8181_s3 + $0x1e0] sm:$0xff]  }
  0xb1   : > { %v838_v17 = vshrl.u32 %v640_v3, 16  ;;  %v841_v63 = vshll.u32 %v640_v3, 16  ;;  %6452 = vmatprep.subr.bf16.mxu0 %v6874_v9  ;;  %v868_v0 = vrot.slane %v866_v44, 4  ;;  %v3675_v51 = vsel %vm568_vm2, %v3666_v5, %v3674_v1  ;;  %v3588_v56 = vld [vmem:[#allocation2 + $0x80] sm:$0xf8] }
  0xb2   : > { %v3679_v46 = vrot.slane %v3677_v37, 3  ;;  %v3682_v53 = vrot.slane %v3680_v49, 4  ;;  %v836_v62 = vsel %vm568_vm2, %v827_v59, %v835_v2  ;;  %v3687_v25 = vrot.slane %v3685_v41, 3  ;;  %v6908_v2 = vld [vmem:[#allocation2 + $0xd8] sm:$0xf] }
  0xb3   : > { %v840_v48 = vrot.slane %v838_v17, 3  ;;  %v843_v52 = vrot.slane %v841_v63, 4  ;;  %v869_v43 = vor.u32 %v868_v0, %v7712_v28  ;;  %6198 = vmatprep.mubr.bf16.mxu1 %v836_v62  ;;  %v642_v26 = vld [vmem:[#allocation2 + $0xc0] sm:$0xf8]  ;;  %v3688_v18 = vshll.u32 %v7709_v10, 16 }
  0xb4   : > { %6453 = vmatpush3.bf16.msra.mxu0 %v6874_v9  ;;  %v3683_v38 = vor.u32 %v3682_v53, %v3679_v46  ;;  %v556_v61 = vsel %vm7482_vm7, 0, %v555_v35  ;;  %v855_v57 = vshrl.u32 %v642_v26, 16  ;;  %v858_v40 = vshll.u32 %v642_v26, 16  ;;  %v561_v59 = vld [vmem:[#allocation2 + $0xf0] sm:$0x8] }
  0xb5   : > { %v844_v31 = vor.u32 %v843_v52, %v840_v48  ;;  %557 = vst [vmem:[#allocation2 + $0xd0] sm:$0x8] %v556_v61  ;;  %v880_v20 = vshrl.u32 %v6908_v2, 16  ;;  %6454 = vmatprep.subr.bf16.mxu0 %v6876_v34  ;;  %v3690_v14 = vrot.slane %v3688_v18, 4  ;;  %v883_v27 = vshll.u32 %v6908_v2, 16 }
  0xb6   : > { %v3694_v54 = vshrl.u32 %v3586_v60, 16  ;;  %v3697_v45 = vshll.u32 %v3586_v60, 16  ;;  %v857_v58 = vrot.slane %v855_v57, 3  ;;  %v860_v9 = vrot.slane %v858_v40, 4  ;;  %v3590_v62 = vld [vmem:[#allocation2 + $0x90] sm:$0xf8] }
  0xb7   : > { %v853_v29 = vsel %vm568_vm2, %v844_v31, %v852_v42  ;;  %6423 = vmatmul.mubr.bf16.gmra.mrb[4].mxu0 %v3675_v51  ;;  %v7730_v22 = vrot.slane %v880_v20, 3  ;;  %v3691_v12 = vor.u32 %v3690_v14, %v3687_v25  ;;  %v7734_v47 = vrot.slane %v883_v27, 4  ;;  %v7761_v2 = vld [vmem:[#allocation2 + $0x98] sm:$0xf] }
  0xb8   : > { %6199 = vmatmul.mubr.bf16.gmra.mrb[20].mxu1 %v853_v29  ;;  %v3696_v33 = vrot.slane %v3694_v54, 3  ;;  %v3699_v13 = vrot.slane %v3697_v45, 4  ;;  %6455 = vmatpush3.bf16.msra.mxu0 %v6876_v34  ;;  %v861_v32 = vor.u32 %v860_v9, %v857_v58  ;;  %v3702_v15 = vshrl.u32 %v7724_v36, 16  ;;  %v1502_v9 = vld [vmem:[#allocation2 + $0x8] sm:$0x1f] }
  0xb9   : > { %v3705_v42 = vshll.u32 %v7724_v36, 16  ;;  %v559_v24 = vsel %vm7482_vm7, 0, %v558_v4  ;;  %6456 = vmatprep.subr.bf16.mxu0 %v6878_v50  ;;  %v3692_v21 = vsel %vm568_vm2, %v3683_v38, %v3691_v12  ;;  %v886_v5 = vor.u32 %v7734_v47, %v7730_v22  ;;  %v6884_v22 = vld [vmem:[%s8181_s3 + $0x1f0] sm:$0xff]  }
  0xba   : > { %v3700_v44 = vor.u32 %v3699_v13, %v3696_v33  ;;  %560 = vst [vmem:[#allocation2 + $0xe0] sm:$0x8] %v559_v24  ;;  %v897_v3 = vshrl.u32 %v7489_v8, 16  ;;  %v870_v1 = vsel %vm568_vm2, %v861_v32, %v869_v43  ;;  %6426 = vmatprep.mubr.bf16.mxu0 %v3692_v21  ;;  %v3704_v28 = vrot.slane %v3702_v15, 3  ;;  %v3592_v13 = vld [vmem:[#allocation2 + $0xa0] sm:$0xf8] }
  0xbb   : > { %v3707_v37 = vrot.slane %v3705_v42, 4  ;;  %v900_v49 = vshll.u32 %v7489_v8, 16  ;;  %6202 = vmatprep.mubr.bf16.mxu1 %v870_v1  ;;  %v3711_v0 = vshrl.u32 %v3588_v56, 16  ;;  %v3714_v35 = vshll.u32 %v3588_v56, 16  ;;  %v6882_v8 = vld [vmem:[%s8181_s3 + $0x1e8] sm:$0xff]  }
  0xbc   : > { %v644_v17 = vld [vmem:[#allocation2 + $0xd0] sm:$0xf8]  ;;  %v7749_v63 = vrot.slane %v897_v3, 3  ;;  %v3719_v34 = vshrl.u32 %v7732_v11, 16  ;;  %6457 = vmatpush3.bf16.msra.mxu0 %v6878_v50  ;;  %v3722_v60 = vshll.u32 %v7732_v11, 16  ;;  %v562_v57 = vsel %vm7482_vm7, 0, %v561_v59 }
  0xbd   : > { %v872_v51 = vshrl.u32 %v644_v17, 16  ;;  %v875_v46 = vshll.u32 %v644_v17, 16  ;;  %v3708_v53 = vor.u32 %v3707_v37, %v3704_v28  ;;  %v902_v41 = vrot.slane %v900_v49, 4  ;;  %6458 = vmatprep.subr.bf16.mxu0 %v6880_v39  ;;  %563 = vst [vmem:[#allocation2 + $0xf0] sm:$0x8] %v562_v57  ;;  %v6886_v59 = vld [vmem:[%s8181_s3 + $0x1f8] sm:$0xff]  }
  0xbe   : > { %v3713_v48 = vrot.slane %v3711_v0, 3  ;;  %v3716_v52 = vrot.slane %v3714_v35, 4  ;;  %v3721_v43 = vrot.slane %v3719_v34, 3  ;;  %v3724_v31 = vrot.slane %v3722_v60, 4  ;;  %v7777_v3 = vld [vmem:[#allocation2 + $0xa8] sm:$0xf] }
  0xbf   : > { %v874_v26 = vrot.slane %v872_v51, 3  ;;  %v877_v38 = vrot.slane %v875_v46, 4  ;;  %v3709_v25 = vsel %vm568_vm2, %v3700_v44, %v3708_v53  ;;  %v903_v18 = vor.u32 %v902_v41, %v7749_v63 }
  0xc0   : > { %6427 = vmatmul.mubr.bf16.gmra.mrb[8].mxu0 %v3709_v25  ;;  %v3717_v61 = vor.u32 %v3716_v52, %v3713_v48  ;;  %v914_v40 = vshrl.u32 %v7518_v30, 16  ;;  %v917_v14 = vshll.u32 %v7518_v30, 16  ;;  %v3728_v27 = vshrl.u32 %v3590_v62, 16  ;;  %v1503_v25 = vld [vmem:[#allocation2 + $0x18] sm:$0x1f] }
  0xc1   : > { %v878_v20 = vor.u32 %v877_v38, %v874_v26  ;;  %v646_v50 = vld [vmem:[#allocation2 + $0xe0] sm:$0xf8]  ;;  %v3731_v54 = vshll.u32 %v3590_v62, 16  ;;  %6459 = vmatpush3.bf16.msra.mxu0 %v6880_v39  ;;  %v3725_v29 = vor.u32 %v3724_v31, %v3721_v43  ;;  %v3736_v42 = vshrl.u32 %v7761_v2, 16 }
  0xc2   : > { %v889_v45 = vshrl.u32 %v646_v50, 16  ;;  %v892_v4 = vshll.u32 %v646_v50, 16  ;;  %v7764_v58 = vrot.slane %v914_v40, 3  ;;  %6460 = vmatprep.subr.bf16.mxu0 %v6882_v8  ;;  %v7770_v47 = vrot.slane %v917_v14, 4  ;;  %v7790_v50 = vld [vmem:[#allocation2 + $0xb8] sm:$0xf] }
  0xc3   : > { %v887_v12 = vsel %vm568_vm2, %v878_v20, %v886_v5  ;;  %v3730_v33 = vrot.slane %v3728_v27, 3  ;;  %v3733_v30 = vrot.slane %v3731_v54, 4  ;;  %v3726_v15 = vsel %vm568_vm2, %v3717_v61, %v3725_v29  ;;  %v6909_v5 = vld [vmem:[#allocation2] sm:$0xf0]  ;;  %v3594_v20 = vld [vmem:[#allocation2 + $0xb0] sm:$0xf8] }
  0xc4   : > { %6203 = vmatmul.mubr.bf16.gmra.mrb[24].mxu1 %v887_v12  ;;  %v891_v56 = vrot.slane %v889_v45, 3  ;;  %v894_v32 = vrot.slane %v892_v4, 4  ;;  %6430 = vmatprep.mubr.bf16.mxu0 %v3726_v15  ;;  %v920_v24 = vor.u32 %v7770_v47, %v7764_v58  ;;  %v3739_v21 = vshll.u32 %v7761_v2, 16  ;;  %v648_v51 = vld [vmem:[#allocation2 + $0xf0] sm:$0xf8] }
  0xc5   : > { %v3734_v39 = vor.u32 %v3733_v30, %v3730_v33  ;;  %v1520_v44 = vshrl.u32 %v6909_v5, 16  ;;  %6461 = vmatpush3.bf16.msra.mxu0 %v6882_v8  ;;  %v3738_v28 = vrot.slane %v3736_v42, 3  ;;  %v1523_v37 = vshll.u32 %v6909_v5, 16 }
  0xc6   : > { %v895_v1 = vor.u32 %v894_v32, %v891_v56  ;;  %v1528_v49 = vshrl.u32 %v1502_v9, 16  ;;  %6462 = vmatprep.subr.bf16.mxu0 %v6884_v22  ;;  %v3741_v17 = vrot.slane %v3739_v21, 4  ;;  %v1531_v0 = vshll.u32 %v1502_v9, 16  ;;  %v7800_v21 = vld [vmem:[#allocation2 + $0xc8] sm:$0xf] }
  0xc7   : > { %v1522_v63 = vrot.slane %v1520_v44, 4  ;;  %v3745_v35 = vshrl.u32 %v3592_v13, 16  ;;  %v1525_v46 = vrot.slane %v1523_v37, 5  ;;  %v3748_v41 = vshll.u32 %v3592_v13, 16 }
  0xc8   : > { %v904_v34 = vsel %vm568_vm2, %v895_v1, %v903_v18  ;;  %v1530_v53 = vrot.slane %v1528_v49, 4  ;;  %v906_v62 = vshrl.u32 %v648_v51, 16  ;;  %v909_v8 = vshll.u32 %v648_v51, 16  ;;  %v7787_v18 = vld [vmem:[%s8181_s3 + $0x200] sm:$0xff]  }
  0xc9   : > { %6206 = vmatprep.mubr.bf16.mxu1 %v904_v34  ;;  %v3742_v48 = vor.u32 %v3741_v17, %v3738_v28  ;;  %v1533_v52 = vrot.slane %v1531_v0, 5  ;;  %6463 = vmatpush3.bf16.msra.mxu0 %v6884_v22  ;;  %v1526_v43 = vor.u32 %v1525_v46, %v1522_v63  ;;  %v3747_v60 = vrot.slane %v3745_v35, 3  ;;  %v6910_v1 = vld [vmem:[#allocation2 + $0x20] sm:$0xf0]  ;;  %v1505_v46 = vld [vmem:[#allocation2 + $0x38] sm:$0x1f] }
  0xca   : > { %v3750_v26 = vrot.slane %v3748_v41, 4  ;;  %v3753_v38 = vshrl.u32 %v7777_v3, 16  ;;  %6464 = vmatprep.subr.bf16.mxu0 %v6886_v59  ;;  %v908_v61 = vrot.slane %v906_v62, 3  ;;  %v911_v31 = vrot.slane %v909_v8, 4  ;;  %v3596_v49 = vld [vmem:[#allocation2 + $0xc0] sm:$0xf8] }
  0xcb   : > { %v3743_v57 = vsel %vm568_vm2, %v3734_v39, %v3742_v48  ;;  %v1534_v40 = vor.u32 %v1533_v52, %v1530_v53  ;;  %v3756_v54 = vshll.u32 %v7777_v3, 16  ;;  %v1543_v45 = vor.u32 %v7161_v7, %v7159_v6  ;;  %v1504_v6 = vld [vmem:[#allocation2 + $0x28] sm:$0x1f] }
  0xcc   : > { %6431 = vmatmul.mubr.bf16.gmra.mrb[12].mxu0 %v3743_v57  ;;  %v3751_v14 = vor.u32 %v3750_v26, %v3747_v60  ;;  %v3755_v27 = vrot.slane %v3753_v38, 3  ;;  %v912_v4 = vor.u32 %v911_v31, %v908_v61  ;;  %v1545_v58 = vshrl.u32 %v1503_v25, 16  ;;  %v7807_v26 = vld [vmem:[#allocation2 + $0xd8] sm:$0xf]  ;;  %v6911_v31 = vld [vmem:[#allocation2 + $0x30] sm:$0xf0] }
  0xcd   : > { %v1535_v29 = vsel %vm1518_vm4, %v1526_v43, %v1534_v40  ;;  %v1548_v9 = vshll.u32 %v1503_v25, 16  ;;  %6465 = vmatpush3.bf16.msra.mxu0 %v6886_v59  ;;  %v3758_v22 = vrot.slane %v3756_v54, 4  ;;  %v3762_v12 = vshrl.u32 %v3594_v20, 16  ;;  %v6881_v40 = vld [vmem:[%s8181_s3 + $0xc8] sm:$0xff]  }
  0xce   : > { %v3765_v47 = vshll.u32 %v3594_v20, 16  ;;  %v3770_v33 = vshrl.u32 %v7790_v50, 16  ;;  %6498 = vmatprep.subr.bf16.mxu0 %v7787_v18  ;;  %v921_v30 = vsel %vm568_vm2, %v912_v4, %v920_v24  ;;  %v1547_v13 = vrot.slane %v1545_v58, 4  ;;  %v3598_v20 = vld [vmem:[#allocation2 + $0xd0] sm:$0xf8] }
  0xcf   : > { %v1550_v56 = vrot.slane %v1548_v9, 5  ;;  %v3773_v32 = vshll.u32 %v7790_v50, 16  ;;  %6207 = vmatmul.mubr.bf16.gmra.mrb[28].mxu1 %v921_v30  ;;  %v3759_v7 = vor.u32 %v3758_v22, %v3755_v27  ;;  %v3764_v15 = vrot.slane %v3762_v12, 3  ;;  %v1506_v22 = vld [vmem:[#allocation2 + $0x48] sm:$0x1f] }
  0xd0   : > { %v3767_v42 = vrot.slane %v3765_v47, 4  ;;  %v3772_v39 = vrot.slane %v3770_v33, 3  ;;  %6226 = vmatprep.mubr.bf16.mxu1 %v1535_v29  ;;  %v1554_v28 = vshrl.u32 %v6910_v1, 16  ;;  %v1557_v37 = vshll.u32 %v6910_v1, 16 }
  0xd1   : > { %v1551_v5 = vor.u32 %v1550_v56, %v1547_v13  ;;  %v3775_v44 = vrot.slane %v3773_v32, 4  ;;  %v3760_v24 = vsel %vm568_vm2, %v3751_v14, %v3759_v7  ;;  %v1562_v17 = vshrl.u32 %v1504_v6, 16  ;;  %v6883_v13 = vld [vmem:[%s8181_s3 + $0xd0] sm:$0xff]  }
  0xd2   : > { %v3768_v59 = vor.u32 %v3767_v42, %v3764_v15  ;;  %v1565_v63 = vshll.u32 %v1504_v6, 16  ;;  %6434 = vmatprep.mubr.bf16.mxu0 %v3760_v24  ;;  %v1556_v34 = vrot.slane %v1554_v28, 4  ;;  %v1559_v51 = vrot.slane %v1557_v37, 5 }
  0xd3   : > { %v1552_v0 = vsel %vm1518_vm4, %v1543_v45, %v1551_v5  ;;  %v3776_v35 = vor.u32 %v3775_v44, %v3772_v39  ;;  %v1564_v53 = vrot.slane %v1562_v17, 4  ;;  %v3779_v62 = vshrl.u32 %v3596_v49, 16  ;;  %v6912_v39 = vld [vmem:[#allocation2 + $0x40] sm:$0xf0] }
  0xd4   : > { %v1567_v41 = vrot.slane %v1565_v63, 5  ;;  %v3782_v8 = vshll.u32 %v3596_v49, 16  ;;  %v1560_v52 = vor.u32 %v1559_v51, %v1556_v34  ;;  %v3787_v43 = vshrl.u32 %v7800_v21, 16  ;;  %v3600_v44 = vld [vmem:[#allocation2 + $0xe0] sm:$0xf8] }
  0xd5   : > { %v3777_v48 = vsel %vm568_vm2, %v3768_v59, %v3776_v35  ;;  %v3790_v60 = vshll.u32 %v7800_v21, 16  ;;  %v3781_v25 = vrot.slane %v3779_v62, 3  ;;  %v1571_v57 = vshrl.u32 %v6911_v31, 16 }
  0xd6   : > { %6435 = vmatmul.mubr.bf16.gmra.mrb[16].mxu0 %v3777_v48  ;;  %v1568_v38 = vor.u32 %v1567_v41, %v1564_v53  ;;  %v3784_v61 = vrot.slane %v3782_v8, 4  ;;  %v3789_v14 = vrot.slane %v3787_v43, 3  ;;  %v1574_v54 = vshll.u32 %v6911_v31, 16  ;;  %v6885_v53 = vld [vmem:[%s8181_s3 + $0xd8] sm:$0xff]  }
  0xd7   : > { %v3792_v27 = vrot.slane %v3790_v60, 4  ;;  %v1579_v45 = vshrl.u32 %v1505_v46, 16  ;;  %6227 = vmatmul.mubr.bf16.vlgmr.msra.gmra.mrb[0].mxu1 %v1552_v0  ;;  %v1573_v58 = vrot.slane %v1571_v57, 4  ;;  %v1582_v9 = vshll.u32 %v1505_v46, 16  ;;  %v7820_v0 = vld [vmem:[#allocation2 + $0xe8] sm:$0xf] }
  0xd8   : > { %v1569_v4 = vsel %vm1518_vm4, %v1560_v52, %v1568_v38  ;;  %v3785_v29 = vor.u32 %v3784_v61, %v3781_v25  ;;  %6259 = vmatpush3.bf16.msra.mxu1 %v7666_v55  ;;  %v1576_v47 = vrot.slane %v1574_v54, 5  ;;  %v3796_v30 = vshrl.u32 %v3598_v20, 16  ;;  %v1507_v52 = vld [vmem:[#allocation2 + $0x58] sm:$0x1f]  ;;  %v6887_v61 = vld [vmem:[%s8181_s3 + $0xe0] sm:$0xff]  }
  0xd9   : > { %6230 = vmatprep.mubr.bf16.mxu1 %v1569_v4  ;;  %v3793_v12 = vor.u32 %v3792_v27, %v3789_v14  ;;  %v1581_v33 = vrot.slane %v1579_v45, 4  ;;  %v1584_v56 = vrot.slane %v1582_v9, 5  ;;  %6260 = vmatprep.subr.bf16.mxu1 %v6881_v40  ;;  %v3799_v32 = vshll.u32 %v3598_v20, 16  ;;  %v6913_v20 = vld [vmem:[#allocation2 + $0x50] sm:$0xf0] }
  0xda   : > { %v3804_v6 = vshrl.u32 %v7807_v26, 16  ;;  %v3807_v7 = vshll.u32 %v7807_v26, 16  ;;  %v1577_v42 = vor.u32 %v1576_v47, %v1573_v58  ;;  %v3798_v55 = vrot.slane %v3796_v30, 3  ;;  %v3602_v27 = vld [vmem:[#allocation2 + $0xf0] sm:$0xf8] }
  0xdb   : > { %v3794_v15 = vsel %vm568_vm2, %v3785_v29, %v3793_v12  ;;  %v1588_v5 = vshrl.u32 %v6912_v39, 16  ;;  %v1585_v1 = vor.u32 %v1584_v56, %v1581_v33  ;;  %v3801_v28 = vrot.slane %v3799_v32, 4  ;;  %v7832_v54 = vld [vmem:[#allocation2 + $0xf8] sm:$0xf] }
  0xdc   : > { %6438 = vmatprep.mubr.bf16.mxu0 %v3794_v15  ;;  %v3806_v37 = vrot.slane %v3804_v6, 3  ;;  %v3809_v49 = vrot.slane %v3807_v7, 4  ;;  %6261 = vmatpush3.bf16.msra.mxu1 %v6881_v40  ;;  %v1591_v59 = vshll.u32 %v6912_v39, 16  ;;  %v1596_v17 = vshrl.u32 %v1506_v22, 16  ;;  %v1508_v6 = vld [vmem:[#allocation2 + $0x68] sm:$0x1f] }
  0xdd   : > { %v1590_v24 = vrot.slane %v1588_v5, 4  ;;  %v1599_v63 = vshll.u32 %v1506_v22, 16  ;;  %v1586_v35 = vsel %vm1518_vm4, %v1577_v42, %v1585_v1  ;;  %v3802_v34 = vor.u32 %v3801_v28, %v3798_v55  ;;  %6262 = vmatprep.subr.bf16.mxu1 %v6883_v13  ;;  %v564_v39 = vld [vmem:[#allocation2 + $0x100] sm:$0x8]  ;;  %v6914_v28 = vld [vmem:[#allocation2 + $0x60] sm:$0xf0] }
  0xde   : > { %v3810_v51 = vor.u32 %v3809_v49, %v3806_v37  ;;  %v3813_v46 = vshrl.u32 %v3600_v44, 16  ;;  %v1593_v41 = vrot.slane %v1591_v59, 5  ;;  %v1598_v62 = vrot.slane %v1596_v17, 4  ;;  %v7841_v49 = vld [vmem:[#allocation2 + $0x108] sm:$0xf] }
  0xdf   : > { %v1601_v8 = vrot.slane %v1599_v63, 5  ;;  %v3816_v48 = vshll.u32 %v3600_v44, 16  ;;  %6231 = vmatmul.mubr.bf16.gmra.mrb[4].mxu1 %v1586_v35  ;;  %v3821_v38 = vshrl.u32 %v7820_v0, 16  ;;  %v3824_v25 = vshll.u32 %v7820_v0, 16 }
  0xe0   : > { %v3811_v43 = vsel %vm568_vm2, %v3802_v34, %v3810_v51  ;;  %v3815_v60 = vrot.slane %v3813_v46, 3  ;;  %v1594_v31 = vor.u32 %v1593_v41, %v1590_v24  ;;  %v1605_v14 = vshrl.u32 %v6913_v20, 16  ;;  %6263 = vmatpush3.bf16.msra.mxu1 %v6883_v13  ;;  %v6889_v13 = vld [vmem:[%s8181_s3 + $0xe8] sm:$0xff]  }
  0xe1   : > { %6439 = vmatmul.mubr.bf16.gmra.mrb[20].mxu0 %v3811_v43  ;;  %v1602_v57 = vor.u32 %v1601_v8, %v1598_v62  ;;  %v3818_v40 = vrot.slane %v3816_v48, 4  ;;  %v3823_v45 = vrot.slane %v3821_v38, 3  ;;  %v3826_v4 = vrot.slane %v3824_v25, 4  ;;  %6264 = vmatprep.subr.bf16.mxu1 %v6885_v53  ;;  %v1509_v48 = vld [vmem:[#allocation2 + $0x78] sm:$0x1f] }
  0xe2   : > { %v1608_v29 = vshll.u32 %v6913_v20, 16  ;;  %v1613_v58 = vshrl.u32 %v1507_v52, 16  ;;  %v1607_v12 = vrot.slane %v1605_v14, 4  ;;  %v1616_v47 = vshll.u32 %v1507_v52, 16  ;;  %v6891_v52 = vld [vmem:[%s8181_s3 + $0xf0] sm:$0xff]  }
  0xe3   : > { %v1603_v9 = vsel %vm1518_vm4, %v1594_v31, %v1602_v57  ;;  %v3819_v22 = vor.u32 %v3818_v40, %v3815_v60  ;;  %v3827_v33 = vor.u32 %v3826_v4, %v3823_v45  ;;  %v3830_v32 = vshrl.u32 %v3602_v27, 16  ;;  %v3606_v31 = vld [vmem:[#allocation2 + $0x110] sm:$0xf8] }
  0xe4   : > { %6234 = vmatprep.mubr.bf16.mxu1 %v1603_v9  ;;  %v1610_v30 = vrot.slane %v1608_v29, 5  ;;  %v1615_v56 = vrot.slane %v1613_v58, 4  ;;  %v1618_v7 = vrot.slane %v1616_v47, 5  ;;  %v3833_v15 = vshll.u32 %v3602_v27, 16  ;;  %6265 = vmatpush3.bf16.msra.mxu1 %v6885_v53  ;;  %v6915_v40 = vld [vmem:[#allocation2 + $0x70] sm:$0xf0] }
  0xe5   : > { %v3838_v42 = vshrl.u32 %v7832_v54, 16  ;;  %v3841_v55 = vshll.u32 %v7832_v54, 16  ;;  %v3828_v5 = vsel %vm568_vm2, %v3819_v22, %v3827_v33  ;;  %v3832_v1 = vrot.slane %v3830_v32, 3  ;;  %6266 = vmatprep.subr.bf16.mxu1 %v6887_v61  ;;  %v7854_v29 = vld [vmem:[#allocation2 + $0x118] sm:$0xf] }
  0xe6   : > { %v1611_v44 = vor.u32 %v1610_v30, %v1607_v12  ;;  %v1622_v37 = vshrl.u32 %v6914_v28, 16  ;;  %6442 = vmatprep.mubr.bf16.mxu0 %v3828_v5  ;;  %v1619_v24 = vor.u32 %v1618_v7, %v1615_v56  ;;  %v3835_v59 = vrot.slane %v3833_v15, 4  ;;  %v1510_v32 = vld [vmem:[#allocation2 + $0x88] sm:$0x1f] }
  0xe7   : > { %v3840_v17 = vrot.slane %v3838_v42, 3  ;;  %v3843_v63 = vrot.slane %v3841_v55, 4  ;;  %v1625_v34 = vshll.u32 %v6914_v28, 16  ;;  %v1630_v51 = vshrl.u32 %v1508_v6, 16 }
  0xe8   : > { %v1624_v35 = vrot.slane %v1622_v37, 4  ;;  %v1633_v46 = vshll.u32 %v1508_v6, 16  ;;  %v1620_v53 = vsel %vm1518_vm4, %v1611_v44, %v1619_v24  ;;  %v3836_v41 = vor.u32 %v3835_v59, %v3832_v1  ;;  %6267 = vmatpush3.bf16.msra.mxu1 %v6887_v61  ;;  %v6893_v6 = vld [vmem:[%s8181_s3 + $0xf8] sm:$0xff]   ;;  %v6916_v44 = vld [vmem:[#allocation2 + $0x80] sm:$0xf0] }
  0xe9   : > { %v3844_v62 = vor.u32 %v3843_v63, %v3840_v17  ;;  %v565_v8 = vsel %vm7482_vm7, 0, %v564_v39  ;;  %6235 = vmatmul.mubr.bf16.gmra.mrb[8].mxu1 %v1620_v53  ;;  %v1627_v43 = vrot.slane %v1625_v34, 5  ;;  %v1632_v60 = vrot.slane %v1630_v51, 4  ;;  %6268 = vmatprep.subr.bf16.mxu1 %v6889_v13 }
  0xea   : > { %v1635_v38 = vrot.slane %v1633_v46, 5  ;;  %566 = vst [vmem:[#allocation2 + $0x100] sm:$0x8] %v565_v8  ;;  %v3855_v25 = vshrl.u32 %v7841_v49, 16  ;;  %v3858_v19 = vshll.u32 %v7841_v49, 16  ;;  %v1639_v20 = vshrl.u32 %v6915_v40, 16 }
  0xeb   : > { %v3845_v57 = vsel %vm568_vm2, %v3836_v41, %v3844_v62  ;;  %v1642_v61 = vshll.u32 %v6915_v40, 16  ;;  %v1628_v14 = vor.u32 %v1627_v43, %v1624_v35  ;;  %v1647_v4 = vshrl.u32 %v1509_v48, 16  ;;  %v7866_v46 = vld [vmem:[#allocation2 + $0x20] sm:$0xf0]  ;;  %v6918_v40 = vld [vmem:[#allocation2 + $0x90] sm:$0xf0] }
  0xec   : > { %6443 = vmatmul.mubr.bf16.gmra.mrb[24].mxu0 %v3845_v57  ;;  %v1636_v27 = vor.u32 %v1635_v38, %v1632_v60  ;;  %v7852_v45 = vrot.slane %v3855_v25, 3  ;;  %v7856_v58 = vrot.slane %v3858_v19, 4  ;;  %v1641_v9 = vrot.slane %v1639_v20, 4  ;;  %6269 = vmatpush3.bf16.msra.mxu1 %v6889_v13  ;;  %v1511_v25 = vld [vmem:[#allocation2 + $0x98] sm:$0x1f] }
  0xed   : > { %v1644_v22 = vrot.slane %v1642_v61, 5  ;;  %v1650_v12 = vshll.u32 %v1509_v48, 16  ;;  %v1649_v33 = vrot.slane %v1647_v4, 4  ;;  %v3864_v30 = vshrl.u32 %v3606_v31, 16  ;;  %6270 = vmatprep.subr.bf16.mxu1 %v6891_v52  ;;  %v6917_v57 = vld [vmem:[#allocation2 + $0x28] sm:$0xf] }
  0xee   : > { %v1637_v47 = vsel %vm1518_vm4, %v1628_v14, %v1636_v27  ;;  %v3867_v56 = vshll.u32 %v3606_v31, 16  ;;  %v3861_v7 = vor.u32 %v7856_v58, %v7852_v45  ;;  %v3872_v55 = vshrl.u32 %v7854_v29, 16  ;;  %v7870_v61 = vld [vmem:[#allocation2 + $0x30] sm:$0xf0]  ;;  %v7876_v58 = vld [vmem:[%s8181_s3 + $0x100] sm:$0xff]  }
  0xef   : > { %6238 = vmatprep.mubr.bf16.mxu1 %v1637_v47  ;;  %v1645_v15 = vor.u32 %v1644_v22, %v1641_v9  ;;  %v1652_v42 = vrot.slane %v1650_v12, 5  ;;  %v3866_v13 = vrot.slane %v3864_v30, 3  ;;  %v3875_v5 = vshll.u32 %v7854_v29, 16 }
  0xf0   : > { %v3869_v39 = vrot.slane %v3867_v56, 4  ;;  %v1656_v1 = vshrl.u32 %v6916_v44, 16  ;;  %v3874_v24 = vrot.slane %v3872_v55, 3  ;;  %v1659_v59 = vshll.u32 %v6916_v44, 16  ;;  %6271 = vmatpush3.bf16.msra.mxu1 %v6891_v52  ;;  %v6920_v55 = vld [vmem:[#allocation2 + $0x38] sm:$0xf] }
  0xf1   : > { %v3604_v28 = vld [vmem:[#allocation2 + $0x100] sm:$0xf8]  ;;  %v1653_v37 = vor.u32 %v1652_v42, %v1649_v33  ;;  %v1664_v17 = vshrl.u32 %v1510_v32, 16  ;;  %v3877_v51 = vrot.slane %v3875_v5, 4  ;;  %6272 = vmatprep.subr.bf16.mxu1 %v6893_v6  ;;  %v1667_v38 = vshll.u32 %v1510_v32, 16 }
  0xf2   : > { %v3847_v63 = vshrl.u32 %v3604_v28, 16  ;;  %v3850_v35 = vshll.u32 %v3604_v28, 16  ;;  %v3870_v34 = vor.u32 %v3869_v39, %v3866_v13  ;;  %v1658_v41 = vrot.slane %v1656_v1, 4  ;;  %v1512_v33 = vld [vmem:[#allocation2 + $0xa8] sm:$0x1f] }
  0xf3   : > { %v1654_v53 = vsel %vm1518_vm4, %v1645_v15, %v1653_v37  ;;  %v1661_v62 = vrot.slane %v1659_v59, 5  ;;  %v1666_v8 = vrot.slane %v1664_v17, 4  ;;  %v3878_v60 = vor.u32 %v3877_v51, %v3874_v24  ;;  %v6921_v39 = vld [vmem:[#allocation2 + $0xa0] sm:$0xf0] }
  0xf4   : > { %v3849_v48 = vrot.slane %v3847_v63, 3  ;;  %v3852_v43 = vrot.slane %v3850_v35, 4  ;;  %6239 = vmatmul.mubr.bf16.gmra.mrb[12].mxu1 %v1654_v53  ;;  %v4202_v52 = vrot.slane %v7866_v46, 4  ;;  %v4203_v19 = vrot.slane %v6917_v57, 4  ;;  %v7882_v44 = vld [vmem:[#allocation2 + $0x40] sm:$0xf0] }
  0xf5   : > { %v1662_v31 = vor.u32 %v1661_v62, %v1658_v41  ;;  %v1673_v20 = vshrl.u32 %v6918_v40, 16  ;;  %6273 = vmatpush3.bf16.msra.mxu1 %v6893_v6  ;;  %v3879_v27 = vsel %vm568_vm2, %v3870_v34, %v3878_v60  ;;  %v1669_v45 = vrot.slane %v1667_v38, 5  ;;  %v1513_v35 = vld [vmem:[#allocation2 + $0xb8] sm:$0x1f]  ;;  %v6922_v41 = vld [vmem:[#allocation2 + $0x48] sm:$0xf] }
  0xf6   : > { %v3853_v14 = vor.u32 %v3852_v43, %v3849_v48  ;;  %v1676_v4 = vshll.u32 %v6918_v40, 16  ;;  %6546 = vmatprep.subr.bf16.mxu1 %v7876_v58  ;;  %v4204_v9 = vsel %vm1002_vm0, %v4202_v52, %v4203_v19  ;;  %v1681_v12 = vshrl.u32 %v1511_v25, 16  ;;  %v6923_v60 = vld [vmem:[#allocation2 + $0xb0] sm:$0xf0]  ;;  %v1514_v40 = vld [vmem:[#allocation2 + $0xc8] sm:$0x1f] }
  0xf7   : > { %v1675_v22 = vrot.slane %v1673_v20, 4  ;;  %v1684_v47 = vshll.u32 %v1511_v25, 16  ;;  %v1670_v56 = vor.u32 %v1669_v45, %v1666_v8  ;;  %v4205_v6 = vrot.slane %v7870_v61, 4  ;;  %v7887_v8 = vld [vmem:[#allocation2 + $0x50] sm:$0xf0] }
  0xf8   : > { %v3862_v30 = vsel %vm568_vm2, %v3853_v14, %v3861_v7  ;;  %v1678_v32 = vrot.slane %v1676_v4, 5  ;;  %v1683_v15 = vrot.slane %v1681_v12, 4  ;;  %v4206_v13 = vrot.slane %v6920_v55, 4  ;;  %v6890_v4 = vld [vmem:[%s8181_s3 + $0x208] sm:$0xff]   ;;  %v6924_v12 = vld [vmem:[#allocation2 + $0x58] sm:$0xf] }
  0xf9   : > { %6446 = vmatprep.mubr.bf16.mxu0 %v3862_v30  ;;  %v1686_v42 = vrot.slane %v1684_v47, 5  ;;  %v1690_v5 = vshrl.u32 %v6921_v39, 16  ;;  %v1671_v1 = vsel %vm1518_vm4, %v1662_v31, %v1670_v56  ;;  %v1693_v37 = vshll.u32 %v6921_v39, 16  ;;  %v7895_v56 = vld [vmem:[#allocation2 + $0x60] sm:$0xf0] }
  0xfa   : > { %6447 = vmatmul.mubr.bf16.gmra.mrb[28].mxu0 %v3879_v27  ;;  %v1679_v28 = vor.u32 %v1678_v32, %v1675_v22  ;;  %v1698_v24 = vshrl.u32 %v1512_v33, 16  ;;  %6242 = vmatprep.mubr.bf16.mxu1 %v1671_v1  ;;  %v4207_v59 = vsel %vm1002_vm0, %v4205_v6, %v4206_v13  ;;  %v1701_v63 = vshll.u32 %v1512_v33, 16  ;;  %v6925_v33 = vld [vmem:[#allocation2 + $0xc0] sm:$0xf0]  ;;  %v1515_v1 = vld [vmem:[#allocation2 + $0xd8] sm:$0x1f] }
  0xfb   : > { %6466 = vmatprep.mubr.bf16.mxu0 %v4204_v9  ;;  %v1687_v7 = vor.u32 %v1686_v42, %v1683_v15  ;;  %v1692_v17 = vrot.slane %v1690_v5, 4  ;;  %v1695_v34 = vrot.slane %v1693_v37, 5  ;;  %v4208_v53 = vrot.slane %v7882_v44, 4 }
  0xfc   : > { %v1700_v51 = vrot.slane %v1698_v24, 4  ;;  %v4209_v62 = vrot.slane %v6922_v41, 4  ;;  %v1703_v43 = vrot.slane %v1701_v63, 5  ;;  %v1707_v38 = vshrl.u32 %v6923_v60, 16 }
  0xfd   : > { %v1688_v48 = vsel %vm1518_vm4, %v1679_v28, %v1687_v7  ;;  %v1710_v25 = vshll.u32 %v6923_v60, 16  ;;  %v1696_v31 = vor.u32 %v1695_v34, %v1692_v17  ;;  %v1715_v57 = vshrl.u32 %v1513_v35, 16  ;;  %v7902_v17 = vld [vmem:[#allocation2 + $0x70] sm:$0xf0] }
  0xfe   : > { %6243 = vmatmul.mubr.bf16.gmra.mrb[16].mxu1 %v1688_v48  ;;  %v4210_v52 = vsel %vm1002_vm0, %v4208_v53, %v4209_v62  ;;  %v1718_v19 = vshll.u32 %v1513_v35, 16  ;;  %v1704_v20 = vor.u32 %v1703_v43, %v1700_v51  ;;  %v1709_v14 = vrot.slane %v1707_v38, 4  ;;  %v6926_v35 = vld [vmem:[#allocation2 + $0xd0] sm:$0xf0]  ;;  %v1516_v43 = vld [vmem:[#allocation2 + $0xe8] sm:$0x1f] }
  0xff   : > { %v1712_v27 = vrot.slane %v1710_v25, 5  ;;  %v4211_v45 = vrot.slane %v7887_v8, 4  ;;  %v1717_v9 = vrot.slane %v1715_v57, 4  ;;  %v4212_v47 = vrot.slane %v6924_v12, 4 }
 0x100   : > { %v1720_v22 = vrot.slane %v1718_v19, 5  ;;  %v1724_v30 = vshrl.u32 %v6925_v33, 16  ;;  %v1705_v32 = vsel %vm1518_vm4, %v1696_v31, %v1704_v20  ;;  %v1727_v15 = vshll.u32 %v6925_v33, 16  ;;  %v6927_v19 = vld [vmem:[#allocation2 + $0xe0] sm:$0xf0] }
 0x101   : > { %v1713_v6 = vor.u32 %v1712_v27, %v1709_v14  ;;  %v1732_v42 = vshrl.u32 %v1514_v40, 16  ;;  %6246 = vmatprep.mubr.bf16.mxu1 %v1705_v32  ;;  %v4213_v13 = vsel %vm1002_vm0, %v4211_v45, %v4212_v47  ;;  %v1735_v5 = vshll.u32 %v1514_v40, 16  ;;  %v7911_v20 = vld [vmem:[#allocation2 + $0x80] sm:$0xf0]  ;;  %v1517_v33 = vld [vmem:[#allocation2 + $0xf8] sm:$0x1f] }
 0x102   : > { %6467 = vmatmul.mubr.bf16.vlgmr.msra.gmra.mrb[0].mxu0 %v4207_v59  ;;  %v1721_v55 = vor.u32 %v1720_v22, %v1717_v9  ;;  %v1726_v39 = vrot.slane %v1724_v30, 4  ;;  %v1729_v28 = vrot.slane %v1727_v15, 5  ;;  %v4214_v24 = vrot.slane %v7895_v56, 4  ;;  %v6894_v22 = vld [vmem:[%s8181_s3 + $0x218] sm:$0xff]  }
 0x103   : > { %6499 = vmatpush3.bf16.msra.mxu0 %v7787_v18  ;;  %6470 = vmatprep.mubr.bf16.mxu0 %v4210_v52  ;;  %v1734_v37 = vrot.slane %v1732_v42, 4  ;;  %v4215_v7 = vrot.slane %v7709_v10, 4  ;;  %v1737_v63 = vrot.slane %v1735_v5, 5  ;;  %v1741_v34 = vshrl.u32 %v6926_v35, 16  ;;  %v6892_v18 = vld [vmem:[%s8181_s3 + $0x210] sm:$0xff]  }
 0x104   : > { %v1722_v59 = vsel %vm1518_vm4, %v1713_v6, %v1721_v55  ;;  %6500 = vmatprep.subr.bf16.mxu0 %v6890_v4  ;;  %v1744_v51 = vshll.u32 %v6926_v35, 16  ;;  %v1730_v53 = vor.u32 %v1729_v28, %v1726_v39  ;;  %v1749_v62 = vshrl.u32 %v1515_v1, 16  ;;  %v7920_v42 = vld [vmem:[#allocation2 + $0x90] sm:$0xf0] }
 0x105   : > { %v4216_v41 = vsel %vm1002_vm0, %v4214_v24, %v4215_v7  ;;  %v1752_v48 = vshll.u32 %v1515_v1, 16  ;;  %v1738_v10 = vor.u32 %v1737_v63, %v1734_v37  ;;  %v1743_v60 = vrot.slane %v1741_v34, 4  ;;  %v6928_v5 = vld [vmem:[#allocation2 + $0xf0] sm:$0xf0] }
 0x106   : > { %6247 = vmatmul.mubr.bf16.gmra.mrb[20].mxu1 %v1722_v59  ;;  %v1746_v38 = vrot.slane %v1744_v51, 5  ;;  %v4217_v25 = vrot.slane %v7902_v17, 4  ;;  %v1751_v31 = vrot.slane %v1749_v62, 4  ;;  %v4218_v57 = vrot.slane %v7724_v36, 4  ;;  %v2065_v37 = vld [vmem:[#allocation2 + $0x10] sm:$0xf8] }
 0x107   : > { %6501 = vmatpush3.bf16.msra.mxu0 %v6890_v4  ;;  %v1754_v52 = vrot.slane %v1752_v48, 5  ;;  %v1758_v40 = vshrl.u32 %v6927_v19, 16  ;;  %v1739_v14 = vsel %vm1518_vm4, %v1730_v53, %v1738_v10  ;;  %v1761_v45 = vshll.u32 %v6927_v19, 16  ;;  %v7929_v48 = vld [vmem:[#allocation2 + $0xa0] sm:$0xf0] }
 0x108   : > { %v1747_v27 = vor.u32 %v1746_v38, %v1743_v60  ;;  %6502 = vmatprep.subr.bf16.mxu0 %v6892_v18  ;;  %v1766_v9 = vshrl.u32 %v1516_v43, 16  ;;  %6250 = vmatprep.mubr.bf16.mxu1 %v1739_v14  ;;  %v4219_v12 = vsel %vm1002_vm0, %v4217_v25, %v4218_v57  ;;  %v1769_v36 = vshll.u32 %v1516_v43, 16  ;;  %v6929_v38 = vld [vmem:[#allocation2 + $0x18] sm:$0xf]  ;;  %v7933_v14 = vld [vmem:[#allocation2 + $0xb0] sm:$0xf0] }
 0x109   : > { %v1755_v4 = vor.u32 %v1754_v52, %v1751_v31  ;;  %v1760_v47 = vrot.slane %v1758_v40, 4  ;;  %v1763_v30 = vrot.slane %v1761_v45, 5  ;;  %v4220_v6 = vrot.slane %v7911_v20, 4  ;;  %v2067_v31 = vld [vmem:[#allocation2 + $0x20] sm:$0xf8] }
 0x10a   : > { %6471 = vmatmul.mubr.bf16.gmra.mrb[4].mxu0 %v4213_v13  ;;  %v1768_v32 = vrot.slane %v1766_v9, 4  ;;  %v4221_v15 = vrot.slane %v7732_v11, 4  ;;  %v1771_v39 = vrot.slane %v1769_v36, 5  ;;  %v1775_v1 = vshrl.u32 %v6928_v5, 16  ;;  %v6895_v11 = vld [vmem:[%s8181_s3 + $0x220] sm:$0xff]  }
 0x10b   : > { %6474 = vmatprep.mubr.bf16.mxu0 %v4216_v41  ;;  %v1756_v55 = vsel %vm1518_vm4, %v1747_v27, %v1755_v4  ;;  %6503 = vmatpush3.bf16.msra.mxu0 %v6892_v18  ;;  %v1778_v28 = vshll.u32 %v6928_v5, 16  ;;  %v1764_v24 = vor.u32 %v1763_v30, %v1760_v47  ;;  %v1783_v7 = vshrl.u32 %v1517_v33, 16  ;;  %v2069_v30 = vld [vmem:[#allocation2 + $0x30] sm:$0xf8] }
 0x10c   : > { %v4222_v13 = vsel %vm1002_vm0, %v4220_v6, %v4221_v15  ;;  %v1786_v59 = vshll.u32 %v1517_v33, 16  ;;  %6504 = vmatprep.subr.bf16.mxu0 %v6894_v22  ;;  %v1772_v63 = vor.u32 %v1771_v39, %v1768_v32  ;;  %v1777_v35 = vrot.slane %v1775_v1, 4  ;;  %v7945_v39 = vld [vmem:[#allocation2 + $0xc0] sm:$0xf0] }
 0x10d   : > { %v1780_v34 = vrot.slane %v1778_v28, 5  ;;  %v4223_v51 = vrot.slane %v7920_v42, 4  ;;  %v1785_v18 = vrot.slane %v1783_v7, 4  ;;  %v4224_v41 = vrot.slane %v7761_v2, 4  ;;  %v6896_v2 = vld [vmem:[%s8181_s3 + $0x228] sm:$0xff]   ;;  %v6897_v28 = vld [vmem:[%s8181_s3 + $0x230] sm:$0xff]  }
 0x10e   : > { %6251 = vmatmul.mubr.bf16.gmra.mrb[24].mxu1 %v1756_v55  ;;  %v1788_v53 = vrot.slane %v1786_v59, 5  ;;  %v2098_v62 = vshrl.u32 %v2065_v37, 16  ;;  %v1773_v43 = vsel %vm1518_vm4, %v1764_v24, %v1772_v63  ;;  %v2101_v60 = vshll.u32 %v2065_v37, 16 }
 0x10f   : > { %v1781_v10 = vor.u32 %v1780_v34, %v1777_v35  ;;  %6505 = vmatpush3.bf16.msra.mxu0 %v6894_v22  ;;  %v2106_v25 = vshrl.u32 %v6929_v38, 16  ;;  %6254 = vmatprep.mubr.bf16.mxu1 %v1773_v43  ;;  %v4225_v57 = vsel %vm1002_vm0, %v4223_v51, %v4224_v41  ;;  %v2109_v40 = vshll.u32 %v6929_v38, 16 }
 0x110   : > { %v1789_v52 = vor.u32 %v1788_v53, %v1785_v18  ;;  %v2100_v19 = vrot.slane %v2098_v62, 3  ;;  %6506 = vmatprep.subr.bf16.mxu0 %v6895_v11  ;;  %v2103_v27 = vrot.slane %v2101_v60, 4  ;;  %v4226_v9 = vrot.slane %v7929_v48, 4  ;;  %v7956_v53 = vld [vmem:[#allocation2 + $0xd0] sm:$0xf0]  ;;  %v6898_v60 = vld [vmem:[%s8181_s3 + $0x238] sm:$0xff]  }
 0x111   : > { %v2108_v45 = vrot.slane %v2106_v25, 3  ;;  %v4227_v22 = vrot.slane %v7777_v3, 4  ;;  %v2111_v47 = vrot.slane %v2109_v40, 4  ;;  %v2115_v36 = vshrl.u32 %v2067_v31, 16  ;;  %v2073_v40 = vld [vmem:[#allocation2 + $0x50] sm:$0xf8] }
 0x112   : > { %6475 = vmatmul.mubr.bf16.gmra.mrb[8].mxu0 %v4219_v12  ;;  %v1790_v4 = vsel %vm1518_vm4, %v1781_v10, %v1789_v52  ;;  %v2118_v33 = vshll.u32 %v2067_v31, 16  ;;  %v2104_v32 = vor.u32 %v2103_v27, %v2100_v19  ;;  %v2129_v15 = vor.u32 %v7172_v23, %v7168_v16  ;;  %v2071_v23 = vld [vmem:[#allocation2 + $0x40] sm:$0xf8]  ;;  %v6931_v31 = vld [vmem:[#allocation2 + $0x48] sm:$0xf] }
 0x113   : > { %6478 = vmatprep.mubr.bf16.mxu0 %v4222_v13  ;;  %v4228_v6 = vsel %vm1002_vm0, %v4226_v9, %v4227_v22  ;;  %v4229_v55 = vrot.slane %v7933_v14, 4  ;;  %6507 = vmatpush3.bf16.msra.mxu0 %v6895_v11  ;;  %v2112_v3 = vor.u32 %v2111_v47, %v2108_v45  ;;  %v2117_v12 = vrot.slane %v2115_v36, 3  ;;  %v6930_v13 = vld [vmem:[#allocation2 + $0x38] sm:$0xf]  ;;  %v7965_v9 = vld [vmem:[#allocation2 + $0xe0] sm:$0xf0] }
 0x114   : > { %v2120_v5 = vrot.slane %v2118_v33, 4  ;;  %v4230_v1 = vrot.slane %v7790_v50, 4  ;;  %6508 = vmatprep.subr.bf16.mxu0 %v6896_v2  ;;  %v2132_v37 = vshrl.u32 %v2069_v30, 16  ;;  %v2135_v24 = vshll.u32 %v2069_v30, 16 }
 0x115   : > { %v2140_v7 = vshrl.u32 %v6930_v13, 16  ;;  %v2143_v16 = vshll.u32 %v6930_v13, 16  ;;  %v2113_v59 = vsel %vm568_vm2, %v2104_v32, %v2112_v3  ;;  %v4232_v50 = vrot.slane %v7945_v39, 4 }
 0x116   : > { %6255 = vmatmul.mubr.bf16.gmra.mrb[28].mxu1 %v1790_v4  ;;  %v2121_v11 = vor.u32 %v2120_v5, %v2117_v12  ;;  %v7953_v63 = vsel %vm1002_vm0, %v4229_v55, %v4230_v1  ;;  %v2134_v35 = vrot.slane %v2132_v37, 3  ;;  %v2137_v34 = vrot.slane %v2135_v24, 4  ;;  %v2075_v55 = vld [vmem:[#allocation2 + $0x60] sm:$0xf8] }
 0x117   : > { %6274 = vmatprep.mubr.bf16.mxu1 %v2113_v59  ;;  %v2142_v51 = vrot.slane %v2140_v7, 3  ;;  %v2145_v18 = vrot.slane %v2143_v16, 4  ;;  %6509 = vmatpush3.bf16.msra.mxu0 %v6896_v2  ;;  %v4233_v62 = vrot.slane %v7800_v21, 4  ;;  %v2149_v43 = vshrl.u32 %v2071_v23, 16  ;;  %v2077_v59 = vld [vmem:[#allocation2 + $0x70] sm:$0xf8] }
 0x118   : > { %v2130_v41 = vsel %vm568_vm2, %v2121_v11, %v2129_v15  ;;  %v2152_v10 = vshll.u32 %v2071_v23, 16  ;;  %6510 = vmatprep.subr.bf16.mxu0 %v6897_v28  ;;  %v2138_v38 = vor.u32 %v2137_v34, %v2134_v35  ;;  %v2157_v52 = vshrl.u32 %v6931_v31, 16  ;;  %v6933_v11 = vld [vmem:[%s8181_s3 + $0x108] sm:$0xff]  }
 0x119   : > { %v2146_v25 = vor.u32 %v2145_v18, %v2142_v51  ;;  %v2160_v19 = vshll.u32 %v6931_v31, 16  ;;  %v4234_v2 = vsel %vm1002_vm0, %v4232_v50, %v4233_v62  ;;  %v2151_v27 = vrot.slane %v2149_v43, 3  ;;  %v7987_v31 = vld [vmem:[#allocation2 + $0x100] sm:$0xf0] }
 0x11a   : > { %6479 = vmatmul.mubr.bf16.gmra.mrb[12].mxu0 %v4225_v57  ;;  %v2154_v45 = vrot.slane %v2152_v10, 4  ;;  %v4235_v21 = vrot.slane %v7956_v53, 4  ;;  %v2159_v4 = vrot.slane %v2157_v52, 3  ;;  %v4236_v36 = vrot.slane %v7807_v26, 4  ;;  %v6932_v57 = vld [vmem:[#allocation2 + $0x58] sm:$0xf] }
 0x11b   : > { %6482 = vmatprep.mubr.bf16.mxu0 %v4228_v6  ;;  %v2147_v22 = vsel %vm568_vm2, %v2138_v38, %v2146_v25  ;;  %v2162_v47 = vrot.slane %v2160_v19, 4  ;;  %6511 = vmatpush3.bf16.msra.mxu0 %v6897_v28  ;;  %v2166_v30 = vshrl.u32 %v2073_v40, 16  ;;  %v2169_v32 = vshll.u32 %v2073_v40, 16  ;;  %v7974_v28 = vld [vmem:[#allocation2 + $0xf0] sm:$0xf0] }
 0x11c   : > { %v2155_v33 = vor.u32 %v2154_v45, %v2151_v27  ;;  %v2174_v15 = vshrl.u32 %v6932_v57, 16  ;;  %6512 = vmatprep.subr.bf16.mxu0 %v6898_v60  ;;  %v7970_v12 = vsel %vm1002_vm0, %v4235_v21, %v4236_v36  ;;  %v2177_v5 = vshll.u32 %v6932_v57, 16  ;;  %v6935_v40 = vld [vmem:[#allocation2 + $0x78] sm:$0xf]  ;;  %v2079_v45 = vld [vmem:[#allocation2 + $0x80] sm:$0xf8] }
 0x11d   : > { %v2163_v3 = vor.u32 %v2162_v47, %v2159_v4  ;;  %v4238_v6 = vrot.slane %v7965_v9, 4  ;;  %v2168_v1 = vrot.slane %v2166_v30, 3  ;;  %v2171_v37 = vrot.slane %v2169_v32, 4  ;;  %v7998_v30 = vld [vmem:[#allocation2 + $0x110] sm:$0xf0] }
 0x11e   : > { %6275 = vmatmul.mubr.bf16.vlgmr.msra.gmra.mrb[0].mxu1 %v2130_v41  ;;  %v2176_v24 = vrot.slane %v2174_v15, 3  ;;  %v4239_v26 = vrot.slane %v7820_v0, 4  ;;  %v2179_v7 = vrot.slane %v2177_v5, 4  ;;  %v2183_v16 = vshrl.u32 %v2075_v55, 16  ;;  %v6934_v0 = vld [vmem:[#allocation2 + $0x68] sm:$0xf] }
 0x11f   : > { %6554 = vmatpush3.bf16.msra.mxu1 %v7876_v58  ;;  %6278 = vmatprep.mubr.bf16.mxu1 %v2147_v22  ;;  %v2164_v13 = vsel %vm568_vm2, %v2155_v33, %v2163_v3  ;;  %v2186_v23 = vshll.u32 %v2075_v55, 16  ;;  %v2172_v50 = vor.u32 %v2171_v37, %v2168_v1  ;;  %v2191_v34 = vshrl.u32 %v6934_v0, 16  ;;  %v2081_v3 = vld [vmem:[#allocation2 + $0x90] sm:$0xf8]  ;;  %v6937_v1 = vld [vmem:[#allocation2 + $0x88] sm:$0xf] }
 0x120   : > { %6547 = vmatprep.subr.bf16.mxu1 %v6933_v11  ;;  %v7982_v35 = vsel %vm1002_vm0, %v4238_v6, %v4239_v26  ;;  %v2194_v51 = vshll.u32 %v6934_v0, 16  ;;  %6513 = vmatpush3.bf16.msra.mxu0 %v6898_v60  ;;  %v2180_v58 = vor.u32 %v2179_v7, %v2176_v24  ;;  %v2185_v18 = vrot.slane %v2183_v16, 3  ;;  %v8004_v26 = vld [vmem:[#allocation2 + $0x98] sm:$0xf] }
 0x121   : > { %v2188_v41 = vrot.slane %v2186_v23, 4  ;;  %v4241_v62 = vrot.slane %v7974_v28, 4  ;;  %v2193_v43 = vrot.slane %v2191_v34, 3  ;;  %v4242_v38 = vrot.slane %v7832_v54, 4  ;;  %v6938_v16 = vld [vmem:[%s8181_s3 + $0x118] sm:$0xff]  }
 0x122   : > { %6483 = vmatmul.mubr.bf16.gmra.mrb[16].mxu0 %v7953_v63  ;;  %v2196_v10 = vrot.slane %v2194_v51, 4  ;;  %v2200_v25 = vshrl.u32 %v2077_v59, 16  ;;  %v2181_v52 = vsel %vm568_vm2, %v2172_v50, %v2180_v58  ;;  %v2203_v60 = vshll.u32 %v2077_v59, 16  ;;  %v6936_v63 = vld [vmem:[%s8181_s3 + $0x110] sm:$0xff]  }
 0x123   : > { %6486 = vmatprep.mubr.bf16.mxu0 %v4234_v2  ;;  %6555 = vmatpush3.bf16.msra.mxu1 %v6933_v11  ;;  %v2189_v19 = vor.u32 %v2188_v41, %v2185_v18  ;;  %v2208_v27 = vshrl.u32 %v6935_v40, 16  ;;  %v7994_v54 = vsel %vm1002_vm0, %v4241_v62, %v4242_v38  ;;  %v2211_v4 = vshll.u32 %v6935_v40, 16  ;;  %v4524_v41 = vld [vmem:[#allocation2 + $0x28] sm:$0x1f]  ;;  %v2083_v38 = vld [vmem:[#allocation2 + $0xa0] sm:$0xf8] }
 0x124   : > { %v2197_v21 = vor.u32 %v2196_v10, %v2193_v43  ;;  %6548 = vmatprep.subr.bf16.mxu1 %v6936_v63  ;;  %v2202_v22 = vrot.slane %v2200_v25, 3  ;;  %v2205_v2 = vrot.slane %v2203_v60, 4  ;;  %v4244_v36 = vrot.slane %v7987_v31, 4  ;;  %v6939_v60 = vld [vmem:[%s8181_s3 + $0x120] sm:$0xff]  }
 0x125   : > { %v2210_v47 = vrot.slane %v2208_v27, 3  ;;  %v4245_v33 = vrot.slane %v7841_v49, 4  ;;  %v2213_v57 = vrot.slane %v2211_v4, 4  ;;  %v2217_v15 = vshrl.u32 %v2079_v45, 16 }
 0x126   : > { %6279 = vmatmul.mubr.bf16.gmra.mrb[4].mxu1 %v2164_v13  ;;  %v2198_v32 = vsel %vm568_vm2, %v2189_v19, %v2197_v21  ;;  %v2220_v55 = vshll.u32 %v2079_v45, 16  ;;  %v2206_v5 = vor.u32 %v2205_v2, %v2202_v22  ;;  %v2225_v37 = vshrl.u32 %v6937_v1, 16  ;;  %v8025_v21 = vld [vmem:[#allocation2 + $0xa8] sm:$0xf] }
 0x127   : > { %6282 = vmatprep.mubr.bf16.mxu1 %v2181_v52  ;;  %6556 = vmatpush3.bf16.msra.mxu1 %v6936_v63  ;;  %v8002_v6 = vsel %vm1002_vm0, %v4244_v36, %v4245_v33  ;;  %v2228_v24 = vshll.u32 %v6937_v1, 16  ;;  %v2214_v49 = vor.u32 %v2213_v57, %v2210_v47  ;;  %v2219_v7 = vrot.slane %v2217_v15, 3  ;;  %v4525_v57 = vld [vmem:[#allocation2 + $0x38] sm:$0x1f] }
 0x128   : > { %v2222_v13 = vrot.slane %v2220_v55, 4  ;;  %6549 = vmatprep.subr.bf16.mxu1 %v6938_v16  ;;  %v4247_v23 = vrot.slane %v7998_v30, 4  ;;  %v2227_v59 = vrot.slane %v2225_v37, 3  ;;  %v4248_v50 = vrot.slane %v7854_v29, 4 }
 0x129   : > { %v2230_v11 = vrot.slane %v2228_v24, 4  ;;  %v2234_v0 = vshrl.u32 %v2081_v3, 16  ;;  %v2215_v34 = vsel %vm568_vm2, %v2206_v5, %v2214_v49  ;;  %v2237_v58 = vshll.u32 %v2081_v3, 16 }
 0x12a   : > { %6487 = vmatmul.mubr.bf16.gmra.mrb[20].mxu0 %v7970_v12  ;;  %v2223_v51 = vor.u32 %v2222_v13, %v2219_v7  ;;  %v2242_v18 = vshrl.u32 %v8004_v26, 16  ;;  %v8016_v43 = vsel %vm1002_vm0, %v4247_v23, %v4248_v50  ;;  %v2245_v29 = vshll.u32 %v8004_v26, 16  ;;  %v2085_v7 = vld [vmem:[#allocation2 + $0xb0] sm:$0xf8] }
 0x12b   : > { %6490 = vmatprep.mubr.bf16.mxu0 %v7982_v35  ;;  %v2231_v62 = vor.u32 %v2230_v11, %v2227_v59  ;;  %6557 = vmatpush3.bf16.msra.mxu1 %v6938_v16  ;;  %v2236_v10 = vrot.slane %v2234_v0, 3  ;;  %v2239_v25 = vrot.slane %v2237_v58, 4  ;;  %v4541_v52 = vshrl.u32 %v7866_v46, 16  ;;  %v8036_v11 = vld [vmem:[#allocation2 + $0xb8] sm:$0xf] }
 0x12c   : > { %v2244_v12 = vrot.slane %v2242_v18, 3  ;;  %v4544_v19 = vshll.u32 %v7866_v46, 16  ;;  %6550 = vmatprep.subr.bf16.mxu1 %v6939_v60  ;;  %v2247_v40 = vrot.slane %v2245_v29, 4  ;;  %v4549_v27 = vshrl.u32 %v4524_v41, 16 }
 0x12d   : > { %v2232_v35 = vsel %vm568_vm2, %v2223_v51, %v2231_v62  ;;  %v4552_v45 = vshll.u32 %v4524_v41, 16  ;;  %v2240_v63 = vor.u32 %v2239_v25, %v2236_v10  ;;  %v4543_v22 = vrot.slane %v4541_v52, 4 }
 0x12e   : > { %6283 = vmatmul.mubr.bf16.gmra.mrb[8].mxu1 %v2198_v32  ;;  %v4546_v4 = vrot.slane %v4544_v19, 5  ;;  %v2251_v2 = vshrl.u32 %v2083_v38, 16  ;;  %v2248_v47 = vor.u32 %v2247_v40, %v2244_v12  ;;  %v4551_v46 = vrot.slane %v4549_v27, 4  ;;  %v6940_v32 = vld [vmem:[%s8181_s3 + $0x128] sm:$0xff]  }
 0x12f   : > { %6286 = vmatprep.mubr.bf16.mxu1 %v2215_v34  ;;  %v4554_v36 = vrot.slane %v4552_v45, 5  ;;  %v2254_v33 = vshll.u32 %v2083_v38, 16  ;;  %6558 = vmatpush3.bf16.msra.mxu1 %v6939_v60  ;;  %v2259_v3 = vshrl.u32 %v8025_v21, 16  ;;  %v2262_v5 = vshll.u32 %v8025_v21, 16  ;;  %v4526_v38 = vld [vmem:[#allocation2 + $0x48] sm:$0x1f] }
 0x130   : > { %v4547_v15 = vor.u32 %v4546_v4, %v4543_v22  ;;  %v2253_v55 = vrot.slane %v2251_v2, 3  ;;  %6551 = vmatprep.subr.bf16.mxu1 %v6940_v32  ;;  %v2249_v1 = vsel %vm568_vm2, %v2240_v63, %v2248_v47  ;;  %v4558_v49 = vshrl.u32 %v7870_v61, 16  ;;  %v2087_v60 = vld [vmem:[#allocation2 + $0xc0] sm:$0xf8] }
 0x131   : > { %v4555_v37 = vor.u32 %v4554_v36, %v4551_v46  ;;  %v2256_v24 = vrot.slane %v2254_v33, 4  ;;  %v2261_v13 = vrot.slane %v2259_v3, 3  ;;  %v2264_v16 = vrot.slane %v2262_v5, 4  ;;  %v8048_v46 = vld [vmem:[#allocation2 + $0xc8] sm:$0xf] }
 0x132   : > { %6491 = vmatmul.mubr.bf16.gmra.mrb[24].mxu0 %v7994_v54  ;;  %v4561_v23 = vshll.u32 %v7870_v61, 16  ;;  %v4566_v59 = vshrl.u32 %v4525_v57, 16  ;;  %v4560_v34 = vrot.slane %v4558_v49, 4  ;;  %v4569_v51 = vshll.u32 %v4525_v57, 16  ;;  %v6941_v54 = vld [vmem:[%s8181_s3 + $0x130] sm:$0xff]  }
 0x133   : > { %6494 = vmatprep.mubr.bf16.mxu0 %v8002_v6  ;;  %v4556_v50 = vsel %vm1518_vm4, %v4547_v15, %v4555_v37  ;;  %v2257_v0 = vor.u32 %v2256_v24, %v2253_v55  ;;  %6559 = vmatpush3.bf16.msra.mxu1 %v6940_v32  ;;  %v2265_v58 = vor.u32 %v2264_v16, %v2261_v13  ;;  %v2268_v62 = vshrl.u32 %v2085_v7, 16  ;;  %v4527_v32 = vld [vmem:[#allocation2 + $0x58] sm:$0x1f] }
 0x134   : > { %v4563_v18 = vrot.slane %v4561_v23, 5  ;;  %v4568_v41 = vrot.slane %v4566_v59, 4  ;;  %6552 = vmatprep.subr.bf16.mxu1 %v6941_v54  ;;  %v4571_v61 = vrot.slane %v4569_v51, 5  ;;  %v2271_v10 = vshll.u32 %v2085_v7, 16 }
 0x135   : > { %v2276_v29 = vshrl.u32 %v8036_v11, 16  ;;  %v2279_v6 = vshll.u32 %v8036_v11, 16  ;;  %v2266_v25 = vsel %vm568_vm2, %v2257_v0, %v2265_v58  ;;  %v2270_v52 = vrot.slane %v2268_v62, 3 }
 0x136   : > { %6287 = vmatmul.mubr.bf16.gmra.mrb[12].mxu1 %v2232_v35  ;;  %v4564_v12 = vor.u32 %v4563_v18, %v4560_v34  ;;  %v4575_v19 = vshrl.u32 %v7882_v44, 16  ;;  %v4572_v40 = vor.u32 %v4571_v61, %v4568_v41  ;;  %v2273_v27 = vrot.slane %v2271_v10, 4  ;;  %v6942_v35 = vld [vmem:[%s8181_s3 + $0x138] sm:$0xff]  }
 0x137   : > { %6290 = vmatprep.mubr.bf16.mxu1 %v2249_v1  ;;  %v2278_v45 = vrot.slane %v2276_v29, 3  ;;  %v2281_v63 = vrot.slane %v2279_v6, 4  ;;  %6560 = vmatpush3.bf16.msra.mxu1 %v6941_v54  ;;  %v4578_v4 = vshll.u32 %v7882_v44, 16  ;;  %v4583_v2 = vshrl.u32 %v4526_v38, 16 }
 0x138   : > { %v4577_v22 = vrot.slane %v4575_v19, 4  ;;  %v4586_v47 = vshll.u32 %v4526_v38, 16  ;;  %6553 = vmatprep.subr.bf16.mxu1 %v6942_v35  ;;  %v4573_v36 = vsel %vm1518_vm4, %v4564_v12, %v4572_v40  ;;  %v2274_v33 = vor.u32 %v2273_v27, %v2270_v52  ;;  %v4528_v52 = vld [vmem:[#allocation2 + $0x68] sm:$0x1f]  ;;  %v2091_v27 = vld [vmem:[#allocation2 + $0xe0] sm:$0xf8] }
 0x139   : > { %v2282_v57 = vor.u32 %v2281_v63, %v2278_v45  ;;  %v2285_v15 = vshrl.u32 %v2087_v60, 16  ;;  %v4580_v55 = vrot.slane %v4578_v4, 5  ;;  %v4585_v3 = vrot.slane %v4583_v2, 4 }
 0x13a   : > { %6495 = vmatmul.mubr.bf16.gmra.mrb[28].mxu0 %v8016_v43  ;;  %v4588_v5 = vrot.slane %v4586_v47, 5  ;;  %v2288_v44 = vshll.u32 %v2087_v60, 16  ;;  %v2293_v24 = vshrl.u32 %v8048_v46, 16  ;;  %v2296_v49 = vshll.u32 %v8048_v46, 16  ;;  %v2089_v43 = vld [vmem:[#allocation2 + $0xd0] sm:$0xf8] }
 0x13b   : > { %6514 = vmatprep.mubr.bf16.mxu0 %v4556_v50  ;;  %v2283_v1 = vsel %vm568_vm2, %v2274_v33, %v2282_v57  ;;  %v2287_v37 = vrot.slane %v2285_v15, 3  ;;  %6561 = vmatpush3.bf16.msra.mxu1 %v6942_v35  ;;  %v4581_v7 = vor.u32 %v4580_v55, %v4577_v22  ;;  %v4592_v23 = vshrl.u32 %v7887_v8, 16  ;;  %v8060_v50 = vld [vmem:[#allocation2 + $0xd8] sm:$0xf]  ;;  %v8068_v57 = vld [vmem:[#allocation2 + $0xe8] sm:$0xf] }
 0x13c   : > { %v4589_v13 = vor.u32 %v4588_v5, %v4585_v3  ;;  %v2290_v16 = vrot.slane %v2288_v44, 4  ;;  %v2295_v59 = vrot.slane %v2293_v24, 3  ;;  %v2298_v0 = vrot.slane %v2296_v49, 4 }
 0x13d   : > { %v4595_v34 = vshll.u32 %v7887_v8, 16  ;;  %v4600_v51 = vshrl.u32 %v4527_v32, 16  ;;  %v4594_v41 = vrot.slane %v4592_v23, 4  ;;  %v4603_v62 = vshll.u32 %v4527_v32, 16 }
 0x13e   : > { %6291 = vmatmul.mubr.bf16.gmra.mrb[16].mxu1 %v2266_v25  ;;  %v4590_v58 = vsel %vm1518_vm4, %v4581_v7, %v4589_v13  ;;  %v2291_v18 = vor.u32 %v2290_v16, %v2287_v37  ;;  %v2299_v54 = vor.u32 %v2298_v0, %v2295_v59  ;;  %v2302_v29 = vshrl.u32 %v2089_v43, 16  ;;  %v4529_v37 = vld [vmem:[#allocation2 + $0x78] sm:$0x1f]  ;;  %v2093_v59 = vld [vmem:[#allocation2 + $0xf0] sm:$0xf8] }
 0x13f   : > { %6294 = vmatprep.mubr.bf16.mxu1 %v2283_v1  ;;  %v4597_v61 = vrot.slane %v4595_v34, 5  ;;  %v4602_v10 = vrot.slane %v4600_v51, 4  ;;  %v4605_v6 = vrot.slane %v4603_v62, 5  ;;  %v2305_v38 = vshll.u32 %v2089_v43, 16 }
 0x140   : > { %v2310_v12 = vshrl.u32 %v8060_v50, 16  ;;  %v2313_v8 = vshll.u32 %v8060_v50, 16  ;;  %v2300_v19 = vsel %vm568_vm2, %v2291_v18, %v2299_v54  ;;  %v2304_v60 = vrot.slane %v2302_v29, 3  ;;  %v8076_v18 = vld [vmem:[#allocation2 + $0xf8] sm:$0xf] }
 0x141   : > { %v4598_v25 = vor.u32 %v4597_v61, %v4594_v41  ;;  %v4609_v40 = vshrl.u32 %v7895_v56, 16  ;;  %v4606_v45 = vor.u32 %v4605_v6, %v4602_v10  ;;  %v2307_v63 = vrot.slane %v2305_v38, 4 }
 0x142   : > { %6515 = vmatmul.mubr.bf16.vlgmr.msra.gmra.mrb[0].mxu0 %v4573_v36  ;;  %v2312_v22 = vrot.slane %v2310_v12, 3  ;;  %v2315_v4 = vrot.slane %v2313_v8, 4  ;;  %v4612_v47 = vshll.u32 %v7895_v56, 16  ;;  %v4617_v35 = vshrl.u32 %v4528_v52, 16 }
 0x143   : > { %6518 = vmatprep.mubr.bf16.mxu0 %v4590_v58  ;;  %v4611_v2 = vrot.slane %v4609_v40, 4  ;;  %v4620_v33 = vshll.u32 %v4528_v52, 16  ;;  %v4607_v15 = vsel %vm1518_vm4, %v4598_v25, %v4606_v45  ;;  %v2308_v55 = vor.u32 %v2307_v63, %v2304_v60  ;;  %v2095_v45 = vld [vmem:[#allocation2 + $0x100] sm:$0xf8] }
 0x144   : > { %v2316_v3 = vor.u32 %v2315_v4, %v2312_v22  ;;  %v2319_v5 = vshrl.u32 %v2091_v27, 16  ;;  %v4614_v44 = vrot.slane %v4612_v47, 5  ;;  %v4619_v32 = vrot.slane %v4617_v35, 4 }
 0x145   : > { %v4622_v36 = vrot.slane %v4620_v33, 5  ;;  %v2322_v1 = vshll.u32 %v2091_v27, 16  ;;  %v2327_v56 = vshrl.u32 %v8068_v57, 16  ;;  %v2330_v7 = vshll.u32 %v8068_v57, 16 }
 0x146   : > { %6295 = vmatmul.mubr.bf16.gmra.mrb[20].mxu1 %v2300_v19  ;;  %v2317_v24 = vsel %vm568_vm2, %v2308_v55, %v2316_v3  ;;  %v2321_v49 = vrot.slane %v2319_v5, 3  ;;  %v4615_v13 = vor.u32 %v4614_v44, %v4611_v2  ;;  %v4626_v43 = vshrl.u32 %v7902_v17, 16  ;;  %v4530_v19 = vld [vmem:[#allocation2 + $0x88] sm:$0x1f] }
 0x147   : > { %6298 = vmatprep.mubr.bf16.mxu1 %v2317_v24  ;;  %v4623_v16 = vor.u32 %v4622_v36, %v4619_v32  ;;  %v2324_v23 = vrot.slane %v2322_v1, 4  ;;  %v2329_v0 = vrot.slane %v2327_v56, 3  ;;  %v2332_v34 = vrot.slane %v2330_v7, 4  ;;  %v8084_v55 = vld [vmem:[#allocation2 + $0x108] sm:$0xf] }
 0x148   : > { %v4629_v51 = vshll.u32 %v7902_v17, 16  ;;  %v4634_v58 = vshrl.u32 %v4529_v37, 16  ;;  %v4628_v54 = vrot.slane %v4626_v43, 4  ;;  %v4637_v61 = vshll.u32 %v4529_v37, 16 }
 0x149   : > { %v4624_v41 = vsel %vm1518_vm4, %v4615_v13, %v4623_v16  ;;  %v2325_v62 = vor.u32 %v2324_v23, %v2321_v49  ;;  %v2333_v10 = vor.u32 %v2332_v34, %v2329_v0  ;;  %v2336_v38 = vshrl.u32 %v2093_v59, 16  ;;  %v4531_v49 = vld [vmem:[#allocation2 + $0x98] sm:$0x1f] }
 0x14a   : > { %6519 = vmatmul.mubr.bf16.gmra.mrb[4].mxu0 %v4607_v15  ;;  %v4631_v29 = vrot.slane %v4629_v51, 5  ;;  %v4636_v6 = vrot.slane %v4634_v58, 4  ;;  %v4639_v12 = vrot.slane %v4637_v61, 5  ;;  %v2339_v8 = vshll.u32 %v2093_v59, 16 }
 0x14b   : > { %6522 = vmatprep.mubr.bf16.mxu0 %v4624_v41  ;;  %v2344_v52 = vshrl.u32 %v8076_v18, 16  ;;  %v2347_v17 = vshll.u32 %v8076_v18, 16  ;;  %v2334_v25 = vsel %vm568_vm2, %v2325_v62, %v2333_v10  ;;  %v2338_v40 = vrot.slane %v2336_v38, 3  ;;  %v4532_v10 = vld [vmem:[#allocation2 + $0xa8] sm:$0x1f] }
 0x14c   : > { %v4632_v60 = vor.u32 %v4631_v29, %v4628_v54  ;;  %v4643_v27 = vshrl.u32 %v7911_v20, 16  ;;  %v4640_v63 = vor.u32 %v4639_v12, %v4636_v6  ;;  %v2341_v22 = vrot.slane %v2339_v8, 4  ;;  %v6943_v12 = vld [vmem:[#allocation2 + $0x90] sm:$0xf0] }
 0x14d   : > { %v2346_v4 = vrot.slane %v2344_v52, 3  ;;  %v2349_v2 = vrot.slane %v2347_v17, 4  ;;  %v4646_v35 = vshll.u32 %v7911_v20, 16  ;;  %v4651_v33 = vshrl.u32 %v4530_v19, 16 }
 0x14e   : > { %6299 = vmatmul.mubr.bf16.gmra.mrb[24].mxu1 %v2334_v25  ;;  %v4645_v47 = vrot.slane %v4643_v27, 4  ;;  %v4654_v15 = vshll.u32 %v4530_v19, 16  ;;  %v4641_v3 = vsel %vm1518_vm4, %v4632_v60, %v4640_v63  ;;  %v2342_v5 = vor.u32 %v2341_v22, %v2338_v40 }
 0x14f   : > { %v2350_v44 = vor.u32 %v2349_v2, %v2346_v4  ;;  %v2353_v32 = vshrl.u32 %v2095_v45, 16  ;;  %v4648_v36 = vrot.slane %v4646_v35, 5  ;;  %v4653_v1 = vrot.slane %v4651_v33, 4  ;;  %v4533_v2 = vld [vmem:[#allocation2 + $0xb8] sm:$0x1f] }
 0x150   : > { %v4656_v37 = vrot.slane %v4654_v15, 5  ;;  %v2356_v24 = vshll.u32 %v2095_v45, 16  ;;  %v2361_v13 = vshrl.u32 %v8084_v55, 16  ;;  %v2364_v20 = vshll.u32 %v8084_v55, 16 }
 0x151   : > { %v2351_v56 = vsel %vm568_vm2, %v2342_v5, %v2350_v44  ;;  %v2355_v7 = vrot.slane %v2353_v32, 3  ;;  %v4649_v16 = vor.u32 %v4648_v36, %v4645_v47  ;;  %v4660_v59 = vshrl.u32 %v7920_v42, 16 }
 0x152   : > { %6523 = vmatmul.mubr.bf16.gmra.mrb[8].mxu0 %v4641_v3  ;;  %6302 = vmatprep.mubr.bf16.mxu1 %v2351_v56  ;;  %v4657_v23 = vor.u32 %v4656_v37, %v4653_v1  ;;  %v2358_v43 = vrot.slane %v2356_v24, 4  ;;  %v2363_v0 = vrot.slane %v2361_v13, 3  ;;  %v2366_v34 = vrot.slane %v2364_v20, 4  ;;  %v4534_v24 = vld [vmem:[#allocation2 + $0xc8] sm:$0x1f] }
 0x153   : > { %v4663_v51 = vshll.u32 %v7920_v42, 16  ;;  %v4668_v58 = vshrl.u32 %v4531_v49, 16  ;;  %v4662_v54 = vrot.slane %v4660_v59, 4  ;;  %v4671_v61 = vshll.u32 %v4531_v49, 16 }
 0x154   : > { %v4658_v41 = vsel %vm1518_vm4, %v4649_v16, %v4657_v23  ;;  %v2359_v62 = vor.u32 %v2358_v43, %v2355_v7  ;;  %v2367_v29 = vor.u32 %v2366_v34, %v2363_v0  ;;  %v2715_v8 = vrot.slane %v6943_v12, 4  ;;  %v6945_v7 = vld [vmem:[#allocation2 + $0xb0] sm:$0xf0] }
 0x155   : > { %6526 = vmatprep.mubr.bf16.mxu0 %v4658_v41  ;;  %v4665_v6 = vrot.slane %v4663_v51, 5  ;;  %v4670_v38 = vrot.slane %v4668_v58, 4  ;;  %v4673_v52 = vrot.slane %v4671_v61, 5  ;;  %v2716_v17 = vrot.slane %v8004_v26, 4  ;;  %v6944_v26 = vld [vmem:[#allocation2 + $0xa0] sm:$0xf0] }
 0x156   : > { %v4677_v19 = vshrl.u32 %v7929_v48, 16  ;;  %v4680_v42 = vshll.u32 %v7929_v48, 16  ;;  %v2368_v25 = vsel %vm568_vm2, %v2359_v62, %v2367_v29  ;;  %v4685_v40 = vshrl.u32 %v4532_v10, 16  ;;  %v4535_v51 = vld [vmem:[#allocation2 + $0xd8] sm:$0x1f] }
 0x157   : > { %v4666_v60 = vor.u32 %v4665_v6, %v4662_v54  ;;  %v4688_v27 = vshll.u32 %v4532_v10, 16  ;;  %6303 = vmatmul.mubr.bf16.gmra.mrb[28].mxu1 %v2368_v25  ;;  %v4674_v45 = vor.u32 %v4673_v52, %v4670_v38  ;;  %v2717_v63 = vsel %vm1002_vm0, %v2715_v8, %v2716_v17  ;;  %v6946_v54 = vld [vmem:[#allocation2 + $0xc0] sm:$0xf0]  ;;  %v4536_v25 = vld [vmem:[#allocation2 + $0xe8] sm:$0x1f] }
 0x158   : > { %v4679_v22 = vrot.slane %v4677_v19, 4  ;;  %v4682_v4 = vrot.slane %v4680_v42, 5  ;;  %6338 = vmatprep.mubr.bf16.mxu1 %v2717_v63  ;;  %v4687_v47 = vrot.slane %v4685_v40, 4  ;;  %v2718_v33 = vrot.slane %v6944_v26, 4 }
 0x159   : > { %v4690_v35 = vrot.slane %v4688_v27, 5  ;;  %v2719_v15 = vrot.slane %v8025_v21, 4  ;;  %v4675_v48 = vsel %vm1518_vm4, %v4666_v60, %v4674_v45  ;;  %v4694_v5 = vshrl.u32 %v7933_v14, 16 }
 0x15a   : > { %v4683_v3 = vor.u32 %v4682_v4, %v4679_v22  ;;  %v4697_v44 = vshll.u32 %v7933_v14, 16  ;;  %6527 = vmatmul.mubr.bf16.gmra.mrb[12].mxu0 %v4675_v48  ;;  %v4702_v1 = vshrl.u32 %v4533_v2, 16  ;;  %v4705_v37 = vshll.u32 %v4533_v2, 16 }
 0x15b   : > { %v4691_v32 = vor.u32 %v4690_v35, %v4687_v47  ;;  %v2720_v36 = vsel %vm1002_vm0, %v2718_v33, %v2719_v15  ;;  %v4696_v49 = vrot.slane %v4694_v5, 4  ;;  %v2721_v13 = vrot.slane %v6945_v7, 4  ;;  %v4537_v5 = vld [vmem:[#allocation2 + $0xf8] sm:$0x1f] }
 0x15c   : > { %v4699_v56 = vrot.slane %v4697_v44, 5  ;;  %v2722_v21 = vrot.slane %v8036_v11, 4  ;;  %v4704_v16 = vrot.slane %v4702_v1, 4  ;;  %v4707_v23 = vrot.slane %v4705_v37, 5 }
 0x15d   : > { %v4692_v20 = vsel %vm1518_vm4, %v4683_v3, %v4691_v32  ;;  %v4711_v43 = vshrl.u32 %v7945_v39, 16  ;;  %v4714_v0 = vshll.u32 %v7945_v39, 16  ;;  %v4719_v34 = vshrl.u32 %v4534_v24, 16 }
 0x15e   : > { %6530 = vmatprep.mubr.bf16.mxu0 %v4692_v20  ;;  %v4700_v14 = vor.u32 %v4699_v56, %v4696_v49  ;;  %v2723_v59 = vsel %vm1002_vm0, %v2721_v13, %v2722_v21  ;;  %v4708_v58 = vor.u32 %v4707_v23, %v4704_v16  ;;  %v4722_v62 = vshll.u32 %v4534_v24, 16  ;;  %v4538_v21 = vld [vmem:[#allocation2 + $0x108] sm:$0x1f]  ;;  %v6949_v23 = vld [vmem:[#allocation2 + $0xf0] sm:$0xf0] }
 0x15f   : > { %v4713_v41 = vrot.slane %v4711_v43, 4  ;;  %v2724_v61 = vrot.slane %v6946_v54, 4  ;;  %6339 = vmatmul.mubr.bf16.vlgmr.msra.gmra.mrb[16].mxu1 %v2720_v36  ;;  %v4716_v11 = vrot.slane %v4714_v0, 5  ;;  %v4721_v10 = vrot.slane %v4719_v34, 4  ;;  %v6948_v36 = vld [vmem:[#allocation2 + $0xe0] sm:$0xf0] }
 0x160   : > { %v2725_v29 = vrot.slane %v8048_v46, 4  ;;  %v4728_v6 = vshrl.u32 %v7956_v53, 16  ;;  %v4709_v38 = vsel %vm1518_vm4, %v4700_v14, %v4708_v58  ;;  %6342 = vmatprep.mubr.bf16.mxu1 %v2723_v59  ;;  %v4724_v12 = vrot.slane %v4722_v62, 5  ;;  %v6947_v46 = vld [vmem:[#allocation2 + $0xd0] sm:$0xf0] }
 0x161   : > { %v4731_v39 = vshll.u32 %v7956_v53, 16  ;;  %v4736_v8 = vshrl.u32 %v4535_v51, 16  ;;  %v4717_v52 = vor.u32 %v4716_v11, %v4713_v41  ;;  %v4739_v42 = vshll.u32 %v4535_v51, 16  ;;  %v4539_v41 = vld [vmem:[#allocation2 + $0x118] sm:$0x1f] }
 0x162   : > { %v2726_v17 = vsel %vm1002_vm0, %v2724_v61, %v2725_v29  ;;  %v4730_v19 = vrot.slane %v4728_v6, 4  ;;  %6531 = vmatmul.mubr.bf16.gmra.mrb[16].mxu0 %v4709_v38  ;;  %v4725_v60 = vor.u32 %v4724_v12, %v4721_v10  ;;  %v2727_v45 = vrot.slane %v6947_v46, 4  ;;  %v6950_v12 = vld [vmem:[#allocation2 + $0x100] sm:$0xf0] }
 0x163   : > { %v4733_v40 = vrot.slane %v4731_v39, 5  ;;  %v4738_v27 = vrot.slane %v4736_v8, 4  ;;  %v4741_v63 = vrot.slane %v4739_v42, 5  ;;  %v2728_v22 = vrot.slane %v8060_v50, 4 }
 0x164   : > { %v4745_v4 = vshrl.u32 %v7965_v9, 16  ;;  %v4748_v53 = vshll.u32 %v7965_v9, 16  ;;  %v4726_v2 = vsel %vm1518_vm4, %v4717_v52, %v4725_v60  ;;  %v4753_v35 = vshrl.u32 %v4536_v25, 16 }
 0x165   : > { %v4734_v47 = vor.u32 %v4733_v40, %v4730_v19  ;;  %v4756_v26 = vshll.u32 %v4536_v25, 16  ;;  %6534 = vmatprep.mubr.bf16.mxu0 %v4726_v2  ;;  %v4742_v33 = vor.u32 %v4741_v63, %v4738_v27  ;;  %v2729_v15 = vsel %vm1002_vm0, %v2727_v45, %v2728_v22 }
 0x166   : > { %v4747_v48 = vrot.slane %v4745_v4, 4  ;;  %v4750_v3 = vrot.slane %v4748_v53, 5  ;;  %v4755_v44 = vrot.slane %v4753_v35, 4  ;;  %v2730_v50 = vrot.slane %v6948_v36, 4 }
 0x167   : > { %v4758_v32 = vrot.slane %v4756_v26, 5  ;;  %6343 = vmatmul.mubr.bf16.gmra.mrb[20].mxu1 %v2726_v17  ;;  %v4743_v1 = vsel %vm1518_vm4, %v4734_v47, %v4742_v33  ;;  %v4762_v37 = vshrl.u32 %v7974_v28, 16  ;;  %v4765_v24 = vshll.u32 %v7974_v28, 16 }
 0x168   : > { %v4751_v9 = vor.u32 %v4750_v3, %v4747_v48  ;;  %6346 = vmatprep.mubr.bf16.mxu1 %v2729_v15  ;;  %v2731_v56 = vrot.slane %v8068_v57, 4  ;;  %v4770_v7 = vshrl.u32 %v4537_v5, 16  ;;  %v4773_v13 = vshll.u32 %v4537_v5, 16 }
 0x169   : > { %v4759_v49 = vor.u32 %v4758_v32, %v4755_v44  ;;  %v4764_v20 = vrot.slane %v4762_v37, 4  ;;  %v4767_v16 = vrot.slane %v4765_v24, 5  ;;  %v2733_v43 = vrot.slane %v6949_v23, 4 }
 0x16a   : > { %v2734_v14 = vrot.slane %v8076_v18, 4  ;;  %6535 = vmatmul.mubr.bf16.gmra.mrb[20].mxu0 %v4743_v1  ;;  %v4772_v0 = vrot.slane %v4770_v7, 4  ;;  %v4775_v34 = vrot.slane %v4773_v13, 5  ;;  %v4779_v28 = vshrl.u32 %v7987_v31, 16 }
 0x16b   : > { %v4760_v59 = vsel %vm1518_vm4, %v4751_v9, %v4759_v49  ;;  %v4768_v51 = vor.u32 %v4767_v16, %v4764_v20  ;;  %v4782_v57 = vshll.u32 %v7987_v31, 16  ;;  %v4787_v58 = vshrl.u32 %v4538_v21, 16 }
 0x16c   : > { %6538 = vmatprep.mubr.bf16.mxu0 %v4760_v59  ;;  %v2732_v62 = vsel %vm1002_vm0, %v2730_v50, %v2731_v56  ;;  %v4776_v54 = vor.u32 %v4775_v34, %v4772_v0  ;;  %v4781_v61 = vrot.slane %v4779_v28, 4  ;;  %v4790_v11 = vshll.u32 %v4538_v21, 16 }
 0x16d   : > { %v2735_v18 = vsel %vm1002_vm0, %v2733_v43, %v2734_v14  ;;  %v4784_v10 = vrot.slane %v4782_v57, 5  ;;  %v4789_v29 = vrot.slane %v4787_v58, 4  ;;  %v4796_v6 = vshrl.u32 %v7998_v30, 16 }
 0x16e   : > { %v4792_v38 = vrot.slane %v4790_v11, 5  ;;  %v2736_v39 = vrot.slane %v6950_v12, 4  ;;  %v4799_v8 = vshll.u32 %v7998_v30, 16  ;;  %v4804_v52 = vshrl.u32 %v4539_v41, 16 }
 0x16f   : > { %6347 = vmatmul.mubr.bf16.gmra.mrb[24].mxu1 %v2732_v62  ;;  %v4777_v31 = vsel %vm1518_vm4, %v4768_v51, %v4776_v54  ;;  %v4785_v17 = vor.u32 %v4784_v10, %v4781_v61  ;;  %v4798_v19 = vrot.slane %v4796_v6, 4  ;;  %v4807_v42 = vshll.u32 %v4539_v41, 16 }
 0x170   : > { %6350 = vmatprep.mubr.bf16.mxu1 %v2735_v18  ;;  %v4793_v25 = vor.u32 %v4792_v38, %v4789_v29  ;;  %v2737_v60 = vrot.slane %v8084_v55, 4  ;;  %v4801_v40 = vrot.slane %v4799_v8, 5  ;;  %v4806_v27 = vrot.slane %v4804_v52, 4 }
 0x171   : > { %v4809_v46 = vrot.slane %v4807_v42, 5 }
 0x172   : > { %6539 = vmatmul.mubr.bf16.gmra.mrb[24].mxu0 %v4777_v31  ;;  %v4794_v45 = vsel %vm1518_vm4, %v4785_v17, %v4793_v25  ;;  %v4802_v63 = vor.u32 %v4801_v40, %v4798_v19  ;;  %v2738_v22 = vsel %vm1002_vm0, %v2736_v39, %v2737_v60 }
 0x173   : > { %6542 = vmatprep.mubr.bf16.mxu0 %v4794_v45  ;;  %v4810_v30 = vor.u32 %v4809_v46, %v4806_v27 }
 0x175   : > { %v4811_v4 = vsel %vm1518_vm4, %v4802_v63, %v4810_v30 }
 0x177   : > { %6351 = vmatmul.mubr.bf16.gmra.mrb[28].mxu1 %v2738_v22 }
 0x17a   : > { %6543 = vmatmul.mubr.bf16.gmra.mrb[28].mxu0 %v4811_v4 }
 0x1f1   : > { %v6276_v53 = vpop.f32.mrb[0].mxu1 }
 0x1f2   : > { %v2484_v2 = vpop.f32.mrb[1].mxu1 }
 0x1f3   : > { %v6277_v47 = vpop.f32.mrb[2].mxu1 }
 0x1f4   : > { %v2487_v35 = vpop.f32.mrb[3].mxu1 }
 0x1f9   : > { %v6280_v55 = vpop.f32.mrb[4].mxu1 }
 0x1fa   : > { %v2500_v26 = vpop.f32.mrb[5].mxu1 }
 0x1fb   : > { %v6281_v33 = vpop.f32.mrb[6].mxu1 }
 0x1fc   : > { %v2503_v15 = vpop.f32.mrb[7].mxu1 }
 0x201   : > { %v6284_v48 = vpop.f32.mrb[8].mxu1 }
 0x202   : > { %v2516_v3 = vpop.f32.mrb[9].mxu1 }
 0x203   : > { %v6285_v5 = vpop.f32.mrb[10].mxu1 }
 0x204   : > { %v2519_v44 = vpop.f32.mrb[11].mxu1 }
 0x209   : > { %v8135_v32 = vpop.f32.mrb[12].mxu1 }
 0x20a   : > { %v8137_v36 = vpop.f32.mrb[13].mxu1 }
 0x20b   : > { %v8139_v50 = vpop.f32.mrb[14].mxu1 }
 0x20c   : > { %v8141_v1 = vpop.f32.mrb[15].mxu1 }
 0x215   : > { %v6516_v9 = vpop.f32.mrb[0].mxu0 }
 0x216   : > { %v6562_v37 = vadd.f32 %v6516_v9, %v6276_v53  ;;  %v4927_v24 = vpop.f32.mrb[1].mxu0 }
 0x217   : > { %v6563_v49 = vadd.f32 %v4927_v24, %v2484_v2  ;;  %v6517_v56 = vpop.f32.mrb[2].mxu0 }
 0x218   : > { %v6564_v7 = vadd.f32 %v6517_v56, %v6277_v47  ;;  %v4930_v13 = vpop.f32.mrb[3].mxu0  ;;  %v5285_v59 = vmul.f32 %v6562_v37, %v6562_v37 }
 0x219   : > { %v6565_v21 = vadd.f32 %v4930_v13, %v2487_v35  ;;  %v5283_v16 = vmul.f32 %v6563_v49, %v6563_v49 }
 0x21a   : > { %v5796_v20 = vpack.c.bf16 %v6564_v7, %v6562_v37  ;;  %v5286_v58 = vmul.f32 %v6564_v7, %v6564_v7 }
 0x21b   : > { %v5791_v23 = vpack.c.bf16 %v6565_v21, %v6563_v49  ;;  %v5246_v43 = vadd.f32 %v6565_v21, %v6563_v49  ;;  %v5284_v14 = vmul.f32 %v6565_v21, %v6565_v21 }
 0x21c   : > { %5883 = vst [vmem:[%s8148_s29 + $0x8] sm:$0xff] %v5796_v20  }
 0x21d   : > { %5792 = vst [vmem:[%s8148_s29] sm:$0xff] %v5791_v23   ;;  %v5247_v0 = vadd.f32 %v6562_v37, %v5246_v43  ;;  %v5315_v34 = vadd.f32 %v5284_v14, %v5283_v16  ;;  %v6520_v28 = vpop.f32.mrb[4].mxu0 }
 0x21e   : > { %v6566_v51 = vadd.f32 %v6520_v28, %v6280_v55  ;;  %v4943_v57 = vpop.f32.mrb[5].mxu0 }
 0x21f   : > { %v5316_v41 = vadd.f32 %v5315_v34, %v5285_v59  ;;  %v6567_v62 = vadd.f32 %v4943_v57, %v2500_v26  ;;  %v5248_v54 = vadd.f32 %v6564_v7, %v5247_v0  ;;  %v6521_v61 = vpop.f32.mrb[6].mxu0 }
 0x220   : > { %v6568_v11 = vadd.f32 %v6521_v61, %v6281_v33  ;;  %v4946_v18 = vpop.f32.mrb[7].mxu0  ;;  %v5289_v17 = vmul.f32 %v6566_v51, %v6566_v51 }
 0x221   : > { %v5249_v10 = vadd.f32 %v6567_v62, %v5248_v54  ;;  %v5287_v29 = vmul.f32 %v6567_v62, %v6567_v62  ;;  %v5317_v6 = vadd.f32 %v5316_v41, %v5286_v58  ;;  %v6569_v38 = vadd.f32 %v4946_v18, %v2503_v15 }
 0x222   : > { %v5806_v12 = vpack.c.bf16 %v6568_v11, %v6566_v51  ;;  %v5290_v27 = vmul.f32 %v6568_v11, %v6568_v11 }
 0x223   : > { %v5318_v39 = vadd.f32 %v5317_v6, %v5287_v29  ;;  %v5801_v8 = vpack.c.bf16 %v6569_v38, %v6567_v62  ;;  %v5250_v52 = vadd.f32 %v6569_v38, %v5249_v10  ;;  %v5288_v31 = vmul.f32 %v6569_v38, %v6569_v38 }
 0x224   : > { %5885 = vst [vmem:[%s8148_s29 + $0x18] sm:$0xff] %v5806_v12  }
 0x225   : > { %5884 = vst [vmem:[%s8148_s29 + $0x10] sm:$0xff] %v5801_v8   ;;  %v5251_v19 = vadd.f32 %v6566_v51, %v5250_v52  ;;  %v5319_v42 = vadd.f32 %v5318_v39, %v5288_v31  ;;  %v6524_v25 = vpop.f32.mrb[8].mxu0 }
 0x226   : > { %v6570_v60 = vadd.f32 %v6524_v25, %v6284_v48  ;;  %v4959_v40 = vpop.f32.mrb[9].mxu0 }
 0x227   : > { %v5320_v46 = vadd.f32 %v5319_v42, %v5289_v17  ;;  %v6571_v45 = vadd.f32 %v4959_v40, %v2516_v3  ;;  %v5252_v63 = vadd.f32 %v6568_v11, %v5251_v19  ;;  %v6525_v30 = vpop.f32.mrb[10].mxu0 }
 0x228   : > { %v6572_v22 = vadd.f32 %v6525_v30, %v6285_v5  ;;  %v4962_v4 = vpop.f32.mrb[11].mxu0  ;;  %v5293_v48 = vmul.f32 %v6570_v60, %v6570_v60 }
 0x229   : > { %v5253_v53 = vadd.f32 %v6571_v45, %v5252_v63  ;;  %v5291_v2 = vmul.f32 %v6571_v45, %v6571_v45  ;;  %v5321_v47 = vadd.f32 %v5320_v46, %v5290_v27  ;;  %v6573_v35 = vadd.f32 %v4962_v4, %v2519_v44 }
 0x22a   : > { %v5816_v55 = vpack.c.bf16 %v6572_v22, %v6570_v60  ;;  %v5294_v49 = vmul.f32 %v6572_v22, %v6572_v22 }
 0x22b   : > { %v5322_v26 = vadd.f32 %v5321_v47, %v5291_v2  ;;  %v5811_v33 = vpack.c.bf16 %v6573_v35, %v6571_v45  ;;  %v5254_v15 = vadd.f32 %v6573_v35, %v5253_v53  ;;  %v5292_v9 = vmul.f32 %v6573_v35, %v6573_v35 }
 0x22c   : > { %5887 = vst [vmem:[%s8148_s29 + $0x28] sm:$0xff] %v5816_v55  }
 0x22d   : > { %5886 = vst [vmem:[%s8148_s29 + $0x20] sm:$0xff] %v5811_v33   ;;  %v5255_v37 = vadd.f32 %v6570_v60, %v5254_v15  ;;  %v5323_v24 = vadd.f32 %v5322_v26, %v5292_v9  ;;  %v6528_v3 = vpop.f32.mrb[12].mxu0 }
 0x22e   : > { %v6574_v5 = vadd.f32 %v6528_v3, %v8135_v32  ;;  %v4975_v7 = vpop.f32.mrb[13].mxu0 }
 0x22f   : > { %v5324_v56 = vadd.f32 %v5323_v24, %v5293_v48  ;;  %v5256_v13 = vadd.f32 %v6572_v22, %v5255_v37  ;;  %v6575_v44 = vadd.f32 %v4975_v7, %v8137_v36  ;;  %v6529_v21 = vpop.f32.mrb[14].mxu0 }
 0x230   : > { %v6576_v16 = vadd.f32 %v6529_v21, %v8139_v50  ;;  %v4978_v23 = vpop.f32.mrb[15].mxu0  ;;  %v5297_v36 = vmul.f32 %v6574_v5, %v6574_v5 }
 0x231   : > { %v5325_v20 = vadd.f32 %v5324_v56, %v5294_v49  ;;  %v5257_v43 = vadd.f32 %v6575_v44, %v5256_v13  ;;  %v5295_v14 = vmul.f32 %v6575_v44, %v6575_v44  ;;  %v6577_v59 = vadd.f32 %v4978_v23, %v8141_v1 }
 0x232   : > { %v5826_v0 = vpack.c.bf16 %v6576_v16, %v6574_v5  ;;  %v6340_v34 = vpop.f32.mrb[16].mxu1  ;;  %v5298_v10 = vmul.f32 %v6576_v16, %v6576_v16 }
 0x233   : > { %v5326_v28 = vadd.f32 %v5325_v20, %v5295_v14  ;;  %v5821_v51 = vpack.c.bf16 %v6577_v59, %v6575_v44  ;;  %v5258_v32 = vadd.f32 %v6577_v59, %v5257_v43  ;;  %v5296_v57 = vmul.f32 %v6577_v59, %v6577_v59  ;;  %v2918_v58 = vpop.f32.mrb[17].mxu1 }
 0x234   : > { %5889 = vst [vmem:[%s8148_s29 + $0x38] sm:$0xff] %v5826_v0   ;;  %v6341_v41 = vpop.f32.mrb[18].mxu1 }
 0x235   : > { %5888 = vst [vmem:[%s8148_s29 + $0x30] sm:$0xff] %v5821_v51   ;;  %v5259_v62 = vadd.f32 %v6574_v5, %v5258_v32  ;;  %v5327_v54 = vadd.f32 %v5326_v28, %v5296_v57  ;;  %v6532_v61 = vpop.f32.mrb[16].mxu0  ;;  %v2921_v50 = vpop.f32.mrb[19].mxu1 }
 0x236   : > { %v6578_v11 = vadd.f32 %v6532_v61, %v6340_v34  ;;  %v4991_v18 = vpop.f32.mrb[17].mxu0 }
 0x237   : > { %v5328_v29 = vadd.f32 %v5327_v54, %v5297_v36  ;;  %v6579_v1 = vadd.f32 %v4991_v18, %v2918_v58  ;;  %v5260_v6 = vadd.f32 %v6576_v16, %v5259_v62  ;;  %v6533_v38 = vpop.f32.mrb[18].mxu0 }
 0x238   : > { %v6580_v12 = vadd.f32 %v6533_v38, %v6341_v41  ;;  %v4994_v39 = vpop.f32.mrb[19].mxu0  ;;  %v5301_v63 = vmul.f32 %v6578_v11, %v6578_v11 }
 0x239   : > { %v5261_v8 = vadd.f32 %v6579_v1, %v5260_v6  ;;  %v5299_v52 = vmul.f32 %v6579_v1, %v6579_v1  ;;  %v5329_v31 = vadd.f32 %v5328_v29, %v5298_v10  ;;  %v6581_v17 = vadd.f32 %v4994_v39, %v2921_v50 }
 0x23a   : > { %v5836_v19 = vpack.c.bf16 %v6580_v12, %v6578_v11  ;;  %v6344_v42 = vpop.f32.mrb[20].mxu1  ;;  %v5302_v35 = vmul.f32 %v6580_v12, %v6580_v12 }
 0x23b   : > { %v5330_v25 = vadd.f32 %v5329_v31, %v5299_v52  ;;  %v5831_v60 = vpack.c.bf16 %v6581_v17, %v6579_v1  ;;  %v5262_v40 = vadd.f32 %v6581_v17, %v5261_v8  ;;  %v5300_v27 = vmul.f32 %v6581_v17, %v6581_v17  ;;  %v2934_v46 = vpop.f32.mrb[21].mxu1 }
 0x23c   : > { %5891 = vst [vmem:[%s8148_s29 + $0x48] sm:$0xff] %v5836_v19   ;;  %v6345_v45 = vpop.f32.mrb[22].mxu1 }
 0x23d   : > { %5890 = vst [vmem:[%s8148_s29 + $0x40] sm:$0xff] %v5831_v60   ;;  %v5263_v30 = vadd.f32 %v6578_v11, %v5262_v40  ;;  %v5331_v22 = vadd.f32 %v5330_v25, %v5300_v27  ;;  %v6536_v4 = vpop.f32.mrb[20].mxu0  ;;  %v2937_v53 = vpop.f32.mrb[23].mxu1 }
 0x23e   : > { %v6582_v2 = vadd.f32 %v6536_v4, %v6344_v42  ;;  %v5007_v47 = vpop.f32.mrb[21].mxu0 }
 0x23f   : > { %v5332_v55 = vadd.f32 %v5331_v22, %v5301_v63  ;;  %v6583_v26 = vadd.f32 %v5007_v47, %v2934_v46  ;;  %v5264_v33 = vadd.f32 %v6580_v12, %v5263_v30  ;;  %v6537_v15 = vpop.f32.mrb[22].mxu0 }
 0x240   : > { %v6584_v9 = vadd.f32 %v6537_v15, %v6345_v45  ;;  %v5010_v48 = vpop.f32.mrb[23].mxu0  ;;  %v5305_v23 = vmul.f32 %v6582_v2, %v6582_v2 }
 0x241   : > { %v5265_v37 = vadd.f32 %v6583_v26, %v5264_v33  ;;  %v5303_v24 = vmul.f32 %v6583_v26, %v6583_v26  ;;  %v5333_v3 = vadd.f32 %v5332_v55, %v5302_v35  ;;  %v6585_v49 = vadd.f32 %v5010_v48, %v2937_v53 }
 0x242   : > { %v5846_v56 = vpack.c.bf16 %v6584_v9, %v6582_v2  ;;  %v6348_v5 = vpop.f32.mrb[24].mxu1  ;;  %v5306_v51 = vmul.f32 %v6584_v9, %v6584_v9 }
 0x243   : > { %v5334_v7 = vadd.f32 %v5333_v3, %v5303_v24  ;;  %v5841_v13 = vpack.c.bf16 %v6585_v49, %v6583_v26  ;;  %v5266_v44 = vadd.f32 %v6585_v49, %v5265_v37  ;;  %v5304_v21 = vmul.f32 %v6585_v49, %v6585_v49  ;;  %v2950_v20 = vpop.f32.mrb[25].mxu1 }
 0x244   : > { %5893 = vst [vmem:[%s8148_s29 + $0x58] sm:$0xff] %v5846_v56   ;;  %v6349_v16 = vpop.f32.mrb[26].mxu1 }
 0x245   : > { %5892 = vst [vmem:[%s8148_s29 + $0x50] sm:$0xff] %v5841_v13   ;;  %v5267_v43 = vadd.f32 %v6582_v2, %v5266_v44  ;;  %v5335_v14 = vadd.f32 %v5334_v7, %v5304_v21  ;;  %v6540_v59 = vpop.f32.mrb[24].mxu0  ;;  %v2953_v0 = vpop.f32.mrb[27].mxu1  ;;  %v5352_v13 = vlaneseq }
 0x246   : > { %v6586_v34 = vadd.f32 %v6540_v59, %v6348_v5  ;;  %v5023_v28 = vpop.f32.mrb[25].mxu0 }
 0x247   : > { %v5336_v32 = vadd.f32 %v5335_v14, %v5305_v23  ;;  %v6587_v57 = vadd.f32 %v5023_v28, %v2950_v20  ;;  %v5268_v58 = vadd.f32 %v6584_v9, %v5267_v43  ;;  %v6541_v41 = vpop.f32.mrb[26].mxu0  ;;  %v5353_v23 = vshrl.u32 %v5352_v13, 7 }
 0x248   : > { %v6588_v36 = vadd.f32 %v6541_v41, %v6349_v16  ;;  %v5026_v62 = vpop.f32.mrb[27].mxu0  ;;  %v5309_v8 = vmul.f32 %v6586_v34, %v6586_v34 }
 0x249   : > { %v5269_v54 = vadd.f32 %v6587_v57, %v5268_v58  ;;  %v5307_v61 = vmul.f32 %v6587_v57, %v6587_v57  ;;  %v5337_v50 = vadd.f32 %v5336_v32, %v5306_v51  ;;  %v6589_v11 = vadd.f32 %v5026_v62, %v2953_v0 }
 0x24a   : > { %v5856_v18 = vpack.c.bf16 %v6588_v36, %v6586_v34  ;;  %v6352_v10 = vpop.f32.mrb[28].mxu1  ;;  %v5310_v60 = vmul.f32 %v6588_v36, %v6588_v36  ;;  %vm5355_vm8 = vcmp.eq.s32.totalorder %v5353_v23, 1  ;;  %vm5354_vm9 = vcmp.eq.s32.totalorder %v5353_v23, 0 }
 0x24b   : > { %v5338_v29 = vadd.f32 %v5337_v50, %v5307_v61  ;;  %v5851_v1 = vpack.c.bf16 %v6589_v11, %v6587_v57  ;;  %v5270_v6 = vadd.f32 %v6589_v11, %v5269_v54  ;;  %v5308_v38 = vmul.f32 %v6589_v11, %v6589_v11  ;;  %v2966_v12 = vpop.f32.mrb[29].mxu1 }
 0x24c   : > { %5895 = vst [vmem:[%s8148_s29 + $0x68] sm:$0xff] %v5856_v18   ;;  %v6353_v39 = vpop.f32.mrb[30].mxu1 }
 0x24d   : > { %5894 = vst [vmem:[%s8148_s29 + $0x60] sm:$0xff] %v5851_v1   ;;  %v5271_v52 = vadd.f32 %v6586_v34, %v5270_v6  ;;  %v5339_v31 = vadd.f32 %v5338_v29, %v5308_v38  ;;  %v6544_v17 = vpop.f32.mrb[28].mxu0  ;;  %v2969_v19 = vpop.f32.mrb[31].mxu1 }
 0x24e   : > { %v6590_v42 = vadd.f32 %v6544_v17, %v6352_v10  ;;  %v5039_v25 = vpop.f32.mrb[29].mxu0 }
 0x24f   : > { %v5340_v40 = vadd.f32 %v5339_v31, %v5309_v8  ;;  %v6591_v27 = vadd.f32 %v5039_v25, %v2966_v12  ;;  %v5272_v46 = vadd.f32 %v6588_v36, %v5271_v52  ;;  %v6545_v45 = vpop.f32.mrb[30].mxu0 }
 0x250   : > { %v6592_v63 = vadd.f32 %v6545_v45, %v6353_v39  ;;  %v5042_v30 = vpop.f32.mrb[31].mxu0  ;;  %v5313_v15 = vmul.f32 %v6590_v42, %v6590_v42 }
 0x251   : > { %v5273_v22 = vadd.f32 %v6591_v27, %v5272_v46  ;;  %v5311_v4 = vmul.f32 %v6591_v27, %v6591_v27  ;;  %v5341_v53 = vadd.f32 %v5340_v40, %v5310_v60  ;;  %v6593_v2 = vadd.f32 %v5042_v30, %v2969_v19 }
 0x252   : > { %v5866_v47 = vpack.c.bf16 %v6592_v63, %v6590_v42  ;;  %v5314_v37 = vmul.f32 %v6592_v63, %v6592_v63 }
 0x253   : > { %v5342_v35 = vadd.f32 %v5341_v53, %v5311_v4  ;;  %v5861_v55 = vpack.c.bf16 %v6593_v2, %v6591_v27  ;;  %v5274_v26 = vadd.f32 %v6593_v2, %v5273_v22  ;;  %v5312_v33 = vmul.f32 %v6593_v2, %v6593_v2 }
 0x254   : > { %5897 = vst [vmem:[%s8148_s29 + $0x78] sm:$0xff] %v5866_v47  }
 0x255   : > { %5896 = vst [vmem:[%s8148_s29 + $0x70] sm:$0xff] %v5861_v55   ;;  %v5275_v9 = vadd.f32 %v6590_v42, %v5274_v26  ;;  %v5343_v48 = vadd.f32 %v5342_v35, %v5312_v33 }
 0x257   : > { %v5276_v24 = vadd.f32 %v6592_v63, %v5275_v9  ;;  %v5344_v3 = vadd.f32 %v5343_v48, %v5313_v15 }
 0x259   : > { %v5277_v49 = vrot.slane %v5276_v24, 4  ;;  %v5345_v56 = vadd.f32 %v5344_v3, %v5314_v37 }
 0x25b   : > { %v5278_v5 = vadd.f32 %v5277_v49, %v5276_v24  ;;  %v5346_v7 = vrot.slane %v5345_v56, 4 }
 0x25d   : > { %v5279_v44 = vrot.slane %v5278_v5, 2  ;;  %v5347_v21 = vadd.f32 %v5346_v7, %v5345_v56 }
 0x25f   : > { %v5280_v20 = vadd.f32 %v5279_v44, %v5278_v5  ;;  %v5348_v16 = vrot.slane %v5347_v21, 2 }
 0x261   : > { %v5349_v43 = vadd.f32 %v5348_v16, %v5347_v21  ;;  %v5281_v14 = vrot.slane %v5280_v20, 1 }
 0x263   : > { %v5350_v59 = vrot.slane %v5349_v43, 1  ;;  %v5282_v34 = vadd.f32 %v5281_v14, %v5280_v20 }
 0x265   : > { %v5351_v0 = vadd.f32 %v5350_v59, %v5349_v43 }
 0x267   : > { %v5356_v28 = vsel %vm5355_vm8, %v5351_v0, 0.0 }
 0x268   : > { %v5357_v51 = vsel %vm5354_vm9, %v5282_v34, %v5356_v28 }
 0x269   : > { %5358 = vst [vmem:[%s238_s21] sm:$0xff] %v5357_v51 }
 0x26a PF: > { %s16_s18 = sadd.s32 1, %s6957_s18  }
 0x26b   : > { %p13_p5 = scmp.ge.s32.totalorder %s16_s18, 4  }
 0x26d   :  { %15 = sbr.rel (!%p13_p5) target bundleno = 1 (0x1), region = 89 }

</bundles_post_ra>
